<compile_context>
chip_gen: v7x
topology: tpu7x:2x2x1
jax: 0.10.0
libtpu: 0.0.40
codegen_flags: <defaults>
</compile_context>

<pallas_src>
import functools

import jax
import jax.numpy as jnp
from jax.experimental import pallas as pl
from jax.experimental.pallas import tpu as pltpu


_LAYER_DIMS = [1000, 400, 100, 1]   # hidden / output sizes of the torch module


def _round_up(n: int, m: int) -> int:
    return ((n + m - 1) // m) * m


def _mlp_kernel(x_dim, z_dim,
                x_ref, z_ref, w1_ref, b1_ref, w2_ref, b2_ref,
                w3_ref, b3_ref, w4_ref, b4_ref, o_ref, xz_ref):
    """Fused discriminator MLP for one (batch_tile,) block of rows."""
    d_in = x_dim + z_dim
    tm, pad_in = xz_ref.shape

    # Assemble the lane-aligned bf16 input tile [x | z | zeros] in VMEM
    # scratch (masked lane stores; static offsets).  The zero fill of the
    # padding columns runs every step so megacore grid sharding stays safe.
    xz_ref[:, :x_dim] = x_ref[...].astype(xz_ref.dtype)
    xz_ref[:, x_dim:d_in] = z_ref[...].astype(xz_ref.dtype)
    if d_in < pad_in:
        xz_ref[:, d_in:] = jnp.zeros((tm, pad_in - d_in), xz_ref.dtype)

    # Layer 1: (TM, 896) @ (896, 1024) -- bf16 in, f32 accumulation.
    h = jnp.dot(xz_ref[...], w1_ref[...], preferred_element_type=jnp.float32)
    h = jnp.maximum(h + b1_ref[...], 0.0)

    # Layer 2: (TM, 1024) @ (1024, 512)
    h = jnp.dot(h.astype(w2_ref.dtype), w2_ref[...],
                preferred_element_type=jnp.float32)
    h = jnp.maximum(h + b2_ref[...], 0.0)

    # Layer 3: (TM, 512) @ (512, 128)
    h = jnp.dot(h.astype(w3_ref.dtype), w3_ref[...],
                preferred_element_type=jnp.float32)
    h = jnp.maximum(h + b3_ref[...], 0.0)

    # Layer 4: single output column -> VPU multiply + XLU lane reduction
    # against one 128-wide f32 weight row; result is a skinny (TM, 1) block.
    o = jnp.sum(h * w4_ref[...], axis=-1, keepdims=True) + b4_ref[...]
    o_ref[...] = o.astype(o_ref.dtype)


def prepare_params(params, x_dim, z_dim, weight_dtype=jnp.bfloat16):
    """Pad + cast the parameters ONCE (outside the per-call hot path).

    Weights are stored (in, out), zero-padded to multiples of 128 and cast to
    `weight_dtype`; biases stay f32.  Layer 4 is stored as a single padded
    (1, 128) f32 row plus a (1, 1) f32 scalar bias.
    """
    dims = [x_dim + z_dim] + _LAYER_DIMS
    pdims = [_round_up(d, 128) for d in dims]

    prepped = {}
    for li in range(3):
        w = jnp.asarray(params[f"w{li + 1}"], jnp.float32)
        b = jnp.asarray(params[f"b{li + 1}"], jnp.float32)
        wp = jnp.zeros((pdims[li], pdims[li + 1]), weight_dtype)
        wp = wp.at[: dims[li], : dims[li + 1]].set(w.astype(weight_dtype))
        bp = jnp.zeros((1, pdims[li + 1]), jnp.float32)
        bp = bp.at[0, : dims[li + 1]].set(b)
        prepped[f"w{li + 1}"] = wp
        prepped[f"b{li + 1}"] = bp

    # Layer 4: (100, 1) weight -> one padded (1, 128) f32 row; (1, 1) bias.
    w4 = jnp.asarray(params["w4"], jnp.float32)[:, 0]
    w4row = jnp.zeros((1, pdims[3]), jnp.float32).at[0, : dims[3]].set(w4)
    prepped["w4"] = w4row
    prepped["b4"] = jnp.asarray(params["b4"], jnp.float32).reshape(1, 1)
    return prepped


@functools.partial(jax.jit, static_argnames=("x_dim", "z_dim", "batch_tile"))
def discriminator_forward(x, z, prepped, *, x_dim, z_dim, batch_tile=256):
    """JAX/Pallas equivalent of discriminator.forward(x, z). Returns (B,).

    x: (..., x_dim) -- flattened to (B, x_dim) like torch's x.view(-1, x_dim)
    z: (B, z_dim)
    prepped: output of prepare_params() (already padded / bf16-cast weights).
    batch_tile: rows per grid step (256 default; clamped for small batches).
    """
    x = x.reshape(-1, x_dim).astype(jnp.float32)
    z = z.astype(jnp.float32)
    B = x.shape[0]
    d_in = x_dim + z_dim
    pad_in = _round_up(d_in, 128)

    # Clamp the tile so tiny batches don't pay for a huge padded tile; keep
    # it a multiple of 128 (MXU / sublane friendly).
    tile = min(batch_tile, _round_up(max(B, 1), 128))
    grid_steps = pl.cdiv(B, tile)
    bp = grid_steps * tile   # rows in the (tiny) padded output

    w1, b1 = prepped["w1"], prepped["b1"]
    w2, b2 = prepped["w2"], prepped["b2"]
    w3, b3 = prepped["w3"], prepped["b3"]
    w4, b4 = prepped["w4"], prepped["b4"]

    # Shard the batch grid across TensorCores as soon as there are >= 2 full
    # tiles (per-step compute at tile>=256 already amortizes the duplicated
    # ~3 MiB weight DMA on v7x; a no-op on single-TC v5e/v6e).
    semantics = ("parallel",) if grid_steps >= 2 else ("arbitrary",)

    def resident(arr):
        # Same whole block at every grid step -> stays VMEM-resident.
        return pl.BlockSpec(arr.shape, lambda i: (0,) * arr.ndim)

    out_p = pl.pallas_call(
        functools.partial(_mlp_kernel, x_dim, z_dim),
        out_shape=jax.ShapeDtypeStruct((bp, 1), jnp.float32),
        grid=(grid_steps,),
        in_specs=[
            # Full-feature blocks (legal: last dim equals the full array dim);
            # the last batch tile may be partial -- OOB rows are garbage that
            # only lands in discarded output rows.
            pl.BlockSpec((tile, x_dim), lambda i: (i, 0)),   # x
            pl.BlockSpec((tile, z_dim), lambda i: (i, 0)),   # z
            resident(w1), resident(b1),
            resident(w2), resident(b2),
            resident(w3), resident(b3),
            resident(w4), resident(b4),
        ],
        out_specs=pl.BlockSpec((tile, 1), lambda i: (i, 0)),
        scratch_shapes=[pltpu.VMEM((tile, pad_in), jnp.bfloat16)],
        compiler_params=pltpu.CompilerParams(
            dimension_semantics=semantics,
            vmem_limit_bytes=32 * 1024 * 1024),
    )(x, z, w1, b1, w2, b2, w3, b3, w4, b4)

    # Un-pad: real batch rows of the single output column -> torch .squeeze().
    return out_p[:B, 0]


def init_params(key, x_dim, z_dim):
    """Deterministic init matching the nn.Linear shapes of the module."""
    dims = [x_dim + z_dim] + _LAYER_DIMS
    params = {}
    for li in range(4):
        key, kw, kb = jax.random.split(key, 3)
        bound = 1.0 / jnp.sqrt(dims[li])
        # Stored as (in, out) so the kernel computes x @ W + b
        # (== PyTorch's x @ weight.T + bias with weight of shape (out, in)).
        params[f"w{li + 1}"] = jax.random.uniform(
            kw, (dims[li], dims[li + 1]), jnp.float32, -bound, bound)
        params[f"b{li + 1}"] = jax.random.uniform(
            kb, (dims[li + 1],), jnp.float32, -bound, bound)
    return params


def _reference_forward(x, z, params, x_dim):
    """Plain-JAX f32 reference for correctness checking."""
    h = jnp.concatenate([x.reshape(-1, x_dim), z], axis=1)
    for li in range(1, 4):
        h = jnp.maximum(h @ params[f"w{li}"] + params[f"b{li}"], 0.0)
    h = h @ params["w4"] + params["b4"]
    return jnp.squeeze(h, axis=-1)


if __name__ == "__main__":
    X_DIM, Z_DIM, BATCH = 784, 2, 4     # module defaults, small batch

    key = jax.random.PRNGKey(0)
    kp, kx, kz = jax.random.split(key, 3)

    params = init_params(kp, X_DIM, Z_DIM)
    prepped = prepare_params(params, X_DIM, Z_DIM)   # one-time pad + bf16 cast

    # x shaped like images so the x.view(-1, x_dim) path is exercised.
    x = jax.random.normal(kx, (BATCH, 1, 28, 28), jnp.float32)   # 28*28 = 784
    z = jax.random.normal(kz, (BATCH, Z_DIM), jnp.float32)

    out = discriminator_forward(x, z, prepped, x_dim=X_DIM, z_dim=Z_DIM)
    out = jax.block_until_ready(out)

    ref = _reference_forward(x, z, params, X_DIM)
    assert out.shape == (BATCH,), out.shape
    # bf16 weight/activation storage (f32 accumulation) gives ~1e-3 level
    # deviation from the f32 reference; tolerance set accordingly.
    assert jnp.allclose(out, ref, atol=2e-2, rtol=2e-2), (out, ref)

    print("KERNEL_OK")
</pallas_src>

<mosaic_0001>
module attributes {stable_mosaic.version = 11 : i64} {
  func.func @_mlp_kernel(%arg0: i32, %arg1: memref<128x784xf32, #tpu.memory_space<vmem>>, %arg2: memref<128x2xf32, #tpu.memory_space<vmem>>, %arg3: memref<896x1024xbf16, #tpu.memory_space<vmem>>, %arg4: memref<1x1024xf32, #tpu.memory_space<vmem>>, %arg5: memref<1024x512xbf16, #tpu.memory_space<vmem>>, %arg6: memref<1x512xf32, #tpu.memory_space<vmem>>, %arg7: memref<512x128xbf16, #tpu.memory_space<vmem>>, %arg8: memref<1x128xf32, #tpu.memory_space<vmem>>, %arg9: memref<1x128xf32, #tpu.memory_space<vmem>>, %arg10: memref<1x1xf32, #tpu.memory_space<vmem>>, %arg11: memref<128x1xf32, #tpu.memory_space<vmem>>, %arg12: memref<128x896xbf16, #tpu.memory_space<vmem>>) attributes {dimension_semantics = [#tpu.dimension_semantics<arbitrary>], iteration_bounds = array<i64: 1>, scalar_prefetch = 0 : i64, scratch_operands = 1 : i64, tpu.core_type = #tpu.core_type<tc>, window_params = [{transform_indices = @transform_0, window_bounds = array<i64: 128, 784>}, {transform_indices = @transform_1, window_bounds = array<i64: 128, 2>}, {pipeline_mode = #tpu.pipeline_mode<synchronous>, transform_indices = @transform_2, window_bounds = array<i64: 896, 1024>}, {pipeline_mode = #tpu.pipeline_mode<synchronous>, transform_indices = @transform_3, window_bounds = array<i64: 1, 1024>}, {pipeline_mode = #tpu.pipeline_mode<synchronous>, transform_indices = @transform_4, window_bounds = array<i64: 1024, 512>}, {pipeline_mode = #tpu.pipeline_mode<synchronous>, transform_indices = @transform_5, window_bounds = array<i64: 1, 512>}, {pipeline_mode = #tpu.pipeline_mode<synchronous>, transform_indices = @transform_6, window_bounds = array<i64: 512, 128>}, {pipeline_mode = #tpu.pipeline_mode<synchronous>, transform_indices = @transform_7, window_bounds = array<i64: 1, 128>}, {pipeline_mode = #tpu.pipeline_mode<synchronous>, transform_indices = @transform_8, window_bounds = array<i64: 1, 128>}, {pipeline_mode = #tpu.pipeline_mode<synchronous>, transform_indices = @transform_9, window_bounds = array<i64: 1, 1>}, {transform_indices = @transform_10, window_bounds = array<i64: 128, 1>}]} {
    %c0 = arith.constant 0 : index
    %c0_0 = arith.constant 0 : index
    %0 = vector.load %arg1[%c0, %c0_0] : memref<128x784xf32, #tpu.memory_space<vmem>>, vector<128x784xf32>
    %1 = arith.truncf %0 : vector<128x784xf32> to vector<128x784xbf16>
    %c0_1 = arith.constant 0 : index
    %c0_2 = arith.constant 0 : index
    %2 = vector.load %arg12[%c0_1, %c0_2] : memref<128x896xbf16, #tpu.memory_space<vmem>>, vector<128x784xbf16>
    tpu.vector_store %arg12[%c0_1, %c0_2], %1 {strides = array<i32>} : memref<128x896xbf16, #tpu.memory_space<vmem>>, vector<128x784xbf16>,
    %c0_3 = arith.constant 0 : index
    %c0_4 = arith.constant 0 : index
    %3 = vector.load %arg2[%c0_3, %c0_4] : memref<128x2xf32, #tpu.memory_space<vmem>>, vector<128x2xf32>
    %4 = arith.truncf %3 : vector<128x2xf32> to vector<128x2xbf16>
    %c0_5 = arith.constant 0 : index
    %c784 = arith.constant 784 : index
    %5 = vector.load %arg12[%c0_5, %c784] : memref<128x896xbf16, #tpu.memory_space<vmem>>, vector<128x2xbf16>
    tpu.vector_store %arg12[%c0_5, %c784], %4 {strides = array<i32>} : memref<128x896xbf16, #tpu.memory_space<vmem>>, vector<128x2xbf16>,
    %cst = arith.constant 0.000000e+00 : bf16
    %6 = vector.broadcast %cst : bf16 to vector<128x110xbf16>
    %c0_6 = arith.constant 0 : index
    %c786 = arith.constant 786 : index
    %7 = vector.load %arg12[%c0_6, %c786] : memref<128x896xbf16, #tpu.memory_space<vmem>>, vector<128x110xbf16>
    tpu.vector_store %arg12[%c0_6, %c786], %6 {strides = array<i32>} : memref<128x896xbf16, #tpu.memory_space<vmem>>, vector<128x110xbf16>,
    %c0_7 = arith.constant 0 : index
    %c0_8 = arith.constant 0 : index
    %8 = vector.load %arg12[%c0_7, %c0_8] : memref<128x896xbf16, #tpu.memory_space<vmem>>, vector<128x896xbf16>
    %c0_9 = arith.constant 0 : index
    %c0_10 = arith.constant 0 : index
    %9 = vector.load %arg3[%c0_9, %c0_10] : memref<896x1024xbf16, #tpu.memory_space<vmem>>, vector<896x1024xbf16>
    %cst_11 = arith.constant dense<0.000000e+00> : vector<128x1024xf32>
    %10 = tpu.matmul %8, %9, %cst_11 {dimension_numbers = #tpu.dot_dimension_numbers<[1], [0], [0], [1], [0, 0, 1, 1], [], []>} : vector<128x896xbf16>, vector<896x1024xbf16>, vector<128x1024xf32> -> vector<128x1024xf32>
    %c0_12 = arith.constant 0 : index
    %c0_13 = arith.constant 0 : index
    %11 = vector.load %arg4[%c0_12, %c0_13] : memref<1x1024xf32, #tpu.memory_space<vmem>>, vector<1x1024xf32>
    %12 = vector.broadcast %11 : vector<1x1024xf32> to vector<128x1024xf32>
    %13 = arith.addf %10, %12 : vector<128x1024xf32>
    %cst_14 = arith.constant 0.000000e+00 : f32
    %14 = vector.broadcast %cst_14 : f32 to vector<128x1024xf32>
    %15 = arith.maximumf %13, %14 : vector<128x1024xf32>
    %16 = arith.truncf %15 : vector<128x1024xf32> to vector<128x1024xbf16>
    %c0_15 = arith.constant 0 : index
    %c0_16 = arith.constant 0 : index
    %17 = vector.load %arg5[%c0_15, %c0_16] : memref<1024x512xbf16, #tpu.memory_space<vmem>>, vector<1024x512xbf16>
    %cst_17 = arith.constant dense<0.000000e+00> : vector<128x512xf32>
    %18 = tpu.matmul %16, %17, %cst_17 {dimension_numbers = #tpu.dot_dimension_numbers<[1], [0], [0], [1], [0, 0, 1, 1], [], []>} : vector<128x1024xbf16>, vector<1024x512xbf16>, vector<128x512xf32> -> vector<128x512xf32>
    %c0_18 = arith.constant 0 : index
    %c0_19 = arith.constant 0 : index
    %19 = vector.load %arg6[%c0_18, %c0_19] : memref<1x512xf32, #tpu.memory_space<vmem>>, vector<1x512xf32>
    %20 = vector.broadcast %19 : vector<1x512xf32> to vector<128x512xf32>
    %21 = arith.addf %18, %20 : vector<128x512xf32>
    %cst_20 = arith.constant 0.000000e+00 : f32
    %22 = vector.broadcast %cst_20 : f32 to vector<128x512xf32>
    %23 = arith.maximumf %21, %22 : vector<128x512xf32>
    %24 = arith.truncf %23 : vector<128x512xf32> to vector<128x512xbf16>
    %c0_21 = arith.constant 0 : index
    %c0_22 = arith.constant 0 : index
    %25 = vector.load %arg7[%c0_21, %c0_22] : memref<512x128xbf16, #tpu.memory_space<vmem>>, vector<512x128xbf16>
    %cst_23 = arith.constant dense<0.000000e+00> : vector<128x128xf32>
    %26 = tpu.matmul %24, %25, %cst_23 {dimension_numbers = #tpu.dot_dimension_numbers<[1], [0], [0], [1], [0, 0, 1, 1], [], []>} : vector<128x512xbf16>, vector<512x128xbf16>, vector<128x128xf32> -> vector<128x128xf32>
    %c0_24 = arith.constant 0 : index
    %c0_25 = arith.constant 0 : index
    %27 = vector.load %arg8[%c0_24, %c0_25] : memref<1x128xf32, #tpu.memory_space<vmem>>, vector<1x128xf32>
    %28 = vector.broadcast %27 : vector<1x128xf32> to vector<128x128xf32>
    %29 = arith.addf %26, %28 : vector<128x128xf32>
    %cst_26 = arith.constant 0.000000e+00 : f32
    %30 = vector.broadcast %cst_26 : f32 to vector<128x128xf32>
    %31 = arith.maximumf %29, %30 : vector<128x128xf32>
    %c0_27 = arith.constant 0 : index
    %c0_28 = arith.constant 0 : index
    %32 = vector.load %arg9[%c0_27, %c0_28] : memref<1x128xf32, #tpu.memory_space<vmem>>, vector<1x128xf32>
    %33 = vector.broadcast %32 : vector<1x128xf32> to vector<128x128xf32>
    %34 = arith.mulf %31, %33 : vector<128x128xf32>
    %cst_29 = arith.constant dense<0.000000e+00> : vector<128xf32>
    %35 = vector.multi_reduction <add>, %34, %cst_29 [1] : vector<128x128xf32> to vector<128xf32>
    %36 = vector.shape_cast %35 : vector<128xf32> to vector<128x1xf32>
    %c0_30 = arith.constant 0 : index
    %c0_31 = arith.constant 0 : index
    %37 = vector.load %arg10[%c0_30, %c0_31] : memref<1x1xf32, #tpu.memory_space<vmem>>, vector<1x1xf32>
    %38 = vector.broadcast %37 : vector<1x1xf32> to vector<128x1xf32>
    %39 = arith.addf %36, %38 : vector<128x1xf32>
    %c0_32 = arith.constant 0 : index
    %c0_33 = arith.constant 0 : index
    %40 = vector.load %arg11[%c0_32, %c0_33] : memref<128x1xf32, #tpu.memory_space<vmem>>, vector<128x1xf32>
    tpu.vector_store %arg11[%c0_32, %c0_33], %39 {strides = array<i32>} : memref<128x1xf32, #tpu.memory_space<vmem>>, vector<128x1xf32>,
    return
  }
  func.func @transform_0(%arg0: i32) -> (i32, i32) {
    %c0_i32 = arith.constant 0 : i32
    %c0_i32_0 = arith.constant 0 : i32
    return %arg0, %c0_i32 : i32, i32
  }
  func.func @transform_1(%arg0: i32) -> (i32, i32) {
    %c0_i32 = arith.constant 0 : i32
    %c0_i32_0 = arith.constant 0 : i32
    return %arg0, %c0_i32 : i32, i32
  }
  func.func @transform_2(%arg0: i32) -> (i32, i32) {
    %c0_i32 = arith.constant 0 : i32
    %c0_i32_0 = arith.constant 0 : i32
    %c0_i32_1 = arith.constant 0 : i32
    return %c0_i32, %c0_i32_0 : i32, i32
  }
  func.func @transform_3(%arg0: i32) -> (i32, i32) {
    %c0_i32 = arith.constant 0 : i32
    %c0_i32_0 = arith.constant 0 : i32
    %c0_i32_1 = arith.constant 0 : i32
    return %c0_i32, %c0_i32_0 : i32, i32
  }
  func.func @transform_4(%arg0: i32) -> (i32, i32) {
    %c0_i32 = arith.constant 0 : i32
    %c0_i32_0 = arith.constant 0 : i32
    %c0_i32_1 = arith.constant 0 : i32
    return %c0_i32, %c0_i32_0 : i32, i32
  }
  func.func @transform_5(%arg0: i32) -> (i32, i32) {
    %c0_i32 = arith.constant 0 : i32
    %c0_i32_0 = arith.constant 0 : i32
    %c0_i32_1 = arith.constant 0 : i32
    return %c0_i32, %c0_i32_0 : i32, i32
  }
  func.func @transform_6(%arg0: i32) -> (i32, i32) {
    %c0_i32 = arith.constant 0 : i32
    %c0_i32_0 = arith.constant 0 : i32
    %c0_i32_1 = arith.constant 0 : i32
    return %c0_i32, %c0_i32_0 : i32, i32
  }
  func.func @transform_7(%arg0: i32) -> (i32, i32) {
    %c0_i32 = arith.constant 0 : i32
    %c0_i32_0 = arith.constant 0 : i32
    %c0_i32_1 = arith.constant 0 : i32
    return %c0_i32, %c0_i32_0 : i32, i32
  }
  func.func @transform_8(%arg0: i32) -> (i32, i32) {
    %c0_i32 = arith.constant 0 : i32
    %c0_i32_0 = arith.constant 0 : i32
    %c0_i32_1 = arith.constant 0 : i32
    return %c0_i32, %c0_i32_0 : i32, i32
  }
  func.func @transform_9(%arg0: i32) -> (i32, i32) {
    %c0_i32 = arith.constant 0 : i32
    %c0_i32_0 = arith.constant 0 : i32
    %c0_i32_1 = arith.constant 0 : i32
    return %c0_i32, %c0_i32_0 : i32, i32
  }
  func.func @transform_10(%arg0: i32) -> (i32, i32) {
    %c0_i32 = arith.constant 0 : i32
    %c0_i32_0 = arith.constant 0 : i32
    return %arg0, %c0_i32 : i32, i32
  }
}

</mosaic_0001>

<bundles_post_ra>
// kernel: discriminator_forward.1
= control target key start
LH: loop header
LB: loop body
LE: loop exit
PB: predicated region body
PF: predicated region fallthrough
CT: control target
= control target key end

     0   :  { %s12609_s0 = inlined_call_operand.vmem [shape: f32[4,784], index: 0, kind: input, shape index: {}]   ;;  %s12610_s1 = inlined_call_operand.vmem [shape: f32[4,2], index: 1, kind: input, shape index: {}]   ;;  %s12611_s2 = inlined_call_operand.hbm [shape: bf16[896,1024], index: 2, kind: input, shape index: {}]   ;;  %s12612_s3 = inlined_call_operand.hbm [shape: f32[1,1024], index: 3, kind: input, shape index: {}]   ;;  %s12613_s4 = inlined_call_operand.hbm [shape: bf16[1024,512], index: 4, kind: input, shape index: {}]   ;;  %s12614_s5 = inlined_call_operand.hbm [shape: f32[1,512], index: 5, kind: input, shape index: {}]   ;;  %s12615_s6 = inlined_call_operand.hbm [shape: bf16[512,128], index: 6, kind: input, shape index: {}]   ;;  %s12616_s7 = inlined_call_operand.hbm [shape: f32[1,128], index: 7, kind: input, shape index: {}]   ;;  %s12617_s8 = inlined_call_operand.hbm [shape: f32[1,128], index: 8, kind: input, shape index: {}]   ;;  %s12618_s9 = inlined_call_operand.<no memory space> [shape: f32[1,1], index: 9, kind: input, shape index: {}]   ;;  %s12619_s10 = inlined_call_operand.vmem [shape: f32[128,1], index: 10, kind: output, shape index: {}]  }
   0x1   :  { %v15_v0 = vstv %s12618_s9 }
   0x2   :  { %16 = vst [vmem:[#allocation3] sm:$0x1] %v15_v0 }
   0x3   :  { %17 = vsyncpa [#allocation5], 0 }
   0x4   :  { %18 = vsyncpa [#allocation7], 0 }
   0x5   :  { %19 = vsyncpa [#allocation10], 0 }
   0x6   :  { %20 = vsyncpa [#allocation13], 0  ;;  %s11163_s15 = smov [#allocation6]   ;;  %s11164_s17 = smov [#allocation9]  }
   0x7   :  { %s43_s16 = sshll.u32 %s11163_s15, 4  ;;  %s65_s18 = sshll.u32 %s11164_s17, 4  ;;  %s44_s16 = int_to_ptr.vmem [resolvable:$true] %s43_s16  ;;  %s66_s18 = int_to_ptr.vmem [resolvable:$true] %s65_s18 }
   0x8   :  { %s11001_s21 = scalar_lea.hbm %s12612_s3, 128 }
   0x9   :  { %p11002_p0 = scmp.ne.s32.totalorder %s12612_s3, %s11001_s21  ;;  %p11005_p1 = scmp.lt.u32.totalorder %s11001_s21, %s12612_s3 }
   0xb   :  { %p11007_p2 = pnand %p11005_p1, %p11002_p0 }
   0xd   :  { %11010 = shalt.err (!%p11007_p2)
}
   0xe   :  { %s11011_s25 = scalar_lea.vmem %s44_s16, 128  ;;  %p11016_p4 = scmp.lt.s32.totalorder %s44_s16, %s44_s16 }
   0xf   :  { %p11012_p3 = scmp.ne.s32.totalorder %s44_s16, %s11011_s25  ;;  %p11017_p5 = scmp.lt.s32.totalorder %s11011_s25, %s11011_s25 }
  0x11   :  { %p11018_p6 = por %p11017_p5, %p11016_p4 }
  0x13   :  { %p11019_p7 = pnand %p11018_p6, %p11012_p3 }
  0x15   :  { %11022 = shalt.err (!%p11019_p7)
}
  0x16   :  { %46 = dma.hbm_to_vmem [thread:$0]  %s12612_s3, 128, %s44_s16, [#allocation7]  }
  0x17   :  { %s11023_s30 = scalar_lea.hbm %s12614_s5, 64 }
  0x18   :  { %p11024_p8 = scmp.ne.s32.totalorder %s12614_s5, %s11023_s30  ;;  %p11027_p9 = scmp.lt.u32.totalorder %s11023_s30, %s12614_s5 }
  0x1a   :  { %p11029_p10 = pnand %p11027_p9, %p11024_p8 }
  0x1c   :  { %11032 = shalt.err (!%p11029_p10)
}
  0x1d   :  { %s11033_s15 = scalar_lea.vmem %s66_s18, 64  ;;  %p11038_p12 = scmp.lt.s32.totalorder %s66_s18, %s66_s18 }
  0x1e   :  { %p11034_p11 = scmp.ne.s32.totalorder %s66_s18, %s11033_s15  ;;  %p11039_p13 = scmp.lt.s32.totalorder %s11033_s15, %s11033_s15 }
  0x20   :  { %p11040_p0 = por %p11039_p13, %p11038_p12 }
  0x22   :  { %p11041_p1 = pnand %p11040_p0, %p11034_p11 }
  0x24   :  { %11044 = shalt.err (!%p11041_p1)
}
  0x25   :  { %68 = dma.hbm_to_vmem [thread:$0]  %s12614_s5, 64, %s66_s18, [#allocation10]  }
  0x26   :  { %s11165_s17 = smov [#allocation12]   ;;  %s11166_s20 = smov [#allocation4]  }
  0x27   :  { %s87_s19 = sshll.u32 %s11165_s17, 4  ;;  %s30_s21 = sshll.u32 %s11166_s20, 4  ;;  %s88_s19 = int_to_ptr.vmem [resolvable:$true] %s87_s19  ;;  %s11259_s21 = int_to_ptr.vmem [resolvable:$true] %s30_s21 }
  0x28   :  { %s11045_s9 = scalar_lea.hbm %s12616_s7, 16 }
  0x29   :  { %p11046_p2 = scmp.ne.s32.totalorder %s12616_s7, %s11045_s9  ;;  %p11049_p3 = scmp.lt.u32.totalorder %s11045_s9, %s12616_s7 }
  0x2b   :  { %p11051_p4 = pnand %p11049_p3, %p11046_p2 }
  0x2d   :  { %11054 = shalt.err (!%p11051_p4)
}
  0x2e   :  { %s11055_s5 = scalar_lea.vmem %s88_s19, 16  ;;  %s11059_s18 = scalar_lea.vmem %s88_s19, 32 }
  0x2f   :  { %p11056_p5 = scmp.ne.s32.totalorder %s88_s19, %s11055_s5  ;;  %p11060_p6 = scmp.lt.s32.totalorder %s88_s19, %s88_s19 }
  0x30   :  { %p11061_p7 = scmp.lt.s32.totalorder %s11059_s18, %s11055_s5 }
  0x32   :  { %p11062_p8 = por %p11061_p7, %p11060_p6 }
  0x34   :  { %p11063_p9 = pnand %p11062_p8, %p11056_p5 }
  0x36   :  { %11066 = shalt.err (!%p11063_p9)
}
  0x37   :  { %90 = dma.hbm_to_vmem [thread:$0]  %s12616_s7, 16, %s88_s19, [#allocation13]  }
  0x38   :  { %s11067_s12 = scalar_lea.hbm %s12611_s2, 57344 }
  0x39   :  { %p11068_p10 = scmp.ne.s32.totalorder %s12611_s2, %s11067_s12  ;;  %p11071_p11 = scmp.lt.u32.totalorder %s11067_s12, %s12611_s2 }
  0x3b   :  { %p11073_p12 = pnand %p11071_p11, %p11068_p10 }
  0x3d   :  { %11076 = shalt.err (!%p11073_p12)
}
  0x3e   :  { %s11077_s16 = scalar_lea.vmem %s11259_s21, 57344  ;;  %p11082_p0 = scmp.lt.s32.totalorder %s11259_s21, %s11259_s21 }
  0x3f   :  { %p11078_p13 = scmp.ne.s32.totalorder %s11259_s21, %s11077_s16  ;;  %p11083_p1 = scmp.lt.s32.totalorder %s11077_s16, %s11077_s16 }
  0x41   :  { %p11084_p2 = por %p11083_p1, %p11082_p0 }
  0x43   :  { %p11085_p3 = pnand %p11084_p2, %p11078_p13 }
  0x45   :  { %11088 = shalt.err (!%p11085_p3)
}
  0x46   :  { %s11167_s7 = smov 512   ;;  %s11168_s17 = smov 32  }
  0x47   :  { %36 = dma.hbm_to_vmem [thread:$0]  %s12611_s2, 57344, %s11259_s21, [#allocation5], %s11167_s7, %s11167_s7, %s11168_s17  }
  0x48   :  { %s11169_s22 = smov [#allocation8]   ;;  %s11089_s25 = scalar_lea.hbm %s12613_s4, 32768 }
  0x49   :  { %s52_s23 = sshll.u32 %s11169_s22, 4  ;;  %p11090_p4 = scmp.ne.s32.totalorder %s12613_s4, %s11089_s25  ;;  %s53_s23 = int_to_ptr.vmem [resolvable:$true] %s52_s23 }
  0x4a   :  { %p11093_p5 = scmp.lt.u32.totalorder %s11089_s25, %s12613_s4 }
  0x4c   :  { %p11095_p6 = pnand %p11093_p5, %p11090_p4 }
  0x4e   :  { %11098 = shalt.err (!%p11095_p6)
}
  0x4f   :  { %s11099_s28 = scalar_lea.vmem %s53_s23, 32768  ;;  %p11104_p8 = scmp.lt.s32.totalorder %s53_s23, %s53_s23 }
  0x50   :  { %p11100_p7 = scmp.ne.s32.totalorder %s53_s23, %s11099_s28  ;;  %p11105_p9 = scmp.lt.s32.totalorder %s11099_s28, %s11099_s28 }
  0x52   :  { %p11106_p10 = por %p11105_p9, %p11104_p8 }
  0x54   :  { %p11107_p11 = pnand %p11106_p10, %p11100_p7 }
  0x56   :  { %11110 = shalt.err (!%p11107_p11)
}
  0x57   :  { %s11170_s2 = smov 256   ;;  %s11171_s21 = smov 16  }
  0x58   :  { %58 = dma.hbm_to_vmem [thread:$0]  %s12613_s4, 32768, %s53_s23, [#allocation7], %s11170_s2, %s11170_s2, %s11171_s21  }
  0x59   :  { %s11172_s11 = smov [#allocation11]   ;;  %s11111_s15 = scalar_lea.hbm %s12615_s6, 4096 }
  0x5a   :  { %s74_s12 = sshll.u32 %s11172_s11, 4  ;;  %p11112_p12 = scmp.ne.s32.totalorder %s12615_s6, %s11111_s15  ;;  %s75_s12 = int_to_ptr.vmem [resolvable:$true] %s74_s12 }
  0x5b   :  { %p11115_p13 = scmp.lt.u32.totalorder %s11111_s15, %s12615_s6 }
  0x5d   :  { %p11117_p0 = pnand %p11115_p13, %p11112_p12 }
  0x5f   :  { %11120 = shalt.err (!%p11117_p0)
}
  0x60   :  { %s11121_s19 = scalar_lea.vmem %s75_s12, 4096  ;;  %p11126_p2 = scmp.lt.s32.totalorder %s75_s12, %s75_s12 }
  0x61   :  { %p11122_p1 = scmp.ne.s32.totalorder %s75_s12, %s11121_s19  ;;  %p11127_p3 = scmp.lt.s32.totalorder %s11121_s19, %s11121_s19 }
  0x63   :  { %p11128_p4 = por %p11127_p3, %p11126_p2 }
  0x65   :  { %p11129_p5 = pnand %p11128_p4, %p11122_p1 }
  0x67   :  { %11132 = shalt.err (!%p11129_p5)
}
  0x68   :  { %s11173_s4 = smov 64   ;;  %s11174_s20 = smov 4  }
  0x69   :  { %80 = dma.hbm_to_vmem [thread:$0]  %s12615_s6, 4096, %s75_s12, [#allocation10], %s11173_s4, %s11173_s4, %s11174_s20  }
  0x6a   :  { %s11175_s9 = smov [#allocation14]   ;;  %s11133_s27 = scalar_lea.hbm %s12617_s8, 16 }
  0x6b   :  { %s97_s24 = sshll.u32 %s11175_s9, 4  ;;  %p11134_p6 = scmp.ne.s32.totalorder %s12617_s8, %s11133_s27  ;;  %s98_s24 = int_to_ptr.vmem [resolvable:$true] %s97_s24 }
  0x6c   :  { %p11137_p7 = scmp.lt.u32.totalorder %s11133_s27, %s12617_s8 }
  0x6e   :  { %p11139_p8 = pnand %p11137_p7, %p11134_p6 }
  0x70   :  { %11142 = shalt.err (!%p11139_p8)
}
  0x71   :  { %s11143_s29 = scalar_lea.vmem %s98_s24, 16  ;;  %s11147_s6 = scalar_lea.vmem %s98_s24, 32 }
  0x72   :  { %p11144_p9 = scmp.ne.s32.totalorder %s98_s24, %s11143_s29  ;;  %p11148_p10 = scmp.lt.s32.totalorder %s98_s24, %s98_s24 }
  0x73   :  { %p11149_p11 = scmp.lt.s32.totalorder %s11147_s6, %s11143_s29 }
  0x75   :  { %p11150_p12 = por %p11149_p11, %p11148_p10 }
  0x77   :  { %p11151_p13 = pnand %p11150_p12, %p11144_p9 }
  0x79   :  { %11154 = shalt.err (!%p11151_p13)
}
  0x7a   :  { %100 = dma.hbm_to_vmem [thread:$0]  %s12617_s8, 16, %s98_s24, [#allocation13]  }
  0x7b   :  { %11155 = dma.done.wait [#allocation5], 57344  }
  0x7c   :  { %11156 = vsyncadd [#allocation5], 4294909952 }
  0x7d   :  { %11157 = dma.done.wait [#allocation7], 32896  }
  0x7e   :  { %11158 = vsyncadd [#allocation7], 4294934400 }
  0x7f   :  { %11159 = dma.done.wait [#allocation10], 4160  }
  0x80   :  { %11160 = vsyncadd [#allocation10], 4294963136 }
  0x81   :  { %11161 = dma.done.wait [#allocation13], 32  }
  0x82   :  { %11162 = vsyncadd [#allocation13], 4294967264  ;;  %v848_v1 = vld [vmem:[#allocation4] sm:$0xff]  ;;  %v849_v3 = vld [vmem:[#allocation4 + $0x8] sm:$0xff]  ;;  %vm667_vm0 = vcmask 130048   ;;  %vm774_vm1 = vcmask 146560  }
  0x83   :  { %v852_v2 = vld [vmem:[#allocation4 + $0x20] sm:$0xff]  ;;  %v853_v5 = vld [vmem:[#allocation4 + $0x28] sm:$0xff]  ;;  %v10363_v60 = vld [vmem:[%s12609_s0 + $0x3c] ss:$28 sps:$4 sm:$0xff]   ;;  %vm783_vm2 = vcmask 1047696   ;;  %vm8687_vm3 = vcmask 7168  }
  0x84   :  { %v8713_v4 = vcombine.high %v848_v1, %v852_v2  ;;  %v8712_v6 = vcombine.low %v848_v1, %v852_v2  ;;  %v856_v7 = vld [vmem:[#allocation4 + $0x40] sm:$0xff]  ;;  %v8715_v9 = vcombine.high %v849_v3, %v853_v5  ;;  %v8714_v10 = vcombine.low %v849_v3, %v853_v5  ;;  %v857_v12 = vld [vmem:[#allocation4 + $0x48] sm:$0xff]  ;;  %v10366_v62 = vld [vmem:[%s12609_s0 + $0x38] ss:$28 sps:$4 sm:$0xff]  }
  0x85   :  { %v860_v8 = vld [vmem:[#allocation4 + $0x60] sm:$0xff]  ;;  %v861_v13 = vld [vmem:[#allocation4 + $0x68] sm:$0xff] }
  0x86   :  { %v8721_v11 = vcombine.high %v856_v7, %v860_v8  ;;  %v864_v14 = vld [vmem:[#allocation4 + $0x80] sm:$0xff]  ;;  %3578 = vmatprep.subr.bf16.mxu0 %v8713_v4  ;;  %v8723_v15 = vcombine.high %v857_v12, %v861_v13  ;;  %v865_v17 = vld [vmem:[#allocation4 + $0x88] sm:$0xff]  ;;  %4030 = vmatprep.subr.bf16.mxu1 %v8715_v9  ;;  %v8720_v19 = vcombine.low %v856_v7, %v860_v8 }
  0x87   :  { %v868_v16 = vld [vmem:[#allocation4 + $0xa0] sm:$0xff]  ;;  %v869_v18 = vld [vmem:[#allocation4 + $0xa8] sm:$0xff]  ;;  %3579 = vmatpush1.bf16.msra.mxu0 %v8712_v6  ;;  %4031 = vmatpush1.bf16.msra.mxu1 %v8714_v10  ;;  %v8722_v20 = vcombine.low %v857_v12, %v861_v13 }
  0x88   :  { %3580 = vmatprep.subr.bf16.mxu0 %v8721_v11  ;;  %v8729_v21 = vcombine.high %v864_v14, %v868_v16  ;;  %4032 = vmatprep.subr.bf16.mxu1 %v8723_v15  ;;  %v8731_v22 = vcombine.high %v865_v17, %v869_v18  ;;  %v872_v23 = vld [vmem:[#allocation4 + $0xc0] sm:$0xff]  ;;  %v873_v25 = vld [vmem:[#allocation4 + $0xc8] sm:$0xff]  ;;  %v8728_v27 = vcombine.low %v864_v14, %v868_v16 }
  0x89   :  { %v876_v24 = vld [vmem:[#allocation4 + $0xe0] sm:$0xff]  ;;  %v877_v26 = vld [vmem:[#allocation4 + $0xe8] sm:$0xff]  ;;  %v8730_v28 = vcombine.low %v865_v17, %v869_v18 }
  0x8a   :  { %v8737_v29 = vcombine.high %v872_v23, %v876_v24  ;;  %v8739_v30 = vcombine.high %v873_v25, %v877_v26  ;;  %v880_v31 = vld [vmem:[#allocation4 + $0x100] sm:$0xff]  ;;  %v881_v33 = vld [vmem:[#allocation4 + $0x108] sm:$0xff]  ;;  %v8736_v35 = vcombine.low %v872_v23, %v876_v24  ;;  %v8738_v36 = vcombine.low %v873_v25, %v877_v26 }
  0x8b   :  { %3581 = vmatpush1.bf16.msra.mxu0 %v8720_v19  ;;  %4033 = vmatpush1.bf16.msra.mxu1 %v8722_v20  ;;  %v884_v32 = vld [vmem:[#allocation4 + $0x120] sm:$0xff]  ;;  %v885_v34 = vld [vmem:[#allocation4 + $0x128] sm:$0xff] }
  0x8c   :  { %3582 = vmatprep.subr.bf16.mxu0 %v8729_v21  ;;  %4034 = vmatprep.subr.bf16.mxu1 %v8731_v22  ;;  %v8745_v37 = vcombine.high %v880_v31, %v884_v32  ;;  %v8747_v38 = vcombine.high %v881_v33, %v885_v34  ;;  %v888_v39 = vld [vmem:[#allocation4 + $0x140] sm:$0xff]  ;;  %v889_v41 = vld [vmem:[#allocation4 + $0x148] sm:$0xff]  ;;  %v8744_v43 = vcombine.low %v880_v31, %v884_v32  ;;  %v10378_v32 = vld [vmem:[%s12609_s0 + $0x118] ss:$28 sps:$4 sm:$0xff]  }
  0x8d   :  { %v892_v40 = vld [vmem:[#allocation4 + $0x160] sm:$0xff]  ;;  %v893_v42 = vld [vmem:[#allocation4 + $0x168] sm:$0xff]  ;;  %v8746_v44 = vcombine.low %v881_v33, %v885_v34 }
  0x8e   :  { %v8753_v45 = vcombine.high %v888_v39, %v892_v40  ;;  %v8755_v46 = vcombine.high %v889_v41, %v893_v42  ;;  %v896_v47 = vld [vmem:[#allocation4 + $0x180] sm:$0xff]  ;;  %v897_v49 = vld [vmem:[#allocation4 + $0x188] sm:$0xff]  ;;  %v8752_v51 = vcombine.low %v888_v39, %v892_v40  ;;  %v8754_v54 = vcombine.low %v889_v41, %v893_v42 }
  0x8f   :  { %3583 = vmatpush1.bf16.msra.mxu0 %v8728_v27  ;;  %4035 = vmatpush1.bf16.msra.mxu1 %v8730_v28  ;;  %v900_v48 = vld [vmem:[#allocation4 + $0x1a0] sm:$0xff]  ;;  %v901_v50 = vld [vmem:[#allocation4 + $0x1a8] sm:$0xff]  ;;  %v10375_v28 = vld [vmem:[%s12609_s0 + $0x11c] ss:$28 sps:$4 sm:$0xff]  }
  0x90   :  { %3584 = vmatprep.subr.bf16.mxu0 %v8737_v29  ;;  %4036 = vmatprep.subr.bf16.mxu1 %v8739_v30  ;;  %v904_v52 = vld [vmem:[#allocation4 + $0x1c0] sm:$0xff]  ;;  %v8761_v55 = vcombine.high %v896_v47, %v900_v48  ;;  %v905_v56 = vld [vmem:[#allocation4 + $0x1c8] sm:$0xff]  ;;  %v8763_v58 = vcombine.high %v897_v49, %v901_v50  ;;  %v8760_v63 = vcombine.low %v896_v47, %v900_v48 }
  0x91   :  { %v908_v53 = vld [vmem:[#allocation4 + $0x1e0] sm:$0xff]  ;;  %v909_v57 = vld [vmem:[#allocation4 + $0x1e8] sm:$0xff]  ;;  %v8762_v0 = vcombine.low %v897_v49, %v901_v50 }
  0x92   :  { %v10361_v59 = vld [vmem:[%s12609_s0 + $0x4] ss:$28 sps:$4 sm:$0xff]   ;;  %v8769_v1 = vcombine.high %v904_v52, %v908_v53  ;;  %v8771_v6 = vcombine.high %v905_v56, %v909_v57  ;;  %v913_v7 = vld [vmem:[#allocation4 + $0x208] sm:$0xff]  ;;  %v8768_v9 = vcombine.low %v904_v52, %v908_v53  ;;  %v8770_v13 = vcombine.low %v905_v56, %v909_v57 }
  0x93   :  { %3585 = vmatpush1.bf16.msra.mxu0 %v8736_v35  ;;  %4037 = vmatpush1.bf16.msra.mxu1 %v8738_v36  ;;  %v10365_v61 = vld [vmem:[%s12609_s0] ss:$28 sps:$4 sm:$0xff]   ;;  %v606_v4 = vpack.c.bf16 %v10363_v60, %v10361_v59  ;;  %v917_v8 = vld [vmem:[#allocation4 + $0x228] sm:$0xff] }
  0x94   :  { %3586 = vmatprep.subr.bf16.mxu0 %v8745_v37  ;;  %4038 = vmatprep.subr.bf16.mxu1 %v8747_v38  ;;  %v912_v2 = vld [vmem:[#allocation4 + $0x200] sm:$0xff]  ;;  %v11339_v5 = vpack.c.bf16 %v10366_v62, %v10365_v61  ;;  %v10367_v10 = vld [vmem:[%s12609_s0 + $0x74] ss:$28 sps:$4 sm:$0xff]   ;;  %v8779_v16 = vcombine.high %v913_v7, %v917_v8  ;;  %v8778_v25 = vcombine.low %v913_v7, %v917_v8  ;;  %v10387_v61 = vld [vmem:[%s12609_s0 + $0x1fc] ss:$28 sps:$4 sm:$0xff]  }
  0x95   :  { %v916_v3 = vld [vmem:[#allocation4 + $0x220] sm:$0xff]  ;;  %662 = vst [vmem:[#allocation2 + $0x8] sm:$0xff] %v606_v4  ;;  %3610 = vmatprep.mubr.bf16.mxu0 %v606_v4  ;;  %4062 = vmatprep.mubr.bf16.mxu1 %v606_v4  ;;  %v10371_v12 = vld [vmem:[%s12609_s0 + $0x70] ss:$28 sps:$4 sm:$0xff]  }
  0x96   :  { %661 = vst [vmem:[#allocation2] sm:$0xff] %v11339_v5  ;;  %v10369_v11 = vld [vmem:[%s12609_s0 + $0xac] ss:$28 sps:$4 sm:$0xff]   ;;  %v8777_v14 = vcombine.high %v912_v2, %v916_v3  ;;  %v8776_v23 = vcombine.low %v912_v2, %v916_v3  ;;  %v10373_v27 = vld [vmem:[%s12609_s0 + $0xe4] ss:$28 sps:$4 sm:$0xff]  }
  0x97   :  { %3587 = vmatpush1.bf16.msra.mxu0 %v8744_v43  ;;  %4039 = vmatpush1.bf16.msra.mxu1 %v8746_v44  ;;  %v10372_v15 = vld [vmem:[%s12609_s0 + $0xa8] ss:$28 sps:$4 sm:$0xff]   ;;  %v11354_v19 = vpack.c.bf16 %v10369_v11, %v10367_v10  ;;  %v10377_v31 = vld [vmem:[%s12609_s0 + $0xe0] ss:$28 sps:$4 sm:$0xff]   ;;  %v11372_v35 = vpack.c.bf16 %v10375_v28, %v10373_v27  ;;  %v10383_v47 = vld [vmem:[%s12609_s0 + $0x150] ss:$28 sps:$4 sm:$0xff]  }
  0x98   :  { %3588 = vmatprep.subr.bf16.mxu0 %v8753_v45  ;;  %4040 = vmatprep.subr.bf16.mxu1 %v8755_v46  ;;  %v920_v17 = vld [vmem:[#allocation4 + $0x240] sm:$0xff]  ;;  %v921_v20 = vld [vmem:[#allocation4 + $0x248] sm:$0xff]  ;;  %v11356_v22 = vpack.c.bf16 %v10372_v15, %v10371_v12  ;;  %v11374_v39 = vpack.c.bf16 %v10378_v32, %v10377_v31 }
  0x99   :  { %v924_v18 = vld [vmem:[#allocation4 + $0x260] sm:$0xff]  ;;  %v925_v21 = vld [vmem:[#allocation4 + $0x268] sm:$0xff]  ;;  %670 = vst [vmem:[#allocation2 + $0x40] sm:$0xff] %v11354_v19  ;;  %677 = vst [vmem:[#allocation2 + $0x78] sm:$0xff] %v11372_v35 }
  0x9a   :  { %v928_v24 = vld [vmem:[#allocation4 + $0x280] sm:$0xff]  ;;  %v8785_v26 = vcombine.high %v920_v17, %v924_v18  ;;  %669 = vst [vmem:[#allocation2 + $0x38] sm:$0xff] %v11356_v22  ;;  %v8787_v29 = vcombine.high %v921_v20, %v925_v21  ;;  %v929_v33 = vld [vmem:[#allocation4 + $0x288] sm:$0xff]  ;;  %v8784_v36 = vcombine.low %v920_v17, %v924_v18  ;;  %v8786_v40 = vcombine.low %v921_v20, %v925_v21 }
  0x9b   :  { %3589 = vmatpush1.bf16.msra.mxu0 %v8752_v51  ;;  %4041 = vmatpush1.bf16.msra.mxu1 %v8754_v54  ;;  %v932_v30 = vld [vmem:[#allocation4 + $0x2a0] sm:$0xff]  ;;  %v933_v34 = vld [vmem:[#allocation4 + $0x2a8] sm:$0xff]  ;;  %676 = vst [vmem:[#allocation2 + $0x70] sm:$0xff] %v11374_v39 }
  0x9c   :  { %3590 = vmatprep.subr.bf16.mxu0 %v8761_v55  ;;  %4042 = vmatprep.subr.bf16.mxu1 %v8763_v58  ;;  %v936_v37 = vld [vmem:[#allocation4 + $0x2c0] sm:$0xff]  ;;  %v8793_v41 = vcombine.high %v928_v24, %v932_v30  ;;  %v937_v42 = vld [vmem:[#allocation4 + $0x2c8] sm:$0xff]  ;;  %v8795_v44 = vcombine.high %v929_v33, %v933_v34  ;;  %v8792_v49 = vcombine.low %v928_v24, %v932_v30 }
  0x9d   :  { %v940_v38 = vld [vmem:[#allocation4 + $0x2e0] sm:$0xff]  ;;  %v941_v43 = vld [vmem:[#allocation4 + $0x2e8] sm:$0xff]  ;;  %v8794_v50 = vcombine.low %v929_v33, %v933_v34 }
  0x9e   :  { %v10379_v45 = vld [vmem:[%s12609_s0 + $0x154] ss:$28 sps:$4 sm:$0xff]   ;;  %v10381_v46 = vld [vmem:[%s12609_s0 + $0x18c] ss:$28 sps:$4 sm:$0xff]   ;;  %v8801_v51 = vcombine.high %v936_v37, %v940_v38  ;;  %v8803_v56 = vcombine.high %v937_v42, %v941_v43  ;;  %v8800_v59 = vcombine.low %v936_v37, %v940_v38  ;;  %v10385_v60 = vld [vmem:[%s12609_s0 + $0x1c4] ss:$28 sps:$4 sm:$0xff]  }
  0x9f   :  { %3591 = vmatpush1.bf16.msra.mxu0 %v8760_v63  ;;  %4043 = vmatpush1.bf16.msra.mxu1 %v8762_v0  ;;  %v10384_v48 = vld [vmem:[%s12609_s0 + $0x188] ss:$28 sps:$4 sm:$0xff]   ;;  %v11390_v54 = vpack.c.bf16 %v10381_v46, %v10379_v45  ;;  %v10389_v62 = vld [vmem:[%s12609_s0 + $0x1c0] ss:$28 sps:$4 sm:$0xff]   ;;  %v8802_v63 = vcombine.low %v937_v42, %v941_v43  ;;  %v10395_v18 = vld [vmem:[%s12609_s0 + $0x230] ss:$28 sps:$4 sm:$0xff]  }
  0xa0   :  { %3592 = vmatprep.subr.bf16.mxu0 %v8769_v1  ;;  %4044 = vmatprep.subr.bf16.mxu1 %v8771_v6  ;;  %v944_v52 = vld [vmem:[#allocation4 + $0x300] sm:$0xff]  ;;  %v11392_v55 = vpack.c.bf16 %v10384_v48, %v10383_v47  ;;  %v945_v57 = vld [vmem:[#allocation4 + $0x308] sm:$0xff]  ;;  %v10390_v1 = vld [vmem:[%s12609_s0 + $0x1f8] ss:$28 sps:$4 sm:$0xff]   ;;  %v11408_v6 = vpack.c.bf16 %v10387_v61, %v10385_v60 }
  0xa1   :  { %v948_v53 = vld [vmem:[#allocation4 + $0x320] sm:$0xff]  ;;  %v949_v58 = vld [vmem:[#allocation4 + $0x328] sm:$0xff]  ;;  %684 = vst [vmem:[#allocation2 + $0xb0] sm:$0xff] %v11390_v54  ;;  %v10402_v38 = vld [vmem:[%s12609_s0 + $0x2d8] ss:$28 sps:$4 sm:$0xff]  }
  0xa2   :  { %683 = vst [vmem:[#allocation2 + $0xa8] sm:$0xff] %v11392_v55  ;;  %v8809_v0 = vcombine.high %v944_v52, %v948_v53  ;;  %v8811_v2 = vcombine.high %v945_v57, %v949_v58  ;;  %v952_v3 = vld [vmem:[#allocation4 + $0x340] sm:$0xff]  ;;  %v953_v7 = vld [vmem:[#allocation4 + $0x348] sm:$0xff]  ;;  %v8808_v10 = vcombine.low %v944_v52, %v948_v53  ;;  %691 = vst [vmem:[#allocation2 + $0xe8] sm:$0xff] %v11408_v6 }
  0xa3   :  { %3593 = vmatpush1.bf16.msra.mxu0 %v8768_v9  ;;  %4045 = vmatpush1.bf16.msra.mxu1 %v8770_v13  ;;  %v956_v4 = vld [vmem:[#allocation4 + $0x360] sm:$0xff]  ;;  %v957_v8 = vld [vmem:[#allocation4 + $0x368] sm:$0xff]  ;;  %v11410_v9 = vpack.c.bf16 %v10390_v1, %v10389_v62  ;;  %v8810_v12 = vcombine.low %v945_v57, %v949_v58 }
  0xa4   :  { %3594 = vmatprep.subr.bf16.mxu0 %v8777_v14  ;;  %4046 = vmatprep.subr.bf16.mxu1 %v8779_v16  ;;  %v960_v11 = vld [vmem:[#allocation4 + $0x380] sm:$0xff]  ;;  %v8817_v13 = vcombine.high %v952_v3, %v956_v4  ;;  %v10391_v14 = vld [vmem:[%s12609_s0 + $0x234] ss:$28 sps:$4 sm:$0xff]   ;;  %v8819_v16 = vcombine.high %v953_v7, %v957_v8 }
  0xa5   :  { %690 = vst [vmem:[#allocation2 + $0xe0] sm:$0xff] %v11410_v9  ;;  %v10393_v15 = vld [vmem:[%s12609_s0 + $0x26c] ss:$28 sps:$4 sm:$0xff]   ;;  %v10397_v34 = vld [vmem:[%s12609_s0 + $0x2a4] ss:$28 sps:$4 sm:$0xff]  }
  0xa6   :  { %v964_v17 = vld [vmem:[#allocation4 + $0x3a0] sm:$0xff]  ;;  %v961_v21 = vld [vmem:[#allocation4 + $0x388] sm:$0xff]  ;;  %v11426_v24 = vpack.c.bf16 %v10393_v15, %v10391_v14 }
  0xa7   :  { %3595 = vmatpush1.bf16.msra.mxu0 %v8776_v23  ;;  %4047 = vmatpush1.bf16.msra.mxu1 %v8778_v25  ;;  %v10396_v20 = vld [vmem:[%s12609_s0 + $0x268] ss:$28 sps:$4 sm:$0xff]   ;;  %v8816_v25 = vcombine.low %v952_v3, %v956_v4  ;;  %v8825_v30 = vcombine.high %v960_v11, %v964_v17  ;;  %v10401_v37 = vld [vmem:[%s12609_s0 + $0x2a0] ss:$28 sps:$4 sm:$0xff]   ;;  %v10407_v53 = vld [vmem:[%s12609_s0 + $0x310] ss:$28 sps:$4 sm:$0xff]  }
  0xa8   :  { %3596 = vmatprep.subr.bf16.mxu0 %v8785_v26  ;;  %4048 = vmatprep.subr.bf16.mxu1 %v8787_v29  ;;  %v965_v23 = vld [vmem:[#allocation4 + $0x3a8] sm:$0xff]  ;;  %v968_v26 = vld [vmem:[#allocation4 + $0x3c0] sm:$0xff]  ;;  %v11428_v28 = vpack.c.bf16 %v10396_v20, %v10395_v18  ;;  %v8818_v29 = vcombine.low %v953_v7, %v957_v8  ;;  %698 = vst [vmem:[#allocation2 + $0x120] sm:$0xff] %v11426_v24 }
  0xa9   :  { %v972_v27 = vld [vmem:[#allocation4 + $0x3e0] sm:$0xff]  ;;  %v969_v31 = vld [vmem:[#allocation4 + $0x3c8] sm:$0xff]  ;;  %v8827_v33 = vcombine.high %v961_v21, %v965_v23  ;;  %v11446_v46 = vpack.c.bf16 %v10402_v38, %v10401_v37  ;;  %v10419_v37 = vld [vmem:[%s12609_s0 + $0x78] ss:$28 sps:$4 sm:$0xff]  }
  0xaa   :  { %v973_v32 = vld [vmem:[#allocation4 + $0x3e8] sm:$0xff]  ;;  %697 = vst [vmem:[#allocation2 + $0x118] sm:$0xff] %v11428_v28  ;;  %v8833_v42 = vcombine.high %v968_v26, %v972_v27  ;;  %v976_v43 = vld [vmem:[#allocation4 + $0x400] sm:$0xff] }
  0xab   :  { %3597 = vmatpush1.bf16.msra.mxu0 %v8784_v36  ;;  %4049 = vmatpush1.bf16.msra.mxu1 %v8786_v40  ;;  %v10399_v36 = vld [vmem:[%s12609_s0 + $0x2dc] ss:$28 sps:$4 sm:$0xff]   ;;  %v8824_v40 = vcombine.low %v960_v11, %v964_v17  ;;  %v8835_v47 = vcombine.high %v969_v31, %v973_v32  ;;  %v977_v48 = vld [vmem:[#allocation4 + $0x408] sm:$0xff]  ;;  %704 = vst [vmem:[#allocation2 + $0x150] sm:$0xff] %v11446_v46  ;;  %v984_v60 = vld [vmem:[#allocation4 + $0x440] sm:$0xff] }
  0xac   :  { %3598 = vmatprep.subr.bf16.mxu0 %v8793_v41  ;;  %4050 = vmatprep.subr.bf16.mxu1 %v8795_v44  ;;  %v8826_v41 = vcombine.low %v961_v21, %v965_v23  ;;  %v980_v44 = vld [vmem:[#allocation4 + $0x420] sm:$0xff]  ;;  %v11444_v45 = vpack.c.bf16 %v10399_v36, %v10397_v34  ;;  %v993_v15 = vld [vmem:[#allocation4 + $0x488] sm:$0xff] }
  0xad   :  { %v10405_v52 = vld [vmem:[%s12609_s0 + $0x34c] ss:$28 sps:$4 sm:$0xff]   ;;  %v8841_v57 = vcombine.high %v976_v43, %v980_v44  ;;  %v10414_v14 = vld [vmem:[%s12609_s0 + $0x44] ss:$28 sps:$4 sm:$0xff]   ;;  %v10417_v34 = vld [vmem:[%s12609_s0 + $0xb4] ss:$28 sps:$4 sm:$0xff]  }
  0xae   :  { %705 = vst [vmem:[#allocation2 + $0x158] sm:$0xff] %v11444_v45  ;;  %v10408_v58 = vld [vmem:[%s12609_s0 + $0x348] ss:$28 sps:$4 sm:$0xff]  }
  0xaf   :  { %3599 = vmatpush1.bf16.msra.mxu0 %v8792_v49  ;;  %4051 = vmatpush1.bf16.msra.mxu1 %v8794_v50  ;;  %v981_v49 = vld [vmem:[#allocation4 + $0x428] sm:$0xff]  ;;  %v8832_v50 = vcombine.low %v968_v26, %v972_v27  ;;  %v988_v61 = vld [vmem:[#allocation4 + $0x460] sm:$0xff]  ;;  %v11464_v1 = vpack.c.bf16 %v10408_v58, %v10407_v53 }
  0xb0   :  { %3600 = vmatprep.subr.bf16.mxu0 %v8801_v51  ;;  %4052 = vmatprep.subr.bf16.mxu1 %v8803_v56  ;;  %v10403_v51 = vld [vmem:[%s12609_s0 + $0x314] ss:$28 sps:$4 sm:$0xff]   ;;  %v8834_v56 = vcombine.low %v969_v31, %v973_v32  ;;  %v11466_v3 = vld [vmem:[#allocation4 + $0x480] sm:$0xff]  ;;  %v8842_v4 = vcombine.low %v977_v48, %v981_v49  ;;  %v8849_v7 = vcombine.high %v984_v60, %v988_v61 }
  0xb1   :  { %v11462_v62 = vpack.c.bf16 %v10405_v52, %v10403_v51  ;;  %711 = vst [vmem:[#allocation2 + $0x188] sm:$0xff] %v11464_v1  ;;  %v10409_v8 = vld [vmem:[%s12609_s0 + $0x8] ss:$28 sps:$4 sm:$0xff]   ;;  %v8848_v17 = vcombine.low %v984_v60, %v988_v61 }
  0xb2   :  { %v11484_v18 = vld [vmem:[#allocation4 + $0x4c0] sm:$0xff]  ;;  %v1013_v51 = vld [vmem:[#allocation4 + $0x528] sm:$0xff] }
  0xb3   :  { %3601 = vmatpush1.bf16.msra.mxu0 %v8800_v59  ;;  %4053 = vmatpush1.bf16.msra.mxu1 %v8802_v63  ;;  %v8843_v59 = vcombine.high %v977_v48, %v981_v49  ;;  %v985_v63 = vld [vmem:[#allocation4 + $0x448] sm:$0xff]  ;;  %712 = vst [vmem:[#allocation2 + $0x190] sm:$0xff] %v11462_v62  ;;  %v718_v23 = vld [vmem:[%s12610_s1] sm:$0xff]  ;;  %v721_v49 = vld [vmem:[%s12610_s1 + $0x18] sm:$0xff] }
  0xb4   :  { %3602 = vmatprep.subr.bf16.mxu0 %v8809_v0  ;;  %4054 = vmatprep.subr.bf16.mxu1 %v8811_v2  ;;  %v989_v0 = vld [vmem:[#allocation4 + $0x468] sm:$0xff]  ;;  %v8840_v2 = vcombine.low %v976_v43, %v980_v44  ;;  %v1004_v27 = vld [vmem:[#allocation4 + $0x4e0] sm:$0xff] }
  0xb5   :  { %v8851_v11 = vcombine.high %v985_v63, %v989_v0  ;;  %v8850_v26 = vcombine.low %v985_v63, %v989_v0  ;;  %v1012_v44 = vld [vmem:[#allocation4 + $0x520] sm:$0xff]  ;;  %v720_v48 = vld [vmem:[%s12610_s1 + $0x10] sm:$0xff]  ;;  %v8864_v53 = vcombine.low %v11484_v18, %v1004_v27 }
  0xb6   :  { %v735_v52 = vpack.c.bf16 %v721_v49, %v720_v48  ;;  %v10423_v60 = vld [vmem:[%s12609_s0 + $0x124] ss:$28 sps:$4 sm:$0xff]  }
  0xb7   :  { %3603 = vmatpush1.bf16.msra.mxu0 %v8808_v10  ;;  %4055 = vmatpush1.bf16.msra.mxu1 %v8810_v12  ;;  %v10411_v10 = vld [vmem:[%s12609_s0 + $0xc] ss:$28 sps:$4 sm:$0xff]   ;;  %v10426_v0 = vld [vmem:[%s12609_s0 + $0x120] ss:$28 sps:$4 sm:$0xff]  }
  0xb8   :  { %3604 = vmatprep.subr.bf16.mxu0 %v8817_v13  ;;  %4056 = vmatprep.subr.bf16.mxu1 %v8819_v16  ;;  %v996_v12 = vld [vmem:[#allocation4 + $0x4a0] sm:$0xff]  ;;  %v997_v16 = vld [vmem:[#allocation4 + $0x4a8] sm:$0xff]  ;;  %v11486_v20 = vpack.c.bf16 %v10414_v14, %v10411_v10 }
  0xb9   :  { %v10412_v13 = vld [vmem:[%s12609_s0 + $0x40] ss:$28 sps:$4 sm:$0xff]   ;;  %v8859_v31 = vcombine.high %v993_v15, %v997_v16  ;;  %v8856_v36 = vcombine.low %v11466_v3, %v996_v12  ;;  %v8858_v38 = vcombine.low %v993_v15, %v997_v16  ;;  %v10425_v63 = vld [vmem:[%s12609_s0 + $0xe8] ss:$28 sps:$4 sm:$0xff]  }
  0xba   :  { %v11488_v21 = vpack.c.bf16 %v10412_v13, %v10409_v8  ;;  %664 = vst [vmem:[#allocation2 + $0x18] sm:$0xff] %v11486_v20  ;;  %v1020_v61 = vld [vmem:[#allocation4 + $0x560] sm:$0xff]  ;;  %v11552_v10 = vpack.c.bf16 %v10426_v0, %v10425_v63  ;;  %v1025_v15 = vld [vmem:[#allocation4 + $0x588] sm:$0xff] }
  0xbb   :  { %3605 = vmatpush1.bf16.msra.mxu0 %v8816_v25  ;;  %4057 = vmatpush1.bf16.msra.mxu1 %v8818_v29  ;;  %v719_v25 = vld [vmem:[%s12610_s1 + $0x8] sm:$0xff]  ;;  %v10435_v49 = vld [vmem:[%s12609_s0 + $0x204] ss:$28 sps:$4 sm:$0xff]  }
  0xbc   :  { %3606 = vmatprep.subr.bf16.mxu0 %v8825_v30  ;;  %4058 = vmatprep.subr.bf16.mxu1 %v8827_v33  ;;  %v1001_v29 = vld [vmem:[#allocation4 + $0x4c8] sm:$0xff]  ;;  %663 = vst [vmem:[#allocation2 + $0x10] sm:$0xff] %v11488_v21  ;;  %v734_v32 = vpack.c.bf16 %v719_v25, %v718_v23  ;;  %v10415_v33 = vld [vmem:[%s12609_s0 + $0x7c] ss:$28 sps:$4 sm:$0xff]   ;;  %v11550_v8 = vld [vmem:[#allocation4 + $0x580] sm:$0xff] }
  0xbd   :  { %v1005_v30 = vld [vmem:[#allocation4 + $0x4e8] sm:$0xff]  ;;  %v1028_v14 = vld [vmem:[#allocation4 + $0x5a0] sm:$0xff]  ;;  %678 = vst [vmem:[#allocation2 + $0x80] sm:$0xff] %v11552_v10  ;;  %v10427_v23 = vld [vmem:[%s12609_s0 + $0x15c] ss:$28 sps:$4 sm:$0xff]  }
  0xbe   :  { %750 = vrot.lane.b32.xlu0 %v734_v32, %s11171_s21  ;;  %v8867_v43 = vcombine.high %v1001_v29, %v1005_v30  ;;  %v1029_v16 = vld [vmem:[#allocation4 + $0x5a8] sm:$0xff] }
  0xbf   :  { %3607 = vmatpush1.bf16.msra.mxu0 %v8824_v40  ;;  %4059 = vmatpush1.bf16.msra.mxu1 %v8826_v41  ;;  %v8865_v40 = vcombine.high %v11484_v18, %v1004_v27  ;;  %v1008_v41 = vld [vmem:[#allocation4 + $0x500] sm:$0xff]  ;;  %v10429_v25 = vld [vmem:[%s12609_s0 + $0x194] ss:$28 sps:$4 sm:$0xff]  }
  0xc0   :  { %3608 = vmatprep.subr.bf16.mxu0 %v8833_v42  ;;  %4060 = vmatprep.subr.bf16.mxu1 %v8835_v47  ;;  %v11516_v42 = vpack.c.bf16 %v10417_v34, %v10415_v33  ;;  %v8873_v58 = vcombine.high %v1008_v41, %v1012_v44  ;;  %v10432_v27 = vld [vmem:[%s12609_s0 + $0x190] ss:$28 sps:$4 sm:$0xff]   ;;  %v11580_v32 = vpack.c.bf16 %v10429_v25, %v10427_v23  ;;  %v1036_v33 = vld [vmem:[#allocation4 + $0x5e0] sm:$0xff] }
  0xc1   :  { %v727_v63 = vld [vmem:[%s12610_s1 + $0x48] sm:$0xff] }
  0xc2   :  { %672 = vst [vmem:[#allocation2 + $0x50] sm:$0xff] %v11516_v42  ;;  %752 = vrot.lane.b32.xlu0 %v735_v52, %s11171_s21  ;;  %686 = vst [vmem:[#allocation2 + $0xc0] sm:$0xff] %v11580_v32  ;;  %v10437_v52 = vld [vmem:[%s12609_s0 + $0x1c8] ss:$28 sps:$4 sm:$0xff]  }
  0xc3   :  { %3609 = vmatpush1.bf16.msra.mxu0 %v8832_v50  ;;  %4061 = vmatpush1.bf16.msra.mxu1 %v8834_v56  ;;  %v1009_v50 = vld [vmem:[#allocation4 + $0x508] sm:$0xff]  ;;  %v11530_v56 = vld [vmem:[#allocation4 + $0x540] sm:$0xff] }
  0xc4   :  { %3691 = vmatprep.subr.bf16.mxu0 %v8841_v57  ;;  %4143 = vmatprep.subr.bf16.mxu1 %v8843_v59  ;;  %v8866_v57 = vcombine.low %v1001_v29, %v1005_v30  ;;  %v10421_v59 = vld [vmem:[%s12609_s0 + $0xec] ss:$28 sps:$4 sm:$0xff]   ;;  %v8881_v13 = vcombine.high %v11530_v56, %v1020_v61  ;;  %v8889_v30 = vcombine.high %v11550_v8, %v1028_v14 }
  0xc5   :  { %v1060_v25 = vld [vmem:[#allocation4 + $0x6a0] sm:$0xff] }
  0xc6   :  { %3611 = vmatmul.mubr.bf16.vlgmr.msra.gmra.mrb[0].mxu0 %v11339_v5  ;;  %4063 = vmatmul.mubr.bf16.vlgmr.msra.gmra.mrb[0].mxu1 %v11339_v5  ;;  %v8857_v5 = vcombine.high %v11466_v3, %v996_v12  ;;  %v1021_v3 = vld [vmem:[#allocation4 + $0x568] sm:$0xff]  ;;  %v8874_v12 = vcombine.low %v1009_v50, %v1013_v51 }
  0xc7   :  { %3692 = vmatpush1.bf16.msra.mxu0 %v8840_v2  ;;  %4144 = vmatpush1.bf16.msra.mxu1 %v8842_v4  ;;  %v1017_v2 = vld [vmem:[#allocation4 + $0x548] sm:$0xff]  ;;  %v11548_v4 = vpack.c.bf16 %v10423_v60, %v10421_v59  ;;  %v11614_v60 = vld [vmem:[#allocation4 + $0x640] sm:$0xff] }
  0xc8   :  { %3693 = vmatprep.subr.bf16.mxu0 %v8849_v7  ;;  %4145 = vmatprep.subr.bf16.mxu1 %v8851_v11  ;;  %v8872_v7 = vcombine.low %v1008_v41, %v1012_v44  ;;  %v722_v11 = vld [vmem:[%s12610_s1 + $0x20] sm:$0xff]  ;;  %v8883_v18 = vcombine.high %v1017_v2, %v1021_v3  ;;  %v8882_v29 = vcombine.low %v1017_v2, %v1021_v3  ;;  %v1049_v3 = vld [vmem:[#allocation4 + $0x648] sm:$0xff] }
  0xc9   :  { %3620 = vmatprep.mubr.bf16.mxu0 %v11354_v19  ;;  %4072 = vmatprep.mubr.bf16.mxu1 %v11354_v19  ;;  %v10420_v19 = vld [vmem:[%s12609_s0 + $0xb0] ss:$28 sps:$4 sm:$0xff]   ;;  %679 = vst [vmem:[#allocation2 + $0x88] sm:$0xff] %v11548_v4  ;;  %v8888_v41 = vcombine.low %v11550_v8, %v1028_v14  ;;  %v8890_v44 = vcombine.low %v1025_v15, %v1029_v16  ;;  %v10443_v14 = vld [vmem:[%s12609_s0 + $0x238] ss:$28 sps:$4 sm:$0xff]  }
  0xca   :  { %v11518_v47 = vpack.c.bf16 %v10420_v19, %v10419_v37  ;;  %v725_v37 = vld [vmem:[%s12610_s1 + $0x38] sm:$0xff]  ;;  %v1033_v19 = vld [vmem:[#allocation4 + $0x5c8] sm:$0xff] }
  0xcb   :  { %3694 = vmatpush1.bf16.msra.mxu0 %v8848_v17  ;;  %4146 = vmatpush1.bf16.msra.mxu1 %v8850_v26  ;;  %v8880_v26 = vcombine.low %v11530_v56, %v1020_v61  ;;  %v1041_v56 = vld [vmem:[#allocation4 + $0x608] sm:$0xff]  ;;  %v726_v61 = vld [vmem:[%s12610_s1 + $0x40] sm:$0xff] }
  0xcc   :  { %3695 = vmatprep.subr.bf16.mxu0 %v8857_v5  ;;  %4147 = vmatprep.subr.bf16.mxu1 %v8859_v31  ;;  %671 = vst [vmem:[#allocation2 + $0x48] sm:$0xff] %v11518_v47  ;;  %v10431_v5 = vld [vmem:[%s12609_s0 + $0x158] ss:$28 sps:$4 sm:$0xff]   ;;  %v1032_v31 = vld [vmem:[#allocation4 + $0x5c0] sm:$0xff]  ;;  %v738_v8 = vpack.c.bf16 %v727_v63, %v726_v61 }
  0xcd   :  { %v11583_v34 = vpack.c.bf16 %v10432_v27, %v10431_v5  ;;  %v8897_v48 = vcombine.high %v1032_v31, %v1036_v33  ;;  %v8896_v59 = vcombine.low %v1032_v31, %v1036_v33  ;;  %v728_v5 = vld [vmem:[%s12610_s1 + $0x50] sm:$0xff]  ;;  %v729_v27 = vld [vmem:[%s12610_s1 + $0x58] sm:$0xff]  ;;  %v11658_v33 = vld [vmem:[#allocation4 + $0x6c0] sm:$0xff] }
  0xce   :  { %3621 = vmatmul.mubr.bf16.gmra.mrb[4].mxu0 %v11356_v22  ;;  %4073 = vmatmul.mubr.bf16.gmra.mrb[4].mxu1 %v11356_v22  ;;  %v8875_v22 = vcombine.high %v1009_v50, %v1013_v51  ;;  %v1044_v51 = vld [vmem:[#allocation4 + $0x620] sm:$0xff]  ;;  %v739_v31 = vpack.c.bf16 %v729_v27, %v728_v5 }
  0xcf   :  { %3696 = vmatpush1.bf16.msra.mxu0 %v8856_v36  ;;  %4148 = vmatpush1.bf16.msra.mxu1 %v8858_v38  ;;  %v724_v36 = vld [vmem:[%s12610_s1 + $0x30] sm:$0xff]  ;;  %685 = vst [vmem:[#allocation2 + $0xb8] sm:$0xff] %v11583_v34  ;;  %v11722_v5 = vld [vmem:[#allocation4 + $0x780] sm:$0xff] }
  0xd0   :  { %3697 = vmatprep.subr.bf16.mxu0 %v8865_v40  ;;  %4149 = vmatprep.subr.bf16.mxu1 %v8867_v43  ;;  %v1037_v38 = vld [vmem:[#allocation4 + $0x5e8] sm:$0xff]  ;;  %v737_v40 = vpack.c.bf16 %v725_v37, %v724_v36  ;;  %v11594_v43 = vld [vmem:[#allocation4 + $0x600] sm:$0xff] }
  0xd1   :  { %3630 = vmatprep.mubr.bf16.mxu0 %v11372_v35  ;;  %4082 = vmatprep.mubr.bf16.mxu1 %v11372_v35  ;;  %v723_v35 = vld [vmem:[%s12610_s1 + $0x28] sm:$0xff]  ;;  %v8899_v50 = vcombine.high %v1033_v19, %v1037_v38  ;;  %v8898_v0 = vcombine.low %v1033_v19, %v1037_v38  ;;  %v8905_v2 = vcombine.high %v11594_v43, %v1044_v51  ;;  %v10447_v38 = vld [vmem:[%s12609_s0 + $0x2e4] ss:$28 sps:$4 sm:$0xff]  }
  0xd2   :  { %v736_v17 = vpack.c.bf16 %v723_v35, %v722_v11  ;;  %758 = vrot.lane.b32.xlu0 %v738_v8, %s11171_s21  ;;  %v10439_v35 = vld [vmem:[%s12609_s0 + $0x23c] ss:$28 sps:$4 sm:$0xff]   ;;  %v10445_v19 = vld [vmem:[%s12609_s0 + $0x2ac] ss:$28 sps:$4 sm:$0xff]  }
  0xd3   :  { %3698 = vmatpush1.bf16.msra.mxu0 %v8864_v53  ;;  %4150 = vmatpush1.bf16.msra.mxu1 %v8866_v57  ;;  %v10438_v53 = vld [vmem:[%s12609_s0 + $0x200] ss:$28 sps:$4 sm:$0xff]   ;;  %v1045_v57 = vld [vmem:[#allocation4 + $0x628] sm:$0xff] }
  0xd4   :  { %3699 = vmatprep.subr.bf16.mxu0 %v8873_v58  ;;  %4151 = vmatprep.subr.bf16.mxu1 %v8875_v22  ;;  %v11616_v22 = vpack.c.bf16 %v10438_v53, %v10437_v52  ;;  %v8907_v11 = vcombine.high %v1041_v56, %v1045_v57  ;;  %v730_v52 = vld [vmem:[%s12610_s1 + $0x60] sm:$0xff] }
  0xd5   :  { %754 = vrot.lane.b32.xlu1 %v736_v17, %s11171_s21  ;;  %v1056_v17 = vld [vmem:[#allocation4 + $0x680] sm:$0xff] }
  0xd6   :  { %3631 = vmatmul.mubr.bf16.gmra.mrb[8].mxu0 %v11374_v39  ;;  %4083 = vmatmul.mubr.bf16.gmra.mrb[8].mxu1 %v11374_v39  ;;  %v8891_v39 = vcombine.high %v1025_v15, %v1029_v16  ;;  %692 = vst [vmem:[#allocation2 + $0xf0] sm:$0xff] %v11616_v22  ;;  %v8906_v15 = vcombine.low %v1041_v56, %v1045_v57  ;;  %v1076_v57 = vld [vmem:[#allocation4 + $0x720] sm:$0xff] }
  0xd7   :  { %3700 = vmatpush1.bf16.msra.mxu0 %v8872_v7  ;;  %4152 = vmatpush1.bf16.msra.mxu1 %v8874_v12  ;;  %v1053_v7 = vld [vmem:[#allocation4 + $0x668] sm:$0xff]  ;;  %v8921_v37 = vcombine.high %v1056_v17, %v1060_v25  ;;  %v11724_v27 = vld [vmem:[#allocation4 + $0x7a0] sm:$0xff] }
  0xd8   :  { %3701 = vmatprep.subr.bf16.mxu0 %v8881_v13  ;;  %4153 = vmatprep.subr.bf16.mxu1 %v8883_v18  ;;  %v10441_v12 = vld [vmem:[%s12609_s0 + $0x274] ss:$28 sps:$4 sm:$0xff]   ;;  %v8904_v13 = vcombine.low %v11594_v43, %v1044_v51  ;;  %v8915_v23 = vcombine.high %v1049_v3, %v1053_v7  ;;  %v8914_v36 = vcombine.low %v1049_v3, %v1053_v7  ;;  %v10450_v43 = vld [vmem:[%s12609_s0 + $0x2e0] ss:$28 sps:$4 sm:$0xff]  }
  0xd9   :  { %3640 = vmatprep.mubr.bf16.mxu0 %v11390_v54  ;;  %4092 = vmatprep.mubr.bf16.mxu1 %v11390_v54  ;;  %v10433_v54 = vld [vmem:[%s12609_s0 + $0x1cc] ss:$28 sps:$4 sm:$0xff]   ;;  %v11644_v18 = vpack.c.bf16 %v10441_v12, %v10439_v35  ;;  %v10455_v3 = vld [vmem:[%s12609_s0 + $0x318] ss:$28 sps:$4 sm:$0xff]  }
  0xda   :  { %756 = vrot.lane.b32.xlu1 %v737_v40, %s11171_s21  ;;  %v11611_v58 = vpack.c.bf16 %v10435_v49, %v10433_v54  ;;  %v1068_v40 = vld [vmem:[#allocation4 + $0x6e0] sm:$0xff]  ;;  %v11676_v54 = vpack.c.bf16 %v10447_v38, %v10445_v19  ;;  %v8920_v49 = vcombine.low %v1056_v17, %v1060_v25  ;;  %v10456_v7 = vld [vmem:[%s12609_s0 + $0x350] ss:$28 sps:$4 sm:$0xff]  }
  0xdb   :  { %3702 = vmatpush1.bf16.msra.mxu0 %v8880_v26  ;;  %4154 = vmatpush1.bf16.msra.mxu1 %v8882_v29  ;;  %v1057_v29 = vld [vmem:[#allocation4 + $0x688] sm:$0xff]  ;;  %700 = vst [vmem:[#allocation2 + $0x130] sm:$0xff] %v11644_v18  ;;  %v8929_v56 = vcombine.high %v11658_v33, %v1068_v40  ;;  %v1080_v35 = vld [vmem:[#allocation4 + $0x740] sm:$0xff] }
  0xdc   :  { %3703 = vmatprep.subr.bf16.mxu0 %v8889_v30  ;;  %4155 = vmatprep.subr.bf16.mxu1 %v8891_v39  ;;  %693 = vst [vmem:[#allocation2 + $0xf8] sm:$0xff] %v11611_v58  ;;  %v1061_v30 = vld [vmem:[#allocation4 + $0x6a8] sm:$0xff]  ;;  %707 = vst [vmem:[#allocation2 + $0x168] sm:$0xff] %v11676_v54 }
  0xdd   :  { %v8922_v53 = vcombine.low %v1057_v29, %v1061_v30  ;;  %v1085_v17 = vld [vmem:[#allocation4 + $0x768] sm:$0xff] }
  0xde   :  { %3641 = vmatmul.mubr.bf16.gmra.mrb[12].mxu0 %v11392_v55  ;;  %4093 = vmatmul.mubr.bf16.gmra.mrb[12].mxu1 %v11392_v55  ;;  %v1052_v55 = vld [vmem:[#allocation4 + $0x660] sm:$0xff]  ;;  %v1093_v19 = vld [vmem:[#allocation4 + $0x7a8] sm:$0xff] }
  0xdf   :  { %3704 = vmatpush1.bf16.msra.mxu0 %v8888_v41  ;;  %4156 = vmatpush1.bf16.msra.mxu1 %v8890_v44  ;;  %v8913_v16 = vcombine.high %v11614_v60, %v1052_v55  ;;  %v8912_v39 = vcombine.low %v11614_v60, %v1052_v55  ;;  %v10449_v41 = vld [vmem:[%s12609_s0 + $0x2a8] ss:$28 sps:$4 sm:$0xff]   ;;  %v8928_v55 = vcombine.low %v11658_v33, %v1068_v40 }
  0xe0   :  { %3705 = vmatprep.subr.bf16.mxu0 %v8897_v48  ;;  %4157 = vmatprep.subr.bf16.mxu1 %v8899_v50  ;;  %v1065_v44 = vld [vmem:[#allocation4 + $0x6c8] sm:$0xff]  ;;  %v11678_v50 = vld [vmem:[#allocation4 + $0x700] sm:$0xff]  ;;  %v11680_v51 = vpack.c.bf16 %v10450_v43, %v10449_v41 }
  0xe1   :  { %3650 = vmatprep.mubr.bf16.mxu0 %v11408_v6  ;;  %4102 = vmatprep.mubr.bf16.mxu1 %v11408_v6  ;;  %v10444_v6 = vld [vmem:[%s12609_s0 + $0x270] ss:$28 sps:$4 sm:$0xff]   ;;  %v8936_v25 = vcombine.low %v11678_v50, %v1076_v57  ;;  %v11744_v40 = vld [vmem:[#allocation4 + $0x7e0] sm:$0xff] }
  0xe2   :  { %v11646_v26 = vpack.c.bf16 %v10444_v6, %v10443_v14  ;;  %v1069_v48 = vld [vmem:[#allocation4 + $0x6e8] sm:$0xff]  ;;  %760 = vrot.lane.b32.xlu1 %v739_v31, %s11171_s21  ;;  %706 = vst [vmem:[#allocation2 + $0x160] sm:$0xff] %v11680_v51  ;;  %v11711_v14 = vpack.c.bf16 %v10456_v7, %v10455_v3 }
  0xe3   :  { %3706 = vmatpush1.bf16.msra.mxu0 %v8896_v59  ;;  %4158 = vmatpush1.bf16.msra.mxu1 %v8898_v0  ;;  %v1073_v59 = vld [vmem:[#allocation4 + $0x708] sm:$0xff]  ;;  %v8931_v63 = vcombine.high %v1065_v44, %v1069_v48  ;;  %v10451_v0 = vld [vmem:[%s12609_s0 + $0x31c] ss:$28 sps:$4 sm:$0xff]   ;;  %v8930_v8 = vcombine.low %v1065_v44, %v1069_v48  ;;  %v10463_v44 = vld [vmem:[%s12609_s0 + $0x84] ss:$28 sps:$4 sm:$0xff]  }
  0xe4   :  { %3707 = vmatprep.subr.bf16.mxu0 %v8905_v2  ;;  %4159 = vmatprep.subr.bf16.mxu1 %v8907_v11  ;;  %699 = vst [vmem:[#allocation2 + $0x128] sm:$0xff] %v11646_v26  ;;  %v1077_v60 = vld [vmem:[#allocation4 + $0x728] sm:$0xff]  ;;  %v8937_v11 = vcombine.high %v11678_v50, %v1076_v57  ;;  %713 = vst [vmem:[#allocation2 + $0x198] sm:$0xff] %v11711_v14  ;;  %v10467_v50 = vld [vmem:[%s12609_s0 + $0x80] ss:$28 sps:$4 sm:$0xff]  }
  0xe5   :  { %v10453_v2 = vld [vmem:[%s12609_s0 + $0x354] ss:$28 sps:$4 sm:$0xff]  }
  0xe6   :  { %3651 = vmatmul.mubr.bf16.gmra.mrb[16].mxu0 %v11410_v9  ;;  %4103 = vmatmul.mubr.bf16.gmra.mrb[16].mxu1 %v11410_v9  ;;  %v8923_v9 = vcombine.high %v1057_v29, %v1061_v30  ;;  %v11708_v12 = vpack.c.bf16 %v10453_v2, %v10451_v0  ;;  %v732_v6 = vld [vmem:[%s12610_s1 + $0x70] sm:$0xff]  ;;  %v8938_v29 = vcombine.low %v1073_v59, %v1077_v60 }
  0xe7   :  { %3708 = vmatpush1.bf16.msra.mxu0 %v8904_v13  ;;  %4160 = vmatpush1.bf16.msra.mxu1 %v8906_v15  ;;  %v1084_v13 = vld [vmem:[#allocation4 + $0x760] sm:$0xff]  ;;  %v733_v15 = vld [vmem:[%s12610_s1 + $0x78] sm:$0xff]  ;;  %v10459_v31 = vld [vmem:[%s12609_s0 + $0x14] ss:$28 sps:$4 sm:$0xff]  }
  0xe8   :  { %3709 = vmatprep.subr.bf16.mxu0 %v8913_v16  ;;  %4161 = vmatprep.subr.bf16.mxu1 %v8915_v23  ;;  %v1081_v16 = vld [vmem:[#allocation4 + $0x748] sm:$0xff]  ;;  %714 = vst [vmem:[#allocation2 + $0x1a0] sm:$0xff] %v11708_v12  ;;  %v741_v23 = vpack.c.bf16 %v733_v15, %v732_v6  ;;  %v8945_v30 = vcombine.high %v1080_v35, %v1084_v13  ;;  %v10475_v6 = vld [vmem:[%s12609_s0 + $0x164] ss:$28 sps:$4 sm:$0xff]   ;;  %v10477_v15 = vld [vmem:[%s12609_s0 + $0x19c] ss:$28 sps:$4 sm:$0xff]  }
  0xe9   :  { %3660 = vmatprep.mubr.bf16.mxu0 %v11426_v24  ;;  %4112 = vmatprep.mubr.bf16.mxu1 %v11426_v24  ;;  %v731_v24 = vld [vmem:[%s12610_s1 + $0x68] sm:$0xff]  ;;  %v8944_v38 = vcombine.low %v1080_v35, %v1084_v13  ;;  %v8946_v48 = vcombine.low %v1081_v16, %v1085_v17  ;;  %v10469_v0 = vld [vmem:[%s12609_s0 + $0xf4] ss:$28 sps:$4 sm:$0xff]  }
  0xea   :  { %v740_v61 = vpack.c.bf16 %v731_v24, %v730_v52  ;;  %v1089_v33 = vld [vmem:[#allocation4 + $0x788] sm:$0xff]  ;;  %764 = vrot.lane.b32.xlu1 %v741_v23, %s11171_s21  ;;  %v10468_v52 = vld [vmem:[%s12609_s0 + $0xb8] ss:$28 sps:$4 sm:$0xff]   ;;  %v1116_v23 = vld [vmem:[#allocation4 + $0x860] sm:$0xff] }
  0xeb   :  { %3710 = vmatpush1.bf16.msra.mxu0 %v8912_v39  ;;  %4162 = vmatpush1.bf16.msra.mxu1 %v8914_v36  ;;  %v8947_v39 = vcombine.high %v1081_v16, %v1085_v17  ;;  %v10460_v36 = vld [vmem:[%s12609_s0 + $0x48] ss:$28 sps:$4 sm:$0xff]   ;;  %v8955_v24 = vcombine.high %v1089_v33, %v1093_v19  ;;  %v10473_v2 = vld [vmem:[%s12609_s0 + $0xf0] ss:$28 sps:$4 sm:$0xff]  }
  0xec   :  { %3711 = vmatprep.subr.bf16.mxu0 %v8921_v37  ;;  %4163 = vmatprep.subr.bf16.mxu1 %v8923_v9  ;;  %v10462_v37 = vld [vmem:[%s12609_s0 + $0x4c] ss:$28 sps:$4 sm:$0xff]  }
  0xed   :  { %762 = vrot.lane.b32.xlu0 %v740_v61, %s11171_s21  ;;  %v11742_v9 = vld [vmem:[#allocation4 + $0x7c0] sm:$0xff]  ;;  %v11746_v41 = vpack.c.bf16 %v10462_v37, %v10459_v31  ;;  %v11789_v7 = vld [vmem:[#allocation4 + $0x808] sm:$0xff] }
  0xee   :  { %3661 = vmatmul.mubr.bf16.gmra.mrb[20].mxu0 %v11428_v28  ;;  %4113 = vmatmul.mubr.bf16.gmra.mrb[20].mxu1 %v11428_v28  ;;  %v8939_v28 = vcombine.high %v1073_v59, %v1077_v60  ;;  %v11770_v59 = vpack.c.bf16 %v10468_v52, %v10467_v50  ;;  %v8952_v60 = vcombine.low %v11722_v5, %v11724_v27  ;;  %v11774_v61 = vld [vmem:[#allocation4 + $0x800] sm:$0xff]  ;;  %v10485_v37 = vld [vmem:[%s12609_s0 + $0x1d0] ss:$28 sps:$4 sm:$0xff]  }
  0xef   :  { %3712 = vmatpush1.bf16.msra.mxu0 %v8920_v49  ;;  %4164 = vmatpush1.bf16.msra.mxu1 %v8922_v53  ;;  %v10465_v49 = vld [vmem:[%s12609_s0 + $0xbc] ss:$28 sps:$4 sm:$0xff]   ;;  %v1097_v53 = vld [vmem:[#allocation4 + $0x7c8] sm:$0xff]  ;;  %666 = vst [vmem:[#allocation2 + $0x28] sm:$0xff] %v11746_v41  ;;  %v8961_v3 = vcombine.high %v11742_v9, %v11744_v40  ;;  %v8960_v16 = vcombine.low %v11742_v9, %v11744_v40  ;;  %v11810_v17 = vld [vmem:[#allocation4 + $0x840] sm:$0xff] }
  0xf0   :  { %3713 = vmatprep.subr.bf16.mxu0 %v8929_v56  ;;  %4165 = vmatprep.subr.bf16.mxu1 %v8931_v63  ;;  %v1101_v56 = vld [vmem:[#allocation4 + $0x7e8] sm:$0xff]  ;;  %v11768_v57 = vpack.c.bf16 %v10465_v49, %v10463_v44  ;;  %v11776_v63 = vld [vmem:[#allocation4 + $0x820] sm:$0xff]  ;;  %673 = vst [vmem:[#allocation2 + $0x58] sm:$0xff] %v11770_v59  ;;  %v8977_v40 = vcombine.high %v11810_v17, %v1116_v23 }
  0xf1   :  { %3670 = vmatprep.mubr.bf16.mxu0 %v11444_v45  ;;  %4122 = vmatprep.mubr.bf16.mxu1 %v11444_v45  ;;  %v10457_v45 = vld [vmem:[%s12609_s0 + $0x10] ss:$28 sps:$4 sm:$0xff]   ;;  %v8963_v35 = vcombine.high %v1097_v53, %v1101_v56  ;;  %v1120_v9 = vld [vmem:[#allocation4 + $0x880] sm:$0xff] }
  0xf2   :  { %v11748_v43 = vpack.c.bf16 %v10460_v36, %v10457_v45  ;;  %674 = vst [vmem:[#allocation2 + $0x60] sm:$0xff] %v11768_v57  ;;  %v11822_v45 = vpack.c.bf16 %v10477_v15, %v10475_v6  ;;  %v10483_v36 = vld [vmem:[%s12609_s0 + $0x20c] ss:$28 sps:$4 sm:$0xff]  }
  0xf3   :  { %3714 = vmatpush1.bf16.msra.mxu0 %v8928_v55  ;;  %4166 = vmatpush1.bf16.msra.mxu1 %v8930_v8  ;;  %v8954_v55 = vcombine.low %v1089_v33, %v1093_v19  ;;  %v1109_v8 = vld [vmem:[#allocation4 + $0x828] sm:$0xff]  ;;  %v1124_v44 = vld [vmem:[#allocation4 + $0x8a0] sm:$0xff] }
  0xf4   :  { %3715 = vmatprep.subr.bf16.mxu0 %v8937_v11  ;;  %4167 = vmatprep.subr.bf16.mxu1 %v8939_v28  ;;  %665 = vst [vmem:[#allocation2 + $0x20] sm:$0xff] %v11748_v43  ;;  %v10474_v11 = vld [vmem:[%s12609_s0 + $0x128] ss:$28 sps:$4 sm:$0xff]   ;;  %v8971_v31 = vcombine.high %v11789_v7, %v1109_v8  ;;  %v10481_v33 = vld [vmem:[%s12609_s0 + $0x1d4] ss:$28 sps:$4 sm:$0xff]   ;;  %688 = vst [vmem:[#allocation2 + $0xd0] sm:$0xff] %v11822_v45 }
  0xf5   :  { %v11799_v13 = vpack.c.bf16 %v10474_v11, %v10473_v2  ;;  %v10486_v19 = vld [vmem:[%s12609_s0 + $0x208] ss:$28 sps:$4 sm:$0xff]   ;;  %v638_v49 = vpack.c.bf16 %v10483_v36, %v10481_v33  ;;  %v8984_v11 = vcombine.low %v1120_v9, %v1124_v44  ;;  %v10497_v15 = vld [vmem:[%s12609_s0 + $0x2b0] ss:$28 sps:$4 sm:$0xff]   ;;  %v10499_v36 = vld [vmem:[%s12609_s0 + $0x18] ss:$28 sps:$4 sm:$0xff]  }
  0xf6   :  { %3671 = vmatmul.mubr.bf16.gmra.mrb[24].mxu0 %v11446_v46  ;;  %4123 = vmatmul.mubr.bf16.gmra.mrb[24].mxu1 %v11446_v46  ;;  %v8953_v46 = vcombine.high %v11722_v5, %v11724_v27  ;;  %v10480_v5 = vld [vmem:[%s12609_s0 + $0x198] ss:$28 sps:$4 sm:$0xff]   ;;  %v8969_v27 = vcombine.high %v11774_v61, %v11776_v63  ;;  %v637_v50 = vpack.c.bf16 %v10486_v19, %v10485_v37  ;;  %v1132_v2 = vld [vmem:[#allocation4 + $0x8e0] sm:$0xff] }
  0xf7   :  { %3716 = vmatpush1.bf16.msra.mxu0 %v8936_v25  ;;  %4168 = vmatpush1.bf16.msra.mxu1 %v8938_v29  ;;  %v10479_v25 = vld [vmem:[%s12609_s0 + $0x160] ss:$28 sps:$4 sm:$0xff]   ;;  %v1113_v29 = vld [vmem:[#allocation4 + $0x848] sm:$0xff]  ;;  %680 = vst [vmem:[#allocation2 + $0x90] sm:$0xff] %v11799_v13  ;;  %695 = vst [vmem:[#allocation2 + $0x108] sm:$0xff] %v638_v49 }
  0xf8   :  { %3717 = vmatprep.subr.bf16.mxu0 %v8945_v30  ;;  %4169 = vmatprep.subr.bf16.mxu1 %v8947_v39  ;;  %v1117_v30 = vld [vmem:[#allocation4 + $0x868] sm:$0xff]  ;;  %v630_v39 = vpack.c.bf16 %v10480_v5, %v10479_v25  ;;  %694 = vst [vmem:[#allocation2 + $0x100] sm:$0xff] %v637_v50  ;;  %v1136_v25 = vld [vmem:[#allocation4 + $0x900] sm:$0xff]  ;;  %v10506_v49 = vld [vmem:[%s12609_s0 + $0x358] ss:$28 sps:$4 sm:$0xff]  }
  0xf9   :  { %3680 = vmatprep.mubr.bf16.mxu0 %v11462_v62  ;;  %4132 = vmatprep.mubr.bf16.mxu1 %v11462_v62  ;;  %v10471_v62 = vld [vmem:[%s12609_s0 + $0x12c] ss:$28 sps:$4 sm:$0xff]   ;;  %v8979_v52 = vcombine.high %v1113_v29, %v1117_v30 }
  0xfa   :  { %v11796_v28 = vpack.c.bf16 %v10471_v62, %v10469_v0  ;;  %687 = vst [vmem:[#allocation2 + $0xc8] sm:$0xff] %v630_v39  ;;  %v8985_v0 = vcombine.high %v1120_v9, %v1124_v44  ;;  %v1128_v62 = vld [vmem:[#allocation4 + $0x8c0] sm:$0xff] }
  0xfb   :  { %3718 = vmatpush1.bf16.msra.mxu0 %v8944_v38  ;;  %4170 = vmatpush1.bf16.msra.mxu1 %v8946_v48  ;;  %v8968_v38 = vcombine.low %v11774_v61, %v11776_v63  ;;  %v1121_v48 = vld [vmem:[#allocation4 + $0x888] sm:$0xff]  ;;  %v10492_v61 = vld [vmem:[%s12609_s0 + $0x278] ss:$28 sps:$4 sm:$0xff]   ;;  %v8978_v63 = vcombine.low %v1113_v29, %v1117_v30  ;;  %v1140_v5 = vld [vmem:[#allocation4 + $0x920] sm:$0xff] }
  0xfc   :  { %3719 = vmatprep.subr.bf16.mxu0 %v8953_v46  ;;  %4171 = vmatprep.subr.bf16.mxu1 %v8955_v24  ;;  %681 = vst [vmem:[#allocation2 + $0x98] sm:$0xff] %v11796_v28  ;;  %v1125_v46 = vld [vmem:[#allocation4 + $0x8a8] sm:$0xff]  ;;  %v10487_v24 = vld [vmem:[%s12609_s0 + $0x244] ss:$28 sps:$4 sm:$0xff]   ;;  %v9001_v19 = vcombine.high %v1136_v25, %v1140_v5  ;;  %v9000_v50 = vcombine.low %v1136_v25, %v1140_v5 }
  0xfd   :  { %v10495_v6 = vld [vmem:[%s12609_s0 + $0x2ec] ss:$28 sps:$4 sm:$0xff]  }
  0xfe   :  { %3681 = vmatmul.mubr.bf16.gmra.mrb[28].mxu0 %v11464_v1  ;;  %4133 = vmatmul.mubr.bf16.gmra.mrb[28].mxu1 %v11464_v1  ;;  %v8962_v1 = vcombine.low %v1097_v53, %v1101_v56  ;;  %v10489_v53 = vld [vmem:[%s12609_s0 + $0x27c] ss:$28 sps:$4 sm:$0xff]   ;;  %v8976_v56 = vcombine.low %v11810_v17, %v1116_v23  ;;  %v10498_v17 = vld [vmem:[%s12609_s0 + $0x2e8] ss:$28 sps:$4 sm:$0xff]  }
  0xff   :  { %3720 = vmatpush1.bf16.msra.mxu0 %v8952_v60  ;;  %4172 = vmatpush1.bf16.msra.mxu1 %v8954_v55  ;;  %v10491_v60 = vld [vmem:[%s12609_s0 + $0x240] ss:$28 sps:$4 sm:$0xff]   ;;  %v645_v55 = vpack.c.bf16 %v10489_v53, %v10487_v24  ;;  %v1141_v29 = vld [vmem:[#allocation4 + $0x928] sm:$0xff]  ;;  %v651_v30 = vpack.c.bf16 %v10498_v17, %v10497_v15 }
 0x100   :  { %3721 = vmatprep.subr.bf16.mxu0 %v8961_v3  ;;  %4173 = vmatprep.subr.bf16.mxu1 %v8963_v35  ;;  %v1129_v3 = vld [vmem:[#allocation4 + $0x8c8] sm:$0xff]  ;;  %v1144_v39 = vld [vmem:[#allocation4 + $0x940] sm:$0xff] }
 0x101   :  { %3723 = vmatprep.mubr.bf16.mxu0 %v11486_v20  ;;  %4175 = vmatprep.mubr.bf16.mxu1 %v11486_v20  ;;  %v8970_v20 = vcombine.low %v11789_v7, %v1109_v8  ;;  %v1133_v7 = vld [vmem:[#allocation4 + $0x8e8] sm:$0xff]  ;;  %v644_v8 = vpack.c.bf16 %v10492_v61, %v10491_v60  ;;  %702 = vst [vmem:[#allocation2 + $0x140] sm:$0xff] %v645_v55  ;;  %v1148_v33 = vld [vmem:[#allocation4 + $0x960] sm:$0xff]  ;;  %708 = vst [vmem:[#allocation2 + $0x170] sm:$0xff] %v651_v30 }
 0x102   :  { %v10493_v35 = vld [vmem:[%s12609_s0 + $0x2b4] ss:$28 sps:$4 sm:$0xff]   ;;  %v8995_v23 = vcombine.high %v1129_v3, %v1133_v7  ;;  %v8994_v37 = vcombine.low %v1129_v3, %v1133_v7  ;;  %v1152_v24 = vld [vmem:[#allocation4 + $0x980] sm:$0xff]  ;;  %v9008_v55 = vcombine.low %v1144_v39, %v1148_v33 }
 0x103   :  { %3722 = vmatpush1.bf16.msra.mxu0 %v8960_v16  ;;  %4174 = vmatpush1.bf16.msra.mxu1 %v8962_v1  ;;  %701 = vst [vmem:[#allocation2 + $0x138] sm:$0xff] %v644_v8  ;;  %v8986_v16 = vcombine.low %v1121_v48, %v1125_v46  ;;  %v1137_v1 = vld [vmem:[#allocation4 + $0x908] sm:$0xff]  ;;  %v1156_v53 = vld [vmem:[#allocation4 + $0x9a0] sm:$0xff] }
 0x104   :  { %3804 = vmatprep.subr.bf16.mxu0 %v8969_v27  ;;  %4256 = vmatprep.subr.bf16.mxu1 %v8971_v31  ;;  %v652_v27 = vpack.c.bf16 %v10495_v6, %v10493_v35  ;;  %v8992_v31 = vcombine.low %v1128_v62, %v1132_v2  ;;  %v9003_v9 = vcombine.high %v1137_v1, %v1141_v29  ;;  %v1157_v60 = vld [vmem:[#allocation4 + $0x9a8] sm:$0xff]  ;;  %v1160_v7 = vld [vmem:[#allocation4 + $0x9c0] sm:$0xff] }
 0x105   :  { %v9017_v3 = vcombine.high %v1152_v24, %v1156_v53  ;;  %v1164_v8 = vld [vmem:[#allocation4 + $0x9e0] sm:$0xff]  ;;  %v1161_v6 = vld [vmem:[#allocation4 + $0x9c8] sm:$0xff] }
 0x106   :  { %3724 = vmatmul.mubr.bf16.vlgmr.msra.gmra.mrb[0].mxu0 %v11488_v21  ;;  %4176 = vmatmul.mubr.bf16.vlgmr.msra.gmra.mrb[0].mxu1 %v11488_v21  ;;  %v8987_v21 = vcombine.high %v1121_v48, %v1125_v46  ;;  %709 = vst [vmem:[#allocation2 + $0x178] sm:$0xff] %v652_v27  ;;  %v10503_v48 = vld [vmem:[%s12609_s0 + $0x35c] ss:$28 sps:$4 sm:$0xff]   ;;  %v1165_v15 = vld [vmem:[#allocation4 + $0x9e8] sm:$0xff]  ;;  %v1168_v5 = vld [vmem:[#allocation4 + $0xa00] sm:$0xff]  ;;  %v9024_v30 = vcombine.low %v1160_v7, %v1164_v8 }
 0x107   :  { %3805 = vmatpush1.bf16.msra.mxu0 %v8968_v38  ;;  %4257 = vmatpush1.bf16.msra.mxu1 %v8970_v20  ;;  %v1145_v38 = vld [vmem:[#allocation4 + $0x948] sm:$0xff]  ;;  %v10505_v46 = vld [vmem:[%s12609_s0 + $0x320] ss:$28 sps:$4 sm:$0xff]   ;;  %v9027_v25 = vcombine.high %v1161_v6, %v1165_v15 }
 0x108   :  { %3806 = vmatprep.subr.bf16.mxu0 %v8977_v40  ;;  %4258 = vmatprep.subr.bf16.mxu1 %v8979_v52  ;;  %v1149_v20 = vld [vmem:[#allocation4 + $0x968] sm:$0xff]  ;;  %v10501_v40 = vld [vmem:[%s12609_s0 + $0x324] ss:$28 sps:$4 sm:$0xff]   ;;  %v9002_v52 = vcombine.low %v1137_v1, %v1141_v29 }
 0x109   :  { %3733 = vmatprep.mubr.bf16.mxu0 %v11516_v42  ;;  %4185 = vmatprep.mubr.bf16.mxu1 %v11516_v42  ;;  %v8993_v42 = vcombine.high %v1128_v62, %v1132_v2  ;;  %v11896_v61 = vpack.c.bf16 %v10503_v48, %v10501_v40  ;;  %v10507_v62 = vld [vmem:[%s12609_s0 + $0x88] ss:$28 sps:$4 sm:$0xff]   ;;  %v10508_v2 = vld [vmem:[%s12609_s0 + $0xc0] ss:$28 sps:$4 sm:$0xff]   ;;  %v10513_v48 = vld [vmem:[%s12609_s0 + $0x1d8] ss:$28 sps:$4 sm:$0xff]  }
 0x10a   :  { %v1169_v1 = vld [vmem:[#allocation4 + $0xa08] sm:$0xff] }
 0x10b   :  { %3807 = vmatpush1.bf16.msra.mxu0 %v8976_v56  ;;  %4259 = vmatpush1.bf16.msra.mxu1 %v8978_v63  ;;  %v1153_v56 = vld [vmem:[#allocation4 + $0x988] sm:$0xff]  ;;  %v11898_v63 = vpack.c.bf16 %v10506_v49, %v10505_v46  ;;  %716 = vst [vmem:[#allocation2 + $0x1b0] sm:$0xff] %v11896_v61  ;;  %v1184_v49 = vld [vmem:[#allocation4 + $0xa80] sm:$0xff] }
 0x10c   :  { %3808 = vmatprep.subr.bf16.mxu0 %v8985_v0  ;;  %4260 = vmatprep.subr.bf16.mxu1 %v8987_v21  ;;  %v9011_v0 = vcombine.high %v1145_v38, %v1149_v20  ;;  %v9010_v21 = vcombine.low %v1145_v38, %v1149_v20  ;;  %v9019_v35 = vcombine.high %v1153_v56, %v1157_v60  ;;  %v1173_v29 = vld [vmem:[#allocation4 + $0xa28] sm:$0xff] }
 0x10d   :  { %715 = vst [vmem:[#allocation2 + $0x1a8] sm:$0xff] %v11898_v63  ;;  %v9018_v17 = vcombine.low %v1153_v56, %v1157_v60  ;;  %v1177_v38 = vld [vmem:[#allocation4 + $0xa48] sm:$0xff]  ;;  %v9034_v40 = vcombine.low %v1169_v1, %v1173_v29  ;;  %v1192_v56 = vld [vmem:[#allocation4 + $0xac0] sm:$0xff] }
 0x10e   :  { %3734 = vmatmul.mubr.bf16.gmra.mrb[4].mxu0 %v11518_v47  ;;  %4186 = vmatmul.mubr.bf16.gmra.mrb[4].mxu1 %v11518_v47  ;;  %v10500_v47 = vld [vmem:[%s12609_s0 + $0x50] ss:$28 sps:$4 sm:$0xff]  }
 0x10f   :  { %3809 = vmatpush1.bf16.msra.mxu0 %v8984_v11  ;;  %4261 = vmatpush1.bf16.msra.mxu1 %v8986_v16  ;;  %v611_v44 = vpack.c.bf16 %v10500_v47, %v10499_v36  ;;  %v618_v11 = vpack.c.bf16 %v10508_v2, %v10507_v62  ;;  %v10509_v16 = vld [vmem:[%s12609_s0 + $0xf8] ss:$28 sps:$4 sm:$0xff]   ;;  %v10512_v36 = vld [vmem:[%s12609_s0 + $0x1a0] ss:$28 sps:$4 sm:$0xff]   ;;  %v1181_v20 = vld [vmem:[#allocation4 + $0xa68] sm:$0xff] }
 0x110   :  { %3810 = vmatprep.subr.bf16.mxu0 %v8993_v42  ;;  %4262 = vmatprep.subr.bf16.mxu1 %v8995_v23  ;;  %v10510_v42 = vld [vmem:[%s12609_s0 + $0x130] ss:$28 sps:$4 sm:$0xff]   ;;  %v9025_v23 = vcombine.high %v1160_v7, %v1164_v8  ;;  %v9042_v60 = vcombine.low %v1177_v38, %v1181_v20  ;;  %v1196_v2 = vld [vmem:[#allocation4 + $0xae0] sm:$0xff] }
 0x111   :  { %3743 = vmatprep.mubr.bf16.mxu0 %v11548_v4  ;;  %4195 = vmatprep.mubr.bf16.mxu1 %v11548_v4  ;;  %v9009_v4 = vcombine.high %v1144_v39, %v1148_v33  ;;  %668 = vst.msk [vmem:[#allocation2 + $0x30] sm:$0xff] %vm667_vm0, %v611_v44  ;;  %675 = vst.msk [vmem:[#allocation2 + $0x68] sm:$0xff] %vm667_vm0, %v618_v11  ;;  %v625_v27 = vpack.c.bf16 %v10510_v42, %v10509_v16  ;;  %v10514_v46 = vld [vmem:[%s12609_s0 + $0x210] ss:$28 sps:$4 sm:$0xff]   ;;  %v1200_v8 = vld [vmem:[#allocation4 + $0xb00] sm:$0xff] }
 0x112   :  { %v9026_v39 = vcombine.low %v1161_v6, %v1165_v15  ;;  %v9057_v6 = vcombine.high %v1192_v56, %v1196_v2  ;;  %v1204_v15 = vld [vmem:[#allocation4 + $0xb20] sm:$0xff]  ;;  %v10517_v16 = vld [vmem:[%s12609_s0 + $0x2b8] ss:$28 sps:$4 sm:$0xff]   ;;  %v1205_v42 = vld [vmem:[#allocation4 + $0xb28] sm:$0xff] }
 0x113   :  { %3811 = vmatpush1.bf16.msra.mxu0 %v8992_v31  ;;  %4263 = vmatpush1.bf16.msra.mxu1 %v8994_v37  ;;  %682 = vst.msk [vmem:[#allocation2 + $0xa0] sm:$0xff] %vm667_vm0, %v625_v27  ;;  %v10511_v31 = vld [vmem:[%s12609_s0 + $0x168] ss:$28 sps:$4 sm:$0xff]  }
 0x114   :  { %3812 = vmatprep.subr.bf16.mxu0 %v9001_v19  ;;  %4264 = vmatprep.subr.bf16.mxu1 %v9003_v9  ;;  %v1176_v37 = vld [vmem:[#allocation4 + $0xa40] sm:$0xff]  ;;  %v632_v47 = vpack.c.bf16 %v10512_v36, %v10511_v31  ;;  %v1209_v27 = vld [vmem:[#allocation4 + $0xb48] sm:$0xff] }
 0x115   :  { %v1180_v19 = vld [vmem:[#allocation4 + $0xa60] sm:$0xff]  ;;  %v1213_v31 = vld [vmem:[#allocation4 + $0xb68] sm:$0xff] }
 0x116   :  { %3744 = vmatmul.mubr.bf16.gmra.mrb[8].mxu0 %v11552_v10  ;;  %4196 = vmatmul.mubr.bf16.gmra.mrb[8].mxu1 %v11552_v10  ;;  %v9016_v10 = vcombine.low %v1152_v24, %v1156_v53  ;;  %v9041_v44 = vcombine.high %v1176_v37, %v1180_v19  ;;  %689 = vst.msk [vmem:[#allocation2 + $0xd8] sm:$0xff] %vm667_vm0, %v632_v47  ;;  %v1189_v24 = vld [vmem:[#allocation4 + $0xaa8] sm:$0xff] }
 0x117   :  { %3813 = vmatpush1.bf16.msra.mxu0 %v9000_v50  ;;  %4265 = vmatpush1.bf16.msra.mxu1 %v9002_v52  ;;  %v1188_v50 = vld [vmem:[#allocation4 + $0xaa0] sm:$0xff]  ;;  %v1185_v52 = vld [vmem:[#allocation4 + $0xa88] sm:$0xff]  ;;  %v9040_v53 = vcombine.low %v1176_v37, %v1180_v19 }
 0x118   :  { %3814 = vmatprep.subr.bf16.mxu0 %v9009_v4  ;;  %4266 = vmatprep.subr.bf16.mxu1 %v9011_v0  ;;  %v639_v4 = vpack.c.bf16 %v10514_v46, %v10513_v48  ;;  %v9049_v0 = vcombine.high %v1184_v49, %v1188_v50  ;;  %v9051_v62 = vcombine.high %v1185_v52, %v1189_v24  ;;  %v1216_v37 = vld [vmem:[#allocation4 + $0xb80] sm:$0xff]  ;;  %v1221_v47 = vld [vmem:[#allocation4 + $0xba8] sm:$0xff] }
 0x119   :  { %3753 = vmatprep.mubr.bf16.mxu0 %v11580_v32  ;;  %4205 = vmatprep.mubr.bf16.mxu1 %v11580_v32  ;;  %v1172_v32 = vld [vmem:[#allocation4 + $0xa20] sm:$0xff]  ;;  %v9048_v7 = vcombine.low %v1184_v49, %v1188_v50  ;;  %v1229_v50 = vld [vmem:[#allocation4 + $0xbe8] sm:$0xff] }
 0x11a   :  { %v9033_v33 = vcombine.high %v1168_v5, %v1172_v32  ;;  %v9032_v9 = vcombine.low %v1168_v5, %v1172_v32  ;;  %696 = vst.msk [vmem:[#allocation2 + $0x110] sm:$0xff] %vm667_vm0, %v639_v4  ;;  %v9065_v5 = vcombine.high %v1200_v8, %v1204_v15  ;;  %v1208_v32 = vld [vmem:[#allocation4 + $0xb40] sm:$0xff] }
 0x11b   :  { %3815 = vmatpush1.bf16.msra.mxu0 %v9008_v55  ;;  %4267 = vmatpush1.bf16.msra.mxu1 %v9010_v21  ;;  %v10515_v55 = vld [vmem:[%s12609_s0 + $0x248] ss:$28 sps:$4 sm:$0xff]  }
 0x11c   :  { %3816 = vmatprep.subr.bf16.mxu0 %v9017_v3  ;;  %4268 = vmatprep.subr.bf16.mxu1 %v9019_v35  ;;  %v1193_v21 = vld [vmem:[#allocation4 + $0xac8] sm:$0xff]  ;;  %v9050_v35 = vcombine.low %v1185_v52, %v1189_v24  ;;  %v1220_v19 = vld [vmem:[#allocation4 + $0xba0] sm:$0xff] }
 0x11d   :  { %v1197_v3 = vld [vmem:[#allocation4 + $0xae8] sm:$0xff]  ;;  %v1224_v48 = vld [vmem:[#allocation4 + $0xbc0] sm:$0xff]  ;;  %v9080_v52 = vcombine.low %v1216_v37, %v1220_v19 }
 0x11e   :  { %3754 = vmatmul.mubr.bf16.gmra.mrb[12].mxu0 %v11583_v34  ;;  %4206 = vmatmul.mubr.bf16.gmra.mrb[12].mxu1 %v11583_v34  ;;  %v9035_v34 = vcombine.high %v1169_v1, %v1173_v29  ;;  %v1212_v1 = vld [vmem:[#allocation4 + $0xb60] sm:$0xff] }
 0x11f   :  { %3817 = vmatpush1.bf16.msra.mxu0 %v9016_v10  ;;  %4269 = vmatpush1.bf16.msra.mxu1 %v9018_v17  ;;  %v9059_v10 = vcombine.high %v1193_v21, %v1197_v3  ;;  %v10518_v17 = vld [vmem:[%s12609_s0 + $0x2f0] ss:$28 sps:$4 sm:$0xff]   ;;  %v1228_v46 = vld [vmem:[#allocation4 + $0xbe0] sm:$0xff] }
 0x120   :  { %3818 = vmatprep.subr.bf16.mxu0 %v9025_v23  ;;  %4270 = vmatprep.subr.bf16.mxu1 %v9027_v25  ;;  %v9056_v23 = vcombine.low %v1192_v56, %v1196_v2  ;;  %v9058_v25 = vcombine.low %v1193_v21, %v1197_v3  ;;  %v653_v29 = vpack.c.bf16 %v10518_v17, %v10517_v16  ;;  %v1232_v4 = vld [vmem:[#allocation4 + $0xc00] sm:$0xff]  ;;  %v1233_v56 = vld [vmem:[#allocation4 + $0xc08] sm:$0xff]  ;;  %v11176_v2 = vmov 0  }
 0x121   :  { %3763 = vmatprep.mubr.bf16.mxu0 %v11611_v58  ;;  %4215 = vmatprep.mubr.bf16.mxu1 %v11611_v58  ;;  %v9043_v58 = vcombine.high %v1177_v38, %v1181_v20  ;;  %v1217_v38 = vld [vmem:[#allocation4 + $0xb88] sm:$0xff]  ;;  %v9075_v20 = vcombine.high %v1209_v27, %v1213_v31  ;;  %v9089_v24 = vcombine.high %v1224_v48, %v1228_v46  ;;  %v1240_v21 = vld [vmem:[#allocation4 + $0xc40] sm:$0xff] }
 0x122   :  { %710 = vst.msk [vmem:[#allocation2 + $0x180] sm:$0xff] %vm667_vm0, %v653_v29  ;;  %v9083_v49 = vcombine.high %v1217_v38, %v1221_v47  ;;  %v1244_v3 = vld [vmem:[#allocation4 + $0xc60] sm:$0xff]  ;;  %v1253_v17 = vld [vmem:[#allocation4 + $0xca8] sm:$0xff] }
 0x123   :  { %3819 = vmatpush1.bf16.msra.mxu0 %v9024_v30  ;;  %4271 = vmatpush1.bf16.msra.mxu1 %v9026_v39  ;;  %v10520_v39 = vld [vmem:[%s12609_s0 + $0x360] ss:$28 sps:$4 sm:$0xff]   ;;  %v1261_v29 = vld [vmem:[#allocation4 + $0xce8] sm:$0xff] }
 0x124   :  { %3820 = vmatprep.subr.bf16.mxu0 %v9033_v33  ;;  %4272 = vmatprep.subr.bf16.mxu1 %v9035_v34  ;;  %v9064_v33 = vcombine.low %v1200_v8, %v1204_v15  ;;  %v9073_v34 = vcombine.high %v1208_v32, %v1212_v1  ;;  %v1241_v8 = vld [vmem:[#allocation4 + $0xc48] sm:$0xff] }
 0x126   :  { %3764 = vmatmul.mubr.bf16.gmra.mrb[16].mxu0 %v11616_v22  ;;  %4216 = vmatmul.mubr.bf16.gmra.mrb[16].mxu1 %v11616_v22  ;;  %v10516_v22 = vld [vmem:[%s12609_s0 + $0x280] ss:$28 sps:$4 sm:$0xff]  }
 0x127   :  { %3821 = vmatpush1.bf16.msra.mxu0 %v9032_v9  ;;  %4273 = vmatpush1.bf16.msra.mxu1 %v9034_v40  ;;  %v646_v11 = vpack.c.bf16 %v10516_v22, %v10515_v55  ;;  %v9072_v9 = vcombine.low %v1208_v32, %v1212_v1  ;;  %v9074_v40 = vcombine.low %v1209_v27, %v1213_v31  ;;  %v1257_v27 = vld [vmem:[#allocation4 + $0xcc8] sm:$0xff]  ;;  %v1268_v31 = vld [vmem:[#allocation4 + $0xd20] sm:$0xff] }
 0x128   :  { %3822 = vmatprep.subr.bf16.mxu0 %v9041_v44  ;;  %4274 = vmatprep.subr.bf16.mxu1 %v9043_v58  ;;  %v9081_v44 = vcombine.high %v1216_v37, %v1220_v19  ;;  %v1225_v58 = vld [vmem:[#allocation4 + $0xbc8] sm:$0xff] }
 0x129   :  { %3773 = vmatprep.mubr.bf16.mxu0 %v11644_v18  ;;  %4225 = vmatprep.mubr.bf16.mxu1 %v11644_v18  ;;  %703 = vst.msk [vmem:[#allocation2 + $0x148] sm:$0xff] %vm667_vm0, %v646_v11  ;;  %v1201_v18 = vld [vmem:[#allocation4 + $0xb08] sm:$0xff]  ;;  %v9090_v55 = vcombine.low %v1225_v58, %v1229_v50 }
 0x12a   :  { %v9067_v30 = vcombine.high %v1201_v18, %v1205_v42  ;;  %v9066_v36 = vcombine.low %v1201_v18, %v1205_v42  ;;  %v1245_v11 = vld [vmem:[#allocation4 + $0xc68] sm:$0xff] }
 0x12b   :  { %3823 = vmatpush1.bf16.msra.mxu0 %v9040_v53  ;;  %4275 = vmatpush1.bf16.msra.mxu1 %v9042_v60  ;;  %v1236_v53 = vld [vmem:[#allocation4 + $0xc20] sm:$0xff]  ;;  %v9091_v60 = vcombine.high %v1225_v58, %v1229_v50  ;;  %v1249_v18 = vld [vmem:[#allocation4 + $0xc88] sm:$0xff]  ;;  %v9107_v42 = vcombine.high %v1241_v8, %v1245_v11  ;;  %v9106_v1 = vcombine.low %v1241_v8, %v1245_v11  ;;  %v12008_v8 = vld [vmem:[#allocation4 + $0x38] sm:$0xff] }
 0x12c   :  { %3824 = vmatprep.subr.bf16.mxu0 %v9049_v0  ;;  %4276 = vmatprep.subr.bf16.mxu1 %v9051_v62  ;;  %v1237_v0 = vld [vmem:[#allocation4 + $0xc28] sm:$0xff]  ;;  %v9097_v22 = vcombine.high %v1232_v4, %v1236_v53 }
 0x12d   :  { %v9098_v16 = vcombine.low %v1233_v56, %v1237_v0  ;;  %v1281_v50 = vld [vmem:[#allocation4 + $0xd88] sm:$0xff] }
 0x12e   :  { %3774 = vmatmul.mubr.bf16.gmra.mrb[20].mxu0 %v11646_v26  ;;  %4226 = vmatmul.mubr.bf16.gmra.mrb[20].mxu1 %v11646_v26  ;;  %v10519_v26 = vld [vmem:[%s12609_s0 + $0x328] ss:$28 sps:$4 sm:$0xff]  }
 0x12f   :  { %3825 = vmatpush1.bf16.msra.mxu0 %v9048_v7  ;;  %4277 = vmatpush1.bf16.msra.mxu1 %v9050_v35  ;;  %v9099_v7 = vcombine.high %v1233_v56, %v1237_v0  ;;  %v1248_v35 = vld [vmem:[#allocation4 + $0xc80] sm:$0xff]  ;;  %v1289_v0 = vld [vmem:[#allocation4 + $0xdc8] sm:$0xff] }
 0x130   :  { %3826 = vmatprep.subr.bf16.mxu0 %v9057_v6  ;;  %4278 = vmatprep.subr.bf16.mxu1 %v9059_v10  ;;  %v751_v62 = vpop.permute.xlu0 %750  ;;  %v1252_v6 = vld [vmem:[#allocation4 + $0xca0] sm:$0xff]  ;;  %v9105_v10 = vcombine.high %v1240_v21, %v1244_v3 }
 0x131   :  { %3783 = vmatprep.mubr.bf16.mxu0 %v11676_v54  ;;  %4235 = vmatprep.mubr.bf16.mxu1 %v11676_v54  ;;  %v660_v54 = vpack.c.bf16 %v10520_v39, %v10519_v26  ;;  %775 = vst.msk [vmem:[#allocation2 + $0x30] sm:$0xff] %vm774_vm1, %v751_v62  ;;  %v9114_v39 = vcombine.low %v1249_v18, %v1253_v17  ;;  %v1293_v62 = vld [vmem:[#allocation4 + $0xde8] sm:$0xff] }
 0x132   :  { %784 = vst.msk [vmem:[#allocation2 + $0x30] sm:$0xff] %vm783_vm2, %v11176_v2  ;;  %v10937_v11 = vld [vmem:[#allocation2 + $0xc8] sm:$0xff] }
 0x133   :  { %3827 = vmatpush1.bf16.msra.mxu0 %v9056_v23  ;;  %4279 = vmatpush1.bf16.msra.mxu1 %v9058_v25  ;;  %717 = vst.msk [vmem:[#allocation2 + $0x1b8] sm:$0xff] %vm667_vm0, %v660_v54  ;;  %v9113_v23 = vcombine.high %v1248_v35, %v1252_v6  ;;  %v1256_v25 = vld [vmem:[#allocation4 + $0xcc0] sm:$0xff] }
 0x134   :  { %3828 = vmatprep.subr.bf16.mxu0 %v9065_v5  ;;  %4280 = vmatprep.subr.bf16.mxu1 %v9067_v30  ;;  %v753_v15 = vpop.permute.xlu0 %752  ;;  %v1260_v5 = vld [vmem:[#allocation4 + $0xce0] sm:$0xff]  ;;  %v9115_v30 = vcombine.high %v1249_v18, %v1253_v17 }
 0x135   :  { %776 = vst.msk [vmem:[#allocation2 + $0x68] sm:$0xff] %vm774_vm1, %v753_v15  ;;  %v9121_v26 = vcombine.high %v1256_v25, %v1260_v5  ;;  %v9120_v19 = vcombine.low %v1256_v25, %v1260_v5  ;;  %v1276_v54 = vld [vmem:[#allocation4 + $0xd60] sm:$0xff]  ;;  %v10942_v25 = vld [vmem:[#allocation2 + $0x178] sm:$0xff]  ;;  %v10943_v5 = vld [vmem:[#allocation2 + $0x170] sm:$0xff] }
 0x136   :  { %3784 = vmatmul.mubr.bf16.gmra.mrb[24].mxu0 %v11680_v51  ;;  %4236 = vmatmul.mubr.bf16.gmra.mrb[24].mxu1 %v11680_v51  ;;  %v9082_v51 = vcombine.low %v1217_v38, %v1221_v47  ;;  %785 = vst.msk [vmem:[#allocation2 + $0x68] sm:$0xff] %vm783_vm2, %v11176_v2  ;;  %v1272_v38 = vld [vmem:[#allocation4 + $0xd40] sm:$0xff]  ;;  %v9122_v47 = vcombine.low %v1257_v27, %v1261_v29 }
 0x137   :  { %3829 = vmatpush1.bf16.msra.mxu0 %v9064_v33  ;;  %4281 = vmatpush1.bf16.msra.mxu1 %v9066_v36  ;;  %v1265_v33 = vld [vmem:[#allocation4 + $0xd08] sm:$0xff]  ;;  %v9137_v58 = vcombine.high %v1272_v38, %v1276_v54  ;;  %v10940_v17 = vld [vmem:[#allocation2 + $0x140] sm:$0xff] }
 0x138   :  { %3830 = vmatprep.subr.bf16.mxu0 %v9073_v34  ;;  %4282 = vmatprep.subr.bf16.mxu1 %v9075_v20  ;;  %v1269_v36 = vld [vmem:[#allocation4 + $0xd28] sm:$0xff]  ;;  %v9123_v34 = vcombine.high %v1257_v27, %v1261_v29  ;;  %v859_v27 = vld [vmem:[#allocation4 + $0x58] sm:$0xff] }
 0x139   :  { %3793 = vmatprep.mubr.bf16.mxu0 %v11708_v12  ;;  %4245 = vmatprep.mubr.bf16.mxu1 %v11708_v12  ;;  %v9088_v12 = vcombine.low %v1224_v48, %v1228_v46  ;;  %v1284_v48 = vld [vmem:[#allocation4 + $0xda0] sm:$0xff]  ;;  %v863_v29 = vld [vmem:[#allocation4 + $0x78] sm:$0xff] }
 0x13b   :  { %3831 = vmatpush1.bf16.msra.mxu0 %v9072_v9  ;;  %4283 = vmatpush1.bf16.msra.mxu1 %v9074_v40  ;;  %v1273_v9 = vld [vmem:[#allocation4 + $0xd48] sm:$0xff] }
 0x13c   :  { %3832 = vmatprep.subr.bf16.mxu0 %v9081_v44  ;;  %4284 = vmatprep.subr.bf16.mxu1 %v9083_v49  ;;  %v1277_v40 = vld [vmem:[#allocation4 + $0xd68] sm:$0xff]  ;;  %v9130_v49 = vcombine.low %v1265_v33, %v1269_v36 }
 0x13e   :  { %3794 = vmatmul.mubr.bf16.gmra.mrb[28].mxu0 %v11711_v14  ;;  %4246 = vmatmul.mubr.bf16.gmra.mrb[28].mxu1 %v11711_v14  ;;  %v9096_v14 = vcombine.low %v1232_v4, %v1236_v53  ;;  %v1288_v4 = vld [vmem:[#allocation4 + $0xdc0] sm:$0xff] }
 0x13f   :  { %3833 = vmatpush1.bf16.msra.mxu0 %v9080_v52  ;;  %4285 = vmatpush1.bf16.msra.mxu1 %v9082_v51  ;;  %v1285_v52 = vld [vmem:[#allocation4 + $0xda8] sm:$0xff]  ;;  %v9139_v51 = vcombine.high %v1273_v9, %v1277_v40  ;;  %v1292_v53 = vld [vmem:[#allocation4 + $0xde0] sm:$0xff] }
 0x140   :  { %3834 = vmatprep.subr.bf16.mxu0 %v9089_v24  ;;  %4286 = vmatprep.subr.bf16.mxu1 %v9091_v60  ;;  %v9136_v24 = vcombine.low %v1272_v38, %v1276_v54  ;;  %v9138_v60 = vcombine.low %v1273_v9, %v1277_v40  ;;  %v878_v38 = vld [vmem:[#allocation4 + $0xf0] sm:$0xff]  ;;  %v875_v54 = vld [vmem:[#allocation4 + $0xd8] sm:$0xff] }
 0x141   :  { %3836 = vmatprep.mubr.bf16.mxu0 %v11746_v41  ;;  %4288 = vmatprep.mubr.bf16.mxu1 %v11746_v41  ;;  %v9104_v41 = vcombine.low %v1240_v21, %v1244_v3  ;;  %v9146_v3 = vcombine.low %v1281_v50, %v1285_v52 }
 0x143   :  { %3835 = vmatpush1.bf16.msra.mxu0 %v9088_v12  ;;  %4287 = vmatpush1.bf16.msra.mxu1 %v9090_v55  ;;  %v9147_v12 = vcombine.high %v1281_v50, %v1285_v52  ;;  %v890_v52 = vld [vmem:[#allocation4 + $0x150] sm:$0xff] }
 0x144   :  { %3917 = vmatprep.subr.bf16.mxu0 %v9097_v22  ;;  %4369 = vmatprep.subr.bf16.mxu1 %v9099_v7  ;;  %v759_v46 = vpop.permute.xlu0 %758  ;;  %v12002_v22 = vld [vmem:[#allocation4 + $0x10] sm:$0xff]  ;;  %v12006_v7 = vld [vmem:[#allocation4 + $0x18] sm:$0xff] }
 0x145   :  { %779 = vst.msk [vmem:[#allocation2 + $0x110] sm:$0xff] %vm774_vm1, %v759_v46  ;;  %v8719_v18 = vcombine.high %v12006_v7, %v12008_v8  ;;  %v883_v46 = vld [vmem:[#allocation4 + $0x118] sm:$0xff] }
 0x146   :  { %3837 = vmatmul.mubr.bf16.vlgmr.msra.gmra.mrb[0].mxu0 %v11748_v43  ;;  %4289 = vmatmul.mubr.bf16.vlgmr.msra.gmra.mrb[0].mxu1 %v11748_v43  ;;  %v9112_v43 = vcombine.low %v1248_v35, %v1252_v6  ;;  %788 = vst.msk [vmem:[#allocation2 + $0x110] sm:$0xff] %vm783_vm2, %v11176_v2  ;;  %v10938_v35 = vld [vmem:[#allocation2 + $0x108] sm:$0xff]  ;;  %v9152_v6 = vcombine.low %v1288_v4, %v1292_v53 }
 0x147   :  { %3918 = vmatpush1.bf16.msra.mxu0 %v9096_v14  ;;  %3846 = vmatprep.mubr.bf16.mxu0 %v11768_v57  ;;  %v755_v32 = vpop.permute.xlu1 %754  ;;  %v9155_v14 = vcombine.high %v1289_v0, %v1293_v62 }
 0x148   :  { %4298 = vmatprep.mubr.bf16.mxu1 %v11768_v57  ;;  %3919 = vmatprep.subr.bf16.mxu0 %v9105_v10  ;;  %777 = vst.msk [vmem:[#allocation2 + $0xa0] sm:$0xff] %vm774_vm1, %v755_v32  ;;  %v1264_v57 = vld [vmem:[#allocation4 + $0xd00] sm:$0xff]  ;;  %v9154_v10 = vcombine.low %v1289_v0, %v1293_v62  ;;  %v858_v32 = vld [vmem:[#allocation4 + $0x50] sm:$0xff] }
 0x149   :  { %4370 = vmatpush1.bf16.msra.mxu1 %v9098_v16  ;;  %786 = vst.msk [vmem:[#allocation2 + $0xa0] sm:$0xff] %vm783_vm2, %v11176_v2  ;;  %v9129_v20 = vcombine.high %v1264_v57, %v1268_v31  ;;  %v9128_v44 = vcombine.low %v1264_v57, %v1268_v31  ;;  %v8718_v57 = vcombine.low %v12006_v7, %v12008_v8  ;;  %v866_v31 = vld [vmem:[#allocation4 + $0x90] sm:$0xff] }
 0x14a   :  { %4371 = vmatprep.subr.bf16.mxu1 %v9107_v42  ;;  %v10939_v42 = vld [vmem:[#allocation2 + $0x100] sm:$0xff]  ;;  %v906_v8 = vld [vmem:[#allocation4 + $0x1d0] sm:$0xff] }
 0x14b   :  { %3920 = vmatpush1.bf16.msra.mxu0 %v9104_v41 }
 0x14c   :  { %3921 = vmatprep.subr.bf16.mxu0 %v9113_v23  ;;  %v757_v37 = vpop.permute.xlu1 %756  ;;  %v10941_v23 = vld [vmem:[#allocation2 + $0x138] sm:$0xff] }
 0x14d   :  { %4372 = vmatpush1.bf16.msra.mxu1 %v9106_v1  ;;  %778 = vst.msk [vmem:[#allocation2 + $0xd8] sm:$0xff] %vm774_vm1, %v757_v37  ;;  %v862_v1 = vld [vmem:[#allocation4 + $0x70] sm:$0xff]  ;;  %v8726_v37 = vcombine.low %v859_v27, %v863_v29 }
 0x14e   :  { %3847 = vmatmul.mubr.bf16.gmra.mrb[4].mxu0 %v11770_v59  ;;  %4373 = vmatprep.subr.bf16.mxu1 %v9115_v30  ;;  %787 = vst.msk [vmem:[#allocation2 + $0xd8] sm:$0xff] %vm783_vm2, %v11176_v2  ;;  %v798_v30 = vld [vmem:[#allocation2 + $0x30] sm:$0xff] }
 0x14f   :  { %4299 = vmatmul.mubr.bf16.gmra.mrb[4].mxu1 %v11770_v59  ;;  %3856 = vmatprep.mubr.bf16.mxu0 %v11796_v28  ;;  %v9131_v59 = vcombine.high %v1265_v33, %v1269_v36  ;;  %v871_v33 = vld [vmem:[#allocation4 + $0xb8] sm:$0xff]  ;;  %v8724_v36 = vcombine.low %v858_v32, %v862_v1 }
 0x150   :  { %4308 = vmatprep.mubr.bf16.mxu1 %v11796_v28  ;;  %3922 = vmatpush1.bf16.msra.mxu0 %v9112_v43  ;;  %v1280_v28 = vld [vmem:[#allocation4 + $0xd80] sm:$0xff] }
 0x151   :  { %3923 = vmatprep.subr.bf16.mxu0 %v9121_v26  ;;  %4374 = vmatpush1.bf16.msra.mxu1 %v9114_v39  ;;  %v9145_v56 = vcombine.high %v1280_v28, %v1284_v48  ;;  %v9144_v55 = vcombine.low %v1280_v28, %v1284_v48  ;;  %v870_v26 = vld [vmem:[#allocation4 + $0xb0] sm:$0xff]  ;;  %v867_v39 = vld [vmem:[#allocation4 + $0x98] sm:$0xff] }
 0x152   :  { %4375 = vmatprep.subr.bf16.mxu1 %v9123_v34  ;;  %v874_v34 = vld [vmem:[#allocation4 + $0xd0] sm:$0xff]  ;;  %v8735_v9 = vcombine.high %v867_v39, %v871_v33  ;;  %v8732_v40 = vcombine.low %v866_v31, %v870_v26 }
 0x153   :  { %v882_v28 = vld [vmem:[#allocation4 + $0x110] sm:$0xff]  ;;  %v8740_v50 = vcombine.low %v874_v34, %v878_v38 }
 0x154   :  { %3924 = vmatpush1.bf16.msra.mxu0 %v9120_v19  ;;  %v761_v21 = vpop.permute.xlu1 %760  ;;  %v8733_v19 = vcombine.high %v866_v31, %v870_v26  ;;  %v886_v48 = vld [vmem:[#allocation4 + $0x130] sm:$0xff] }
 0x155   :  { %3925 = vmatprep.subr.bf16.mxu0 %v9129_v20  ;;  %4376 = vmatpush1.bf16.msra.mxu1 %v9122_v47  ;;  %780 = vst.msk [vmem:[#allocation2 + $0x148] sm:$0xff] %vm774_vm1, %v761_v21  ;;  %v879_v20 = vld [vmem:[#allocation4 + $0xf8] sm:$0xff]  ;;  %v805_v47 = vld [vmem:[#allocation2 + $0x68] sm:$0xff]  ;;  %v8748_v62 = vcombine.low %v882_v28, %v886_v48  ;;  %v826_v31 = vld [vmem:[#allocation2 + $0x110] sm:$0xff] }
 0x156   :  { %3857 = vmatmul.mubr.bf16.gmra.mrb[8].mxu0 %v11799_v13  ;;  %4377 = vmatprep.subr.bf16.mxu1 %v9131_v59  ;;  %789 = vst.msk [vmem:[#allocation2 + $0x148] sm:$0xff] %vm783_vm2, %v11176_v2  ;;  %v8734_v59 = vcombine.low %v867_v39, %v871_v33  ;;  %v899_v21 = vld [vmem:[#allocation4 + $0x198] sm:$0xff] }
 0x157   :  { %4309 = vmatmul.mubr.bf16.gmra.mrb[8].mxu1 %v11799_v13  ;;  %3866 = vmatprep.mubr.bf16.mxu0 %v11822_v45  ;;  %v12004_v13 = vld [vmem:[#allocation4 + $0x30] sm:$0xff] }
 0x158   :  { %4318 = vmatprep.mubr.bf16.mxu1 %v11822_v45  ;;  %3926 = vmatpush1.bf16.msra.mxu0 %v9128_v44  ;;  %v9153_v45 = vcombine.high %v1288_v4, %v1292_v53  ;;  %v8717_v16 = vcombine.high %v12002_v22, %v12004_v13  ;;  %v8716_v43 = vcombine.low %v12002_v22, %v12004_v13  ;;  %v894_v4 = vld [vmem:[#allocation4 + $0x170] sm:$0xff]  ;;  %v891_v53 = vld [vmem:[#allocation4 + $0x158] sm:$0xff] }
 0x159   :  { %3927 = vmatprep.subr.bf16.mxu0 %v9137_v58  ;;  %4378 = vmatpush1.bf16.msra.mxu1 %v9130_v49  ;;  %v8741_v44 = vcombine.high %v874_v34, %v878_v38  ;;  %v8743_v58 = vcombine.high %v875_v54, %v879_v20  ;;  %v887_v49 = vld [vmem:[#allocation4 + $0x138] sm:$0xff]  ;;  %v898_v22 = vld [vmem:[#allocation4 + $0x190] sm:$0xff]  ;;  %v8756_v7 = vcombine.low %v890_v52, %v894_v4 }
 0x15a   :  { %4379 = vmatprep.subr.bf16.mxu1 %v9139_v51  ;;  %v8742_v51 = vcombine.low %v875_v54, %v879_v20  ;;  %v8751_v0 = vcombine.high %v883_v46, %v887_v49  ;;  %v902_v13 = vld [vmem:[#allocation4 + $0x1b0] sm:$0xff]  ;;  %v935_v38 = vld [vmem:[#allocation4 + $0x2b8] sm:$0xff] }
 0x15b   :  { %v934_v34 = vld [vmem:[#allocation4 + $0x2b0] sm:$0xff] }
 0x15c   :  { %3928 = vmatpush1.bf16.msra.mxu0 %v9136_v24  ;;  %v765_v41 = vpop.permute.xlu1 %764  ;;  %v8749_v24 = vcombine.high %v882_v28, %v886_v48  ;;  %v938_v20 = vld [vmem:[#allocation4 + $0x2d0] sm:$0xff] }
 0x15d   :  { %3929 = vmatprep.subr.bf16.mxu0 %v9145_v56  ;;  %4380 = vmatpush1.bf16.msra.mxu1 %v9138_v60  ;;  %782 = vst.msk [vmem:[#allocation2 + $0x1b8] sm:$0xff] %vm774_vm1, %v765_v41  ;;  %v895_v56 = vld [vmem:[#allocation4 + $0x178] sm:$0xff]  ;;  %v914_v41 = vld [vmem:[#allocation4 + $0x210] sm:$0xff]  ;;  %v833_v28 = vld [vmem:[#allocation2 + $0x148] sm:$0xff] }
 0x15e   :  { %3867 = vmatmul.mubr.bf16.gmra.mrb[12].mxu0 %v10937_v11  ;;  %4381 = vmatprep.subr.bf16.mxu1 %v9147_v12  ;;  %791 = vst.msk [vmem:[#allocation2 + $0x1b8] sm:$0xff] %vm783_vm2, %v11176_v2  ;;  %v812_v60 = vld [vmem:[#allocation2 + $0xa0] sm:$0xff]  ;;  %v8750_v12 = vcombine.low %v883_v46, %v887_v49 }
 0x15f   :  { %4319 = vmatmul.mubr.bf16.gmra.mrb[12].mxu1 %v10937_v11  ;;  %3876 = vmatprep.mubr.bf16.mxu0 %v10938_v35  ;;  %v763_v15 = vpop.permute.xlu0 %762  ;;  %v8758_v11 = vcombine.low %v891_v53, %v895_v56 }
 0x160   :  { %4328 = vmatprep.mubr.bf16.mxu1 %v10938_v35  ;;  %3930 = vmatpush1.bf16.msra.mxu0 %v9144_v55  ;;  %781 = vst.msk [vmem:[#allocation2 + $0x180] sm:$0xff] %vm774_vm1, %v763_v15  ;;  %v8757_v55 = vcombine.high %v890_v52, %v894_v4  ;;  %v910_v35 = vld [vmem:[#allocation4 + $0x1f0] sm:$0xff]  ;;  %v911_v15 = vld [vmem:[#allocation4 + $0x1f8] sm:$0xff] }
 0x161   :  { %3931 = vmatprep.subr.bf16.mxu0 %v9153_v45  ;;  %4382 = vmatpush1.bf16.msra.mxu1 %v9146_v3  ;;  %790 = vst.msk [vmem:[#allocation2 + $0x180] sm:$0xff] %vm783_vm2, %v11176_v2  ;;  %v8759_v45 = vcombine.high %v891_v53, %v895_v56  ;;  %v903_v3 = vld [vmem:[#allocation4 + $0x1b8] sm:$0xff]  ;;  %v950_v52 = vld [vmem:[#allocation4 + $0x330] sm:$0xff] }
 0x162   :  { %4383 = vmatprep.subr.bf16.mxu1 %v9155_v14  ;;  %v8765_v14 = vcombine.high %v898_v22, %v902_v13  ;;  %v951_v4 = vld [vmem:[#allocation4 + $0x338] sm:$0xff]  ;;  %v954_v56 = vld [vmem:[#allocation4 + $0x350] sm:$0xff] }
 0x164   :  { %3932 = vmatpush1.bf16.msra.mxu0 %v9152_v6  ;;  %v907_v6 = vld [vmem:[#allocation4 + $0x1d8] sm:$0xff] }
 0x165   :  { %4384 = vmatpush1.bf16.msra.mxu1 %v9154_v10  ;;  %4482 = vmatprep.subr.bf16.mxu0 %v8717_v16  ;;  %v819_v10 = vld [vmem:[#allocation2 + $0xd8] sm:$0xff]  ;;  %v8767_v16 = vcombine.high %v899_v21, %v903_v3 }
 0x166   :  { %3877 = vmatmul.mubr.bf16.gmra.mrb[16].mxu0 %v10939_v42  ;;  %4934 = vmatprep.subr.bf16.mxu1 %v8719_v18  ;;  %v8764_v18 = vcombine.low %v898_v22, %v902_v13 }
 0x167   :  { %4329 = vmatmul.mubr.bf16.gmra.mrb[16].mxu1 %v10939_v42  ;;  %3886 = vmatprep.mubr.bf16.mxu0 %v10940_v17  ;;  %v8766_v42 = vcombine.low %v899_v21, %v903_v3 }
 0x168   :  { %4338 = vmatprep.mubr.bf16.mxu1 %v10940_v17  ;;  %v8773_v17 = vcombine.high %v906_v8, %v910_v35  ;;  %v840_v22 = vld [vmem:[#allocation2 + $0x180] sm:$0xff] }
 0x16e   :  { %3887 = vmatmul.mubr.bf16.gmra.mrb[20].mxu0 %v10941_v23 }
 0x16f   :  { %4339 = vmatmul.mubr.bf16.gmra.mrb[20].mxu1 %v10941_v23  ;;  %3896 = vmatprep.mubr.bf16.mxu0 %v10942_v25  ;;  %v918_v23 = vld [vmem:[#allocation4 + $0x230] sm:$0xff] }
 0x170   :  { %4348 = vmatprep.mubr.bf16.mxu1 %v10942_v25  ;;  %v915_v25 = vld [vmem:[#allocation4 + $0x218] sm:$0xff]  ;;  %v8780_v39 = vcombine.low %v914_v41, %v918_v23 }
 0x176   :  { %3897 = vmatmul.mubr.bf16.gmra.mrb[24].mxu0 %v10943_v5 }
 0x177   :  { %4349 = vmatmul.mubr.bf16.gmra.mrb[24].mxu1 %v10943_v5  ;;  %3906 = vmatprep.mubr.bf16.mxu0 %v11896_v61  ;;  %v8775_v5 = vcombine.high %v907_v6, %v911_v15 }
 0x178   :  { %4358 = vmatprep.mubr.bf16.mxu1 %v11896_v61  ;;  %v8725_v61 = vcombine.high %v858_v32, %v862_v1  ;;  %v919_v32 = vld [vmem:[#allocation4 + $0x238] sm:$0xff]  ;;  %v8772_v1 = vcombine.low %v906_v8, %v910_v35  ;;  %v966_v8 = vld [vmem:[#allocation4 + $0x3b0] sm:$0xff] }
 0x179   :  { %v8783_v26 = vcombine.high %v915_v25, %v919_v32  ;;  %v967_v35 = vld [vmem:[#allocation4 + $0x3b8] sm:$0xff] }
 0x17e   :  { %3907 = vmatmul.mubr.bf16.gmra.mrb[28].mxu0 %v11898_v63 }
 0x17f   :  { %4359 = vmatmul.mubr.bf16.gmra.mrb[28].mxu1 %v11898_v63  ;;  %3949 = vmatprep.mubr.bf16.mxu0 %v11176_v2  ;;  %v8727_v63 = vcombine.high %v859_v27, %v863_v29  ;;  %v922_v27 = vld [vmem:[#allocation4 + $0x250] sm:$0xff]  ;;  %v8774_v29 = vcombine.low %v907_v6, %v911_v15 }
 0x180   :  { %4401 = vmatprep.mubr.bf16.mxu1 %v11176_v2  ;;  %v970_v15 = vld [vmem:[#allocation4 + $0x3d0] sm:$0xff] }
 0x186   :  { %3950 = vmatmul.mubr.bf16.vlgmr.msra.gmra.mrb[0].mxu0 %v798_v30 }
 0x187   :  { %4402 = vmatmul.mubr.bf16.vlgmr.msra.gmra.mrb[0].mxu1 %v798_v30  ;;  %4483 = vmatpush1.bf16.msra.mxu0 %v8716_v43  ;;  %v8781_v30 = vcombine.high %v914_v41, %v918_v23  ;;  %v926_v43 = vld [vmem:[#allocation4 + $0x270] sm:$0xff] }
 0x188   :  { %4935 = vmatpush1.bf16.msra.mxu1 %v8718_v57  ;;  %4484 = vmatprep.subr.bf16.mxu0 %v8725_v61  ;;  %v923_v57 = vld [vmem:[#allocation4 + $0x258] sm:$0xff]  ;;  %v8789_v33 = vcombine.high %v922_v27, %v926_v43  ;;  %v8788_v54 = vcombine.low %v922_v27, %v926_v43  ;;  %v982_v27 = vld [vmem:[#allocation4 + $0x430] sm:$0xff] }
 0x189   :  { %4936 = vmatprep.subr.bf16.mxu1 %v8727_v63  ;;  %3959 = vmatprep.mubr.bf16.mxu0 %v11176_v2  ;;  %v927_v61 = vld [vmem:[#allocation4 + $0x278] sm:$0xff]  ;;  %v8782_v63 = vcombine.low %v915_v25, %v919_v32 }
 0x18a   :  { %4411 = vmatprep.mubr.bf16.mxu1 %v11176_v2  ;;  %v847_v41 = vld [vmem:[#allocation2 + $0x1b8] sm:$0xff] }
 0x18b   :  { %4485 = vmatpush1.bf16.msra.mxu0 %v8724_v36  ;;  %v930_v36 = vld [vmem:[#allocation4 + $0x290] sm:$0xff]  ;;  %v983_v43 = vld [vmem:[#allocation4 + $0x438] sm:$0xff] }
 0x18c   :  { %4937 = vmatpush1.bf16.msra.mxu1 %v8726_v37  ;;  %4486 = vmatprep.subr.bf16.mxu0 %v8733_v19  ;;  %v931_v37 = vld [vmem:[#allocation4 + $0x298] sm:$0xff]  ;;  %v8791_v19 = vcombine.high %v923_v57, %v927_v61  ;;  %v8796_v46 = vcombine.low %v930_v36, %v934_v34 }
 0x18d   :  { %4938 = vmatprep.subr.bf16.mxu1 %v8735_v9  ;;  %v8797_v9 = vcombine.high %v930_v36, %v934_v34  ;;  %v8799_v48 = vcombine.high %v931_v37, %v935_v38  ;;  %v991_v34 = vld [vmem:[#allocation4 + $0x478] sm:$0xff] }
 0x18e   :  { %3960 = vmatmul.mubr.bf16.gmra.mrb[4].mxu0 %v805_v47 }
 0x18f   :  { %4412 = vmatmul.mubr.bf16.gmra.mrb[4].mxu1 %v805_v47  ;;  %4487 = vmatpush1.bf16.msra.mxu0 %v8732_v40  ;;  %v8790_v47 = vcombine.low %v923_v57, %v927_v61  ;;  %v942_v40 = vld [vmem:[#allocation4 + $0x2f0] sm:$0xff] }
 0x190   :  { %4939 = vmatpush1.bf16.msra.mxu1 %v8734_v59  ;;  %4488 = vmatprep.subr.bf16.mxu0 %v8741_v44  ;;  %v939_v59 = vld [vmem:[#allocation4 + $0x2d8] sm:$0xff]  ;;  %v8805_v49 = vcombine.high %v938_v20, %v942_v40  ;;  %v8804_v53 = vcombine.low %v938_v20, %v942_v40 }
 0x191   :  { %4940 = vmatprep.subr.bf16.mxu1 %v8743_v58  ;;  %3969 = vmatprep.mubr.bf16.mxu0 %v11176_v2  ;;  %v943_v44 = vld [vmem:[#allocation4 + $0x2f8] sm:$0xff]  ;;  %v8798_v58 = vcombine.low %v931_v37, %v935_v38  ;;  %v998_v38 = vld [vmem:[#allocation4 + $0x4b0] sm:$0xff] }
 0x192   :  { %4421 = vmatprep.mubr.bf16.mxu1 %v11176_v2  ;;  %v995_v40 = vld [vmem:[#allocation4 + $0x498] sm:$0xff] }
 0x193   :  { %4489 = vmatpush1.bf16.msra.mxu0 %v8740_v50  ;;  %v946_v50 = vld [vmem:[#allocation4 + $0x310] sm:$0xff] }
 0x194   :  { %4941 = vmatpush1.bf16.msra.mxu1 %v8742_v51  ;;  %4490 = vmatprep.subr.bf16.mxu0 %v8749_v24  ;;  %v947_v51 = vld [vmem:[#allocation4 + $0x318] sm:$0xff]  ;;  %v8807_v24 = vcombine.high %v939_v59, %v943_v44  ;;  %v8812_v21 = vcombine.low %v946_v50, %v950_v52 }
 0x195   :  { %4942 = vmatprep.subr.bf16.mxu1 %v8751_v0  ;;  %v8813_v0 = vcombine.high %v946_v50, %v950_v52  ;;  %v8815_v13 = vcombine.high %v947_v51, %v951_v4  ;;  %v1007_v50 = vld [vmem:[#allocation4 + $0x4f8] sm:$0xff] }
 0x196   :  { %3970 = vmatmul.mubr.bf16.gmra.mrb[8].mxu0 %v812_v60  ;;  %v10946_v52 = vld [vmem:[#allocation2 + $0x40] sm:$0xff] }
 0x197   :  { %4422 = vmatmul.mubr.bf16.gmra.mrb[8].mxu1 %v812_v60  ;;  %4491 = vmatpush1.bf16.msra.mxu0 %v8748_v62  ;;  %v8806_v60 = vcombine.low %v939_v59, %v943_v44  ;;  %v958_v62 = vld [vmem:[#allocation4 + $0x370] sm:$0xff]  ;;  %v999_v59 = vld [vmem:[#allocation4 + $0x4b8] sm:$0xff] }
 0x198   :  { %4943 = vmatpush1.bf16.msra.mxu1 %v8750_v12  ;;  %4492 = vmatprep.subr.bf16.mxu0 %v8757_v55  ;;  %v955_v12 = vld [vmem:[#allocation4 + $0x358] sm:$0xff]  ;;  %v8821_v3 = vcombine.high %v954_v56, %v958_v62  ;;  %v8820_v6 = vcombine.low %v954_v56, %v958_v62  ;;  %v8862_v56 = vcombine.low %v995_v40, %v999_v59 }
 0x199   :  { %4944 = vmatprep.subr.bf16.mxu1 %v8759_v45  ;;  %3979 = vmatprep.mubr.bf16.mxu0 %v11176_v2  ;;  %v959_v55 = vld [vmem:[#allocation4 + $0x378] sm:$0xff]  ;;  %v8814_v45 = vcombine.low %v947_v51, %v951_v4  ;;  %v8863_v51 = vcombine.high %v995_v40, %v999_v59  ;;  %v1010_v4 = vld [vmem:[#allocation4 + $0x510] sm:$0xff] }
 0x19a   :  { %4431 = vmatprep.mubr.bf16.mxu1 %v11176_v2  ;;  %v10947_v62 = vld [vmem:[#allocation2 + $0x38] sm:$0xff] }
 0x19b   :  { %4493 = vmatpush1.bf16.msra.mxu0 %v8756_v7  ;;  %v962_v7 = vld [vmem:[#allocation4 + $0x390] sm:$0xff]  ;;  %v1051_v40 = vld [vmem:[#allocation4 + $0x658] sm:$0xff] }
 0x19c   :  { %4945 = vmatpush1.bf16.msra.mxu1 %v8758_v11  ;;  %4494 = vmatprep.subr.bf16.mxu0 %v8765_v14  ;;  %v963_v11 = vld [vmem:[#allocation4 + $0x398] sm:$0xff]  ;;  %v8823_v14 = vcombine.high %v955_v12, %v959_v55  ;;  %v8828_v25 = vcombine.low %v962_v7, %v966_v8 }
 0x19d   :  { %4946 = vmatprep.subr.bf16.mxu1 %v8767_v16  ;;  %v8829_v16 = vcombine.high %v962_v7, %v966_v8  ;;  %v8831_v23 = vcombine.high %v963_v11, %v967_v35  ;;  %v1022_v8 = vld [vmem:[#allocation4 + $0x570] sm:$0xff]  ;;  %v1055_v59 = vld [vmem:[#allocation4 + $0x678] sm:$0xff] }
 0x19e   :  { %3980 = vmatmul.mubr.bf16.gmra.mrb[12].mxu0 %v819_v10 }
 0x19f   :  { %4432 = vmatmul.mubr.bf16.gmra.mrb[12].mxu1 %v819_v10  ;;  %4495 = vmatpush1.bf16.msra.mxu0 %v8764_v18  ;;  %v8822_v10 = vcombine.low %v955_v12, %v959_v55  ;;  %v974_v18 = vld [vmem:[#allocation4 + $0x3f0] sm:$0xff]  ;;  %v1011_v12 = vld [vmem:[#allocation4 + $0x518] sm:$0xff] }
 0x1a0   :  { %4947 = vmatpush1.bf16.msra.mxu1 %v8766_v42  ;;  %4496 = vmatprep.subr.bf16.mxu0 %v8773_v17  ;;  %v971_v42 = vld [vmem:[#allocation4 + $0x3d8] sm:$0xff]  ;;  %v8837_v32 = vcombine.high %v970_v15, %v974_v18  ;;  %v8836_v57 = vcombine.low %v970_v15, %v974_v18  ;;  %v1030_v18 = vld [vmem:[#allocation4 + $0x5b0] sm:$0xff] }
 0x1a1   :  { %4948 = vmatprep.subr.bf16.mxu1 %v8775_v5  ;;  %3989 = vmatprep.mubr.bf16.mxu0 %v11176_v2  ;;  %v975_v17 = vld [vmem:[#allocation4 + $0x3f8] sm:$0xff]  ;;  %v8830_v5 = vcombine.low %v963_v11, %v967_v35 }
 0x1a2   :  { %4441 = vmatprep.mubr.bf16.mxu1 %v11176_v2  ;;  %v8838_v61 = vcombine.low %v971_v42, %v975_v17  ;;  %v1015_v55 = vld [vmem:[#allocation4 + $0x538] sm:$0xff] }
 0x1a3   :  { %4497 = vmatpush1.bf16.msra.mxu0 %v8772_v1  ;;  %v978_v1 = vld [vmem:[#allocation4 + $0x410] sm:$0xff]  ;;  %v8879_v7 = vcombine.high %v1011_v12, %v1015_v55  ;;  %v1019_v11 = vld [vmem:[#allocation4 + $0x558] sm:$0xff] }
 0x1a4   :  { %4949 = vmatpush1.bf16.msra.mxu1 %v8774_v29  ;;  %4498 = vmatprep.subr.bf16.mxu0 %v8781_v30  ;;  %v979_v29 = vld [vmem:[#allocation4 + $0x418] sm:$0xff]  ;;  %v8839_v30 = vcombine.high %v971_v42, %v975_v17  ;;  %v8844_v37 = vcombine.low %v978_v1, %v982_v27  ;;  %v10949_v42 = vld [vmem:[#allocation2 + $0x70] sm:$0xff] }
 0x1a5   :  { %4950 = vmatprep.subr.bf16.mxu1 %v8783_v26  ;;  %v986_v26 = vld [vmem:[#allocation4 + $0x450] sm:$0xff]  ;;  %v8847_v36 = vcombine.high %v979_v29, %v983_v43  ;;  %v1027_v17 = vld [vmem:[#allocation4 + $0x598] sm:$0xff] }
 0x1a6   :  { %3990 = vmatmul.mubr.bf16.gmra.mrb[16].mxu0 %v826_v31 }
 0x1a7   :  { %4442 = vmatmul.mubr.bf16.gmra.mrb[16].mxu1 %v826_v31  ;;  %4499 = vmatpush1.bf16.msra.mxu0 %v8780_v39  ;;  %v8845_v31 = vcombine.high %v978_v1, %v982_v27  ;;  %v990_v39 = vld [vmem:[#allocation4 + $0x470] sm:$0xff] }
 0x1a8   :  { %4951 = vmatpush1.bf16.msra.mxu1 %v8782_v63  ;;  %4500 = vmatprep.subr.bf16.mxu0 %v8789_v33  ;;  %v987_v63 = vld [vmem:[#allocation4 + $0x458] sm:$0xff]  ;;  %v10944_v33 = vld [vmem:[#allocation2 + $0x8] sm:$0xff]  ;;  %v8853_v20 = vcombine.high %v986_v26, %v990_v39  ;;  %v8852_v44 = vcombine.low %v986_v26, %v990_v39  ;;  %v1034_v27 = vld [vmem:[#allocation4 + $0x5d0] sm:$0xff] }
 0x1a9   :  { %4952 = vmatprep.subr.bf16.mxu1 %v8791_v19  ;;  %3999 = vmatprep.mubr.bf16.mxu0 %v11176_v2  ;;  %v994_v19 = vld [vmem:[#allocation4 + $0x490] sm:$0xff] }
 0x1aa   :  { %4451 = vmatprep.mubr.bf16.mxu1 %v11176_v2  ;;  %v1042_v39 = vld [vmem:[#allocation4 + $0x610] sm:$0xff] }
 0x1ab   :  { %4501 = vmatpush1.bf16.msra.mxu0 %v8788_v54  ;;  %v8846_v54 = vcombine.low %v979_v29, %v983_v43  ;;  %v1038_v29 = vld [vmem:[#allocation4 + $0x5f0] sm:$0xff]  ;;  %v1039_v43 = vld [vmem:[#allocation4 + $0x5f8] sm:$0xff] }
 0x1ac   :  { %4953 = vmatpush1.bf16.msra.mxu1 %v8790_v47  ;;  %4502 = vmatprep.subr.bf16.mxu0 %v8797_v9  ;;  %v8855_v47 = vcombine.high %v987_v63, %v991_v34  ;;  %v10945_v9 = vld [vmem:[#allocation2] sm:$0xff] }
 0x1ad   :  { %4954 = vmatprep.subr.bf16.mxu1 %v8799_v48  ;;  %v1006_v48 = vld [vmem:[#allocation4 + $0x4f0] sm:$0xff] }
 0x1ae   :  { %4000 = vmatmul.mubr.bf16.gmra.mrb[20].mxu0 %v833_v28 }
 0x1af   :  { %4452 = vmatmul.mubr.bf16.gmra.mrb[20].mxu1 %v833_v28  ;;  %4503 = vmatpush1.bf16.msra.mxu0 %v8796_v46  ;;  %v1002_v28 = vld [vmem:[#allocation4 + $0x4d0] sm:$0xff]  ;;  %v8854_v46 = vcombine.low %v987_v63, %v991_v34  ;;  %v1047_v34 = vld [vmem:[#allocation4 + $0x638] sm:$0xff] }
 0x1b0   :  { %4955 = vmatpush1.bf16.msra.mxu1 %v8798_v58  ;;  %4504 = vmatprep.subr.bf16.mxu0 %v8805_v49  ;;  %v8861_v58 = vcombine.high %v994_v19, %v998_v38  ;;  %v1003_v49 = vld [vmem:[#allocation4 + $0x4d8] sm:$0xff]  ;;  %v1046_v63 = vld [vmem:[#allocation4 + $0x630] sm:$0xff] }
 0x1b1   :  { %4956 = vmatprep.subr.bf16.mxu1 %v8807_v24  ;;  %4009 = vmatprep.mubr.bf16.mxu0 %v11176_v2  ;;  %v8860_v24 = vcombine.low %v994_v19, %v998_v38  ;;  %v8909_v38 = vcombine.high %v1042_v39, %v1046_v63 }
 0x1b2   :  { %4461 = vmatprep.mubr.bf16.mxu1 %v11176_v2 }
 0x1b3   :  { %4505 = vmatpush1.bf16.msra.mxu0 %v8804_v53  ;;  %v1014_v53 = vld [vmem:[#allocation4 + $0x530] sm:$0xff] }
 0x1b4   :  { %4957 = vmatpush1.bf16.msra.mxu1 %v8806_v60  ;;  %4506 = vmatprep.subr.bf16.mxu0 %v8813_v0  ;;  %v8869_v60 = vcombine.high %v1002_v28, %v1006_v48  ;;  %v8871_v0 = vcombine.high %v1003_v49, %v1007_v50  ;;  %v8876_v35 = vcombine.low %v1010_v4, %v1014_v53 }
 0x1b5   :  { %4958 = vmatprep.subr.bf16.mxu1 %v8815_v13  ;;  %v1018_v13 = vld [vmem:[#allocation4 + $0x550] sm:$0xff] }
 0x1b6   :  { %4010 = vmatmul.mubr.bf16.gmra.mrb[24].mxu0 %v840_v22  ;;  %v8885_v15 = vcombine.high %v1018_v13, %v1022_v8 }
 0x1b7   :  { %4462 = vmatmul.mubr.bf16.gmra.mrb[24].mxu1 %v840_v22  ;;  %4507 = vmatpush1.bf16.msra.mxu0 %v8812_v21  ;;  %v8868_v22 = vcombine.low %v1002_v28, %v1006_v48  ;;  %v8870_v21 = vcombine.low %v1003_v49, %v1007_v50  ;;  %v1062_v49 = vld [vmem:[#allocation4 + $0x6b0] sm:$0xff]  ;;  %v10953_v50 = vld [vmem:[#allocation2 + $0xe0] sm:$0xff] }
 0x1b8   :  { %4959 = vmatpush1.bf16.msra.mxu1 %v8814_v45  ;;  %4508 = vmatprep.subr.bf16.mxu0 %v8821_v3  ;;  %v8877_v45 = vcombine.high %v1010_v4, %v1014_v53  ;;  %v10948_v3 = vld [vmem:[#allocation2 + $0x78] sm:$0xff]  ;;  %v8918_v4 = vcombine.low %v1051_v40, %v1055_v59 }
 0x1b9   :  { %4960 = vmatprep.subr.bf16.mxu1 %v8823_v14  ;;  %4019 = vmatprep.mubr.bf16.mxu0 %v11176_v2  ;;  %v1023_v14 = vld [vmem:[#allocation4 + $0x578] sm:$0xff] }
 0x1ba   :  { %4471 = vmatprep.mubr.bf16.mxu1 %v11176_v2 }
 0x1bb   :  { %4509 = vmatpush1.bf16.msra.mxu0 %v8820_v6  ;;  %v8878_v6 = vcombine.low %v1011_v12, %v1015_v55  ;;  %v1067_v12 = vld [vmem:[#allocation4 + $0x6d8] sm:$0xff] }
 0x1bc   :  { %4961 = vmatpush1.bf16.msra.mxu1 %v8822_v10  ;;  %4510 = vmatprep.subr.bf16.mxu0 %v8829_v16  ;;  %v8887_v10 = vcombine.high %v1019_v11, %v1023_v14  ;;  %v1026_v16 = vld [vmem:[#allocation4 + $0x590] sm:$0xff]  ;;  %v1071_v55 = vld [vmem:[#allocation4 + $0x6f8] sm:$0xff] }
 0x1bd   :  { %4962 = vmatprep.subr.bf16.mxu1 %v8831_v23  ;;  %v8884_v23 = vcombine.low %v1018_v13, %v1022_v8  ;;  %v10955_v8 = vld [vmem:[#allocation2 + $0x118] sm:$0xff] }
 0x1be   :  { %4020 = vmatmul.mubr.bf16.gmra.mrb[28].mxu0 %v847_v41 }
 0x1bf   :  { %4472 = vmatmul.mubr.bf16.gmra.mrb[28].mxu1 %v847_v41  ;;  %4511 = vmatpush1.bf16.msra.mxu0 %v8828_v25  ;;  %v1031_v41 = vld [vmem:[#allocation4 + $0x5b8] sm:$0xff]  ;;  %v8886_v25 = vcombine.low %v1019_v11, %v1023_v14 }
 0x1c0   :  { %4963 = vmatpush1.bf16.msra.mxu1 %v8830_v5  ;;  %4512 = vmatprep.subr.bf16.mxu0 %v8837_v32  ;;  %v8893_v5 = vcombine.high %v1026_v16, %v1030_v18  ;;  %v10950_v32 = vld [vmem:[#allocation2 + $0xb0] sm:$0xff]  ;;  %v8895_v1 = vcombine.high %v1027_v17, %v1031_v41  ;;  %v1075_v11 = vld [vmem:[#allocation4 + $0x718] sm:$0xff] }
 0x1c1   :  { %4964 = vmatprep.subr.bf16.mxu1 %v8839_v30  ;;  %4514 = vmatprep.mubr.bf16.mxu0 %v10944_v33  ;;  %v1035_v30 = vld [vmem:[#allocation4 + $0x5d8] sm:$0xff] }
 0x1c2   :  { %4966 = vmatprep.mubr.bf16.mxu1 %v10944_v33  ;;  %v8903_v26 = vcombine.high %v1035_v30, %v1039_v43  ;;  %v10951_v33 = vld [vmem:[#allocation2 + $0xa8] sm:$0xff]  ;;  %v8902_v19 = vcombine.low %v1035_v30, %v1039_v43  ;;  %v1079_v14 = vld [vmem:[#allocation4 + $0x738] sm:$0xff] }
 0x1c3   :  { %4513 = vmatpush1.bf16.msra.mxu0 %v8836_v57  ;;  %v8892_v57 = vcombine.low %v1026_v16, %v1030_v18  ;;  %v8943_v16 = vcombine.high %v1075_v11, %v1079_v14  ;;  %v1082_v18 = vld [vmem:[#allocation4 + $0x750] sm:$0xff]  ;;  %v1091_v30 = vld [vmem:[#allocation4 + $0x798] sm:$0xff] }
 0x1c4   :  { %4965 = vmatpush1.bf16.msra.mxu1 %v8838_v61  ;;  %4595 = vmatprep.subr.bf16.mxu0 %v8845_v31  ;;  %v8894_v61 = vcombine.low %v1027_v17, %v1031_v41  ;;  %v8901_v31 = vcombine.high %v1034_v27, %v1038_v29  ;;  %v1083_v17 = vld [vmem:[#allocation4 + $0x758] sm:$0xff] }
 0x1c5   :  { %5047 = vmatprep.subr.bf16.mxu1 %v8847_v36  ;;  %v1043_v36 = vld [vmem:[#allocation4 + $0x618] sm:$0xff] }
 0x1c6   :  { %4515 = vmatmul.mubr.bf16.vlgmr.msra.gmra.mrb[32].mxu0 %v10945_v9  ;;  %v8910_v28 = vcombine.low %v1043_v36, %v1047_v34  ;;  %v1087_v41 = vld [vmem:[#allocation4 + $0x778] sm:$0xff] }
 0x1c7   :  { %4967 = vmatmul.mubr.bf16.vlgmr.msra.gmra.mrb[32].mxu1 %v10945_v9  ;;  %4596 = vmatpush1.bf16.msra.mxu0 %v8844_v37  ;;  %v8900_v37 = vcombine.low %v1034_v27, %v1038_v29  ;;  %v1054_v9 = vld [vmem:[#allocation4 + $0x670] sm:$0xff]  ;;  %v1095_v43 = vld [vmem:[#allocation4 + $0x7b8] sm:$0xff] }
 0x1c8   :  { %5048 = vmatpush1.bf16.msra.mxu1 %v8846_v54  ;;  %4597 = vmatprep.subr.bf16.mxu0 %v8853_v20  ;;  %v10952_v54 = vld [vmem:[#allocation2 + $0xe8] sm:$0xff]  ;;  %v8911_v20 = vcombine.high %v1043_v36, %v1047_v34  ;;  %v1094_v27 = vld [vmem:[#allocation4 + $0x7b0] sm:$0xff]  ;;  %v1099_v36 = vld [vmem:[#allocation4 + $0x7d8] sm:$0xff] }
 0x1c9   :  { %5049 = vmatprep.subr.bf16.mxu1 %v8855_v47  ;;  %4524 = vmatprep.mubr.bf16.mxu0 %v10946_v52  ;;  %v1050_v47 = vld [vmem:[#allocation4 + $0x650] sm:$0xff]  ;;  %v1103_v34 = vld [vmem:[#allocation4 + $0x7f8] sm:$0xff] }
 0x1ca   :  { %4976 = vmatprep.mubr.bf16.mxu1 %v10946_v52  ;;  %v8917_v48 = vcombine.high %v1050_v47, %v1054_v9  ;;  %v1059_v52 = vld [vmem:[#allocation4 + $0x698] sm:$0xff]  ;;  %v10957_v29 = vld [vmem:[#allocation2 + $0x150] sm:$0xff] }
 0x1cb   :  { %4598 = vmatpush1.bf16.msra.mxu0 %v8852_v44  ;;  %v8908_v44 = vcombine.low %v1042_v39, %v1046_v63  ;;  %v8959_v39 = vcombine.high %v1091_v30, %v1095_v43  ;;  %v1098_v63 = vld [vmem:[#allocation4 + $0x7d0] sm:$0xff] }
 0x1cc   :  { %5050 = vmatpush1.bf16.msra.mxu1 %v8854_v46  ;;  %4599 = vmatprep.subr.bf16.mxu0 %v8861_v58  ;;  %v8919_v46 = vcombine.high %v1051_v40, %v1055_v59  ;;  %v1058_v58 = vld [vmem:[#allocation4 + $0x690] sm:$0xff]  ;;  %v1107_v40 = vld [vmem:[#allocation4 + $0x818] sm:$0xff] }
 0x1cd   :  { %5051 = vmatprep.subr.bf16.mxu1 %v8863_v51  ;;  %v1063_v51 = vld [vmem:[#allocation4 + $0x6b8] sm:$0xff]  ;;  %v8925_v53 = vcombine.high %v1058_v58, %v1062_v49 }
 0x1ce   :  { %4525 = vmatmul.mubr.bf16.gmra.mrb[36].mxu0 %v10947_v62  ;;  %v8926_v13 = vcombine.low %v1059_v52, %v1063_v51  ;;  %v1111_v59 = vld [vmem:[#allocation4 + $0x838] sm:$0xff] }
 0x1cf   :  { %4977 = vmatmul.mubr.bf16.gmra.mrb[36].mxu1 %v10947_v62  ;;  %4600 = vmatpush1.bf16.msra.mxu0 %v8860_v24  ;;  %v8916_v24 = vcombine.low %v1050_v47, %v1054_v9  ;;  %v1070_v62 = vld [vmem:[#allocation4 + $0x6f0] sm:$0xff]  ;;  %v10959_v9 = vld [vmem:[#allocation2 + $0x188] sm:$0xff] }
 0x1d0   :  { %5052 = vmatpush1.bf16.msra.mxu1 %v8862_v56  ;;  %4601 = vmatprep.subr.bf16.mxu0 %v8869_v60  ;;  %v10954_v56 = vld [vmem:[#allocation2 + $0x120] sm:$0xff]  ;;  %v8927_v60 = vcombine.high %v1059_v52, %v1063_v51  ;;  %v1110_v47 = vld [vmem:[#allocation4 + $0x830] sm:$0xff] }
 0x1d1   :  { %5053 = vmatprep.subr.bf16.mxu1 %v8871_v0  ;;  %4534 = vmatprep.mubr.bf16.mxu0 %v10948_v3  ;;  %v1066_v0 = vld [vmem:[#allocation4 + $0x6d0] sm:$0xff]  ;;  %v1115_v52 = vld [vmem:[#allocation4 + $0x858] sm:$0xff] }
 0x1d2   :  { %4986 = vmatprep.mubr.bf16.mxu1 %v10948_v3  ;;  %v1074_v3 = vld [vmem:[#allocation4 + $0x710] sm:$0xff]  ;;  %v1119_v51 = vld [vmem:[#allocation4 + $0x878] sm:$0xff] }
 0x1d3   :  { %4602 = vmatpush1.bf16.msra.mxu0 %v8868_v22  ;;  %v8924_v22 = vcombine.low %v1058_v58, %v1062_v49  ;;  %v8975_v58 = vcombine.high %v1107_v40, %v1111_v59  ;;  %v1114_v49 = vld [vmem:[#allocation4 + $0x850] sm:$0xff] }
 0x1d4   :  { %5054 = vmatpush1.bf16.msra.mxu1 %v8870_v21  ;;  %4603 = vmatprep.subr.bf16.mxu0 %v8877_v45  ;;  %v8933_v21 = vcombine.high %v1066_v0, %v1070_v62  ;;  %v8935_v45 = vcombine.high %v1067_v12, %v1071_v55 }
 0x1d5   :  { %5055 = vmatprep.subr.bf16.mxu1 %v8879_v7  ;;  %v1078_v7 = vld [vmem:[#allocation4 + $0x730] sm:$0xff] }
 0x1d6   :  { %4535 = vmatmul.mubr.bf16.gmra.mrb[40].mxu0 %v10949_v42 }
 0x1d7   :  { %4987 = vmatmul.mubr.bf16.gmra.mrb[40].mxu1 %v10949_v42  ;;  %4604 = vmatpush1.bf16.msra.mxu0 %v8876_v35  ;;  %v8932_v35 = vcombine.low %v1066_v0, %v1070_v62  ;;  %v1086_v42 = vld [vmem:[#allocation4 + $0x770] sm:$0xff] }
 0x1d8   :  { %5056 = vmatpush1.bf16.msra.mxu1 %v8878_v6  ;;  %4605 = vmatprep.subr.bf16.mxu0 %v8885_v15  ;;  %v8934_v6 = vcombine.low %v1067_v12, %v1071_v55  ;;  %v8941_v15 = vcombine.high %v1074_v3, %v1078_v7  ;;  %v1126_v0 = vld [vmem:[#allocation4 + $0x8b0] sm:$0xff]  ;;  %v1123_v12 = vld [vmem:[#allocation4 + $0x898] sm:$0xff] }
 0x1d9   :  { %5057 = vmatprep.subr.bf16.mxu1 %v8887_v10  ;;  %4544 = vmatprep.mubr.bf16.mxu0 %v10950_v32  ;;  %v10956_v10 = vld [vmem:[#allocation2 + $0x158] sm:$0xff]  ;;  %v10961_v62 = vld [vmem:[#allocation2 + $0x10] sm:$0xff] }
 0x1da   :  { %4996 = vmatprep.mubr.bf16.mxu1 %v10950_v32  ;;  %v8951_v32 = vcombine.high %v1083_v17, %v1087_v41  ;;  %v1127_v55 = vld [vmem:[#allocation4 + $0x8b8] sm:$0xff] }
 0x1db   :  { %4606 = vmatpush1.bf16.msra.mxu0 %v8884_v23  ;;  %v8940_v23 = vcombine.low %v1074_v3, %v1078_v7  ;;  %v8991_v3 = vcombine.high %v1123_v12, %v1127_v55  ;;  %v1130_v7 = vld [vmem:[#allocation4 + $0x8d0] sm:$0xff] }
 0x1dc   :  { %5058 = vmatpush1.bf16.msra.mxu1 %v8886_v25  ;;  %4607 = vmatprep.subr.bf16.mxu0 %v8893_v5  ;;  %v8942_v25 = vcombine.low %v1075_v11, %v1079_v14  ;;  %v8949_v5 = vcombine.high %v1082_v18, %v1086_v42  ;;  %v1131_v11 = vld [vmem:[#allocation4 + $0x8d8] sm:$0xff] }
 0x1dd   :  { %5059 = vmatprep.subr.bf16.mxu1 %v8895_v1  ;;  %v1090_v1 = vld [vmem:[#allocation4 + $0x790] sm:$0xff]  ;;  %v1135_v14 = vld [vmem:[#allocation4 + $0x8f8] sm:$0xff] }
 0x1de   :  { %4545 = vmatmul.mubr.bf16.gmra.mrb[44].mxu0 %v10951_v33 }
 0x1df   :  { %4997 = vmatmul.mubr.bf16.gmra.mrb[44].mxu1 %v10951_v33  ;;  %4608 = vmatpush1.bf16.msra.mxu0 %v8892_v57  ;;  %v8948_v57 = vcombine.low %v1082_v18, %v1086_v42  ;;  %v1102_v33 = vld [vmem:[#allocation4 + $0x7f0] sm:$0xff]  ;;  %v10963_v42 = vld [vmem:[#allocation2 + $0x48] sm:$0xff] }
 0x1e0   :  { %5060 = vmatpush1.bf16.msra.mxu1 %v8894_v61  ;;  %4609 = vmatprep.subr.bf16.mxu0 %v8901_v31  ;;  %v8950_v61 = vcombine.low %v1083_v17, %v1087_v41  ;;  %v8957_v31 = vcombine.high %v1090_v1, %v1094_v27  ;;  %v1142_v18 = vld [vmem:[#allocation4 + $0x930] sm:$0xff]  ;;  %v1139_v17 = vld [vmem:[#allocation4 + $0x918] sm:$0xff] }
 0x1e1   :  { %5061 = vmatprep.subr.bf16.mxu1 %v8903_v26  ;;  %4554 = vmatprep.mubr.bf16.mxu0 %v10952_v54  ;;  %v10958_v26 = vld [vmem:[#allocation2 + $0x190] sm:$0xff]  ;;  %v1143_v41 = vld [vmem:[#allocation4 + $0x938] sm:$0xff] }
 0x1e2   :  { %5006 = vmatprep.mubr.bf16.mxu1 %v10952_v54  ;;  %v8967_v54 = vcombine.high %v1099_v36, %v1103_v34 }
 0x1e3   :  { %4610 = vmatpush1.bf16.msra.mxu0 %v8900_v37  ;;  %v8956_v37 = vcombine.low %v1090_v1, %v1094_v27  ;;  %v9007_v1 = vcombine.high %v1139_v17, %v1143_v41  ;;  %v1146_v27 = vld [vmem:[#allocation4 + $0x950] sm:$0xff] }
 0x1e4   :  { %5062 = vmatpush1.bf16.msra.mxu1 %v8902_v19  ;;  %4611 = vmatprep.subr.bf16.mxu0 %v8909_v38  ;;  %v8958_v19 = vcombine.low %v1091_v30, %v1095_v43  ;;  %v8965_v38 = vcombine.high %v1098_v63, %v1102_v33  ;;  %v1147_v30 = vld [vmem:[#allocation4 + $0x958] sm:$0xff] }
 0x1e5   :  { %5063 = vmatprep.subr.bf16.mxu1 %v8911_v20  ;;  %v1106_v20 = vld [vmem:[#allocation4 + $0x810] sm:$0xff]  ;;  %v1151_v43 = vld [vmem:[#allocation4 + $0x978] sm:$0xff] }
 0x1e6   :  { %4555 = vmatmul.mubr.bf16.gmra.mrb[48].mxu0 %v10953_v50 }
 0x1e7   :  { %5007 = vmatmul.mubr.bf16.gmra.mrb[48].mxu1 %v10953_v50  ;;  %4612 = vmatpush1.bf16.msra.mxu0 %v8908_v44  ;;  %v8964_v44 = vcombine.low %v1098_v63, %v1102_v33  ;;  %v1118_v50 = vld [vmem:[#allocation4 + $0x870] sm:$0xff]  ;;  %v10965_v33 = vld [vmem:[#allocation2 + $0x80] sm:$0xff] }
 0x1e8   :  { %5064 = vmatpush1.bf16.msra.mxu1 %v8910_v28  ;;  %4613 = vmatprep.subr.bf16.mxu0 %v8917_v48  ;;  %v8966_v28 = vcombine.low %v1099_v36, %v1103_v34  ;;  %v8973_v48 = vcombine.high %v1106_v20, %v1110_v47  ;;  %v1158_v63 = vld [vmem:[#allocation4 + $0x9b0] sm:$0xff]  ;;  %v1155_v36 = vld [vmem:[#allocation4 + $0x998] sm:$0xff] }
 0x1e9   :  { %5065 = vmatprep.subr.bf16.mxu1 %v8919_v46  ;;  %4564 = vmatprep.mubr.bf16.mxu0 %v10954_v56  ;;  %v10960_v46 = vld [vmem:[#allocation2 + $0x18] sm:$0xff] }
 0x1ea   :  { %5016 = vmatprep.mubr.bf16.mxu1 %v10954_v56  ;;  %v8983_v56 = vcombine.high %v1115_v52, %v1119_v51  ;;  %v1159_v34 = vld [vmem:[#allocation4 + $0x9b8] sm:$0xff] }
 0x1eb   :  { %4614 = vmatpush1.bf16.msra.mxu0 %v8916_v24  ;;  %v8972_v24 = vcombine.low %v1106_v20, %v1110_v47  ;;  %v9023_v20 = vcombine.high %v1155_v36, %v1159_v34  ;;  %v1162_v47 = vld [vmem:[#allocation4 + $0x9d0] sm:$0xff] }
 0x1ec   :  { %5066 = vmatpush1.bf16.msra.mxu1 %v8918_v4  ;;  %4615 = vmatprep.subr.bf16.mxu0 %v8925_v53  ;;  %v8974_v4 = vcombine.low %v1107_v40, %v1111_v59  ;;  %v8981_v53 = vcombine.high %v1114_v49, %v1118_v50  ;;  %v1163_v40 = vld [vmem:[#allocation4 + $0x9d8] sm:$0xff] }
 0x1ed   :  { %5067 = vmatprep.subr.bf16.mxu1 %v8927_v60  ;;  %v1122_v60 = vld [vmem:[#allocation4 + $0x890] sm:$0xff]  ;;  %v1167_v59 = vld [vmem:[#allocation4 + $0x9f8] sm:$0xff] }
 0x1ee   :  { %4565 = vmatmul.mubr.bf16.gmra.mrb[52].mxu0 %v10955_v8 }
 0x1ef   :  { %5017 = vmatmul.mubr.bf16.gmra.mrb[52].mxu1 %v10955_v8  ;;  %4616 = vmatpush1.bf16.msra.mxu0 %v8924_v22  ;;  %v8980_v22 = vcombine.low %v1114_v49, %v1118_v50  ;;  %v1134_v8 = vld [vmem:[#allocation4 + $0x8f0] sm:$0xff] }
 0x1f0   :  { %5068 = vmatpush1.bf16.msra.mxu1 %v8926_v13  ;;  %4617 = vmatprep.subr.bf16.mxu0 %v8933_v21  ;;  %v8982_v13 = vcombine.low %v1115_v52, %v1119_v51  ;;  %v8989_v21 = vcombine.high %v1122_v60, %v1126_v0  ;;  %v1174_v49 = vld [vmem:[#allocation4 + $0xa30] sm:$0xff]  ;;  %v1171_v52 = vld [vmem:[#allocation4 + $0xa18] sm:$0xff] }
 0x1f1   :  { %5069 = vmatprep.subr.bf16.mxu1 %v8935_v45  ;;  %4574 = vmatprep.mubr.bf16.mxu0 %v10956_v10  ;;  %v10962_v45 = vld [vmem:[#allocation2 + $0x50] sm:$0xff]  ;;  %v10967_v50 = vld [vmem:[#allocation2 + $0xb8] sm:$0xff] }
 0x1f2   :  { %5026 = vmatprep.mubr.bf16.mxu1 %v10956_v10  ;;  %v8999_v10 = vcombine.high %v1131_v11, %v1135_v14  ;;  %v1175_v51 = vld [vmem:[#allocation4 + $0xa38] sm:$0xff] }
 0x1f3   :  { %4618 = vmatpush1.bf16.msra.mxu0 %v8932_v35  ;;  %v8988_v35 = vcombine.low %v1122_v60, %v1126_v0  ;;  %v9039_v60 = vcombine.high %v1171_v52, %v1175_v51  ;;  %v1178_v0 = vld [vmem:[#allocation4 + $0xa50] sm:$0xff] }
 0x1f4   :  { %5070 = vmatpush1.bf16.msra.mxu1 %v8934_v6  ;;  %4619 = vmatprep.subr.bf16.mxu0 %v8941_v15  ;;  %v8990_v6 = vcombine.low %v1123_v12, %v1127_v55  ;;  %v8997_v15 = vcombine.high %v1130_v7, %v1134_v8  ;;  %v1179_v12 = vld [vmem:[#allocation4 + $0xa58] sm:$0xff] }
 0x1f5   :  { %5071 = vmatprep.subr.bf16.mxu1 %v8943_v16  ;;  %v1138_v16 = vld [vmem:[#allocation4 + $0x910] sm:$0xff]  ;;  %v1183_v55 = vld [vmem:[#allocation4 + $0xa78] sm:$0xff] }
 0x1f6   :  { %4575 = vmatmul.mubr.bf16.gmra.mrb[56].mxu0 %v10957_v29 }
 0x1f7   :  { %5027 = vmatmul.mubr.bf16.gmra.mrb[56].mxu1 %v10957_v29  ;;  %4620 = vmatpush1.bf16.msra.mxu0 %v8940_v23  ;;  %v8996_v23 = vcombine.low %v1130_v7, %v1134_v8  ;;  %v1150_v29 = vld [vmem:[#allocation4 + $0x970] sm:$0xff] }
 0x1f8   :  { %5072 = vmatpush1.bf16.msra.mxu1 %v8942_v25  ;;  %4621 = vmatprep.subr.bf16.mxu0 %v8949_v5  ;;  %v8998_v25 = vcombine.low %v1131_v11, %v1135_v14  ;;  %v9005_v5 = vcombine.high %v1138_v16, %v1142_v18  ;;  %v1190_v7 = vld [vmem:[#allocation4 + $0xab0] sm:$0xff]  ;;  %v1187_v11 = vld [vmem:[#allocation4 + $0xa98] sm:$0xff] }
 0x1f9   :  { %5073 = vmatprep.subr.bf16.mxu1 %v8951_v32  ;;  %4584 = vmatprep.mubr.bf16.mxu0 %v10958_v26  ;;  %v10964_v32 = vld [vmem:[#allocation2 + $0x88] sm:$0xff]  ;;  %v10969_v8 = vld [vmem:[#allocation2 + $0xf0] sm:$0xff]  ;;  %v1191_v14 = vld [vmem:[#allocation4 + $0xab8] sm:$0xff] }
 0x1fa   :  { %5036 = vmatprep.mubr.bf16.mxu1 %v10958_v26  ;;  %v9015_v26 = vcombine.high %v1147_v30, %v1151_v43 }
 0x1fb   :  { %4622 = vmatpush1.bf16.msra.mxu0 %v8948_v57  ;;  %v9004_v57 = vcombine.low %v1138_v16, %v1142_v18  ;;  %v9055_v16 = vcombine.high %v1187_v11, %v1191_v14  ;;  %v1194_v18 = vld [vmem:[#allocation4 + $0xad0] sm:$0xff] }
 0x1fc   :  { %5074 = vmatpush1.bf16.msra.mxu1 %v8950_v61  ;;  %4623 = vmatprep.subr.bf16.mxu0 %v8957_v31  ;;  %v9006_v61 = vcombine.low %v1139_v17, %v1143_v41  ;;  %v9013_v31 = vcombine.high %v1146_v27, %v1150_v29  ;;  %v1195_v17 = vld [vmem:[#allocation4 + $0xad8] sm:$0xff] }
 0x1fd   :  { %5075 = vmatprep.subr.bf16.mxu1 %v8959_v39  ;;  %v1154_v39 = vld [vmem:[#allocation4 + $0x990] sm:$0xff]  ;;  %v1199_v41 = vld [vmem:[#allocation4 + $0xaf8] sm:$0xff] }
 0x1fe   :  { %4585 = vmatmul.mubr.bf16.gmra.mrb[60].mxu0 %v10959_v9 }
 0x1ff   :  { %5037 = vmatmul.mubr.bf16.gmra.mrb[60].mxu1 %v10959_v9  ;;  %4624 = vmatpush1.bf16.msra.mxu0 %v8956_v37  ;;  %v9012_v37 = vcombine.low %v1146_v27, %v1150_v29  ;;  %v1166_v9 = vld [vmem:[#allocation4 + $0x9f0] sm:$0xff]  ;;  %v10971_v29 = vld [vmem:[#allocation2 + $0x128] sm:$0xff] }
 0x200   :  { %5076 = vmatpush1.bf16.msra.mxu1 %v8958_v19  ;;  %4625 = vmatprep.subr.bf16.mxu0 %v8965_v38  ;;  %v9014_v19 = vcombine.low %v1147_v30, %v1151_v43  ;;  %v9021_v38 = vcombine.high %v1154_v39, %v1158_v63  ;;  %v1206_v27 = vld [vmem:[#allocation4 + $0xb30] sm:$0xff]  ;;  %v1203_v30 = vld [vmem:[#allocation4 + $0xb18] sm:$0xff] }
 0x201   :  { %5077 = vmatprep.subr.bf16.mxu1 %v8967_v54  ;;  %4627 = vmatprep.mubr.bf16.mxu0 %v10960_v46  ;;  %v10966_v54 = vld [vmem:[#allocation2 + $0xc0] sm:$0xff] }
 0x202   :  { %5079 = vmatprep.mubr.bf16.mxu1 %v10960_v46  ;;  %v9031_v46 = vcombine.high %v1163_v40, %v1167_v59  ;;  %v1207_v43 = vld [vmem:[#allocation4 + $0xb38] sm:$0xff] }
 0x203   :  { %4626 = vmatpush1.bf16.msra.mxu0 %v8964_v44  ;;  %v9020_v44 = vcombine.low %v1154_v39, %v1158_v63  ;;  %v9071_v39 = vcombine.high %v1203_v30, %v1207_v43  ;;  %v1210_v63 = vld [vmem:[#allocation4 + $0xb50] sm:$0xff] }
 0x204   :  { %5078 = vmatpush1.bf16.msra.mxu1 %v8966_v28  ;;  %4708 = vmatprep.subr.bf16.mxu0 %v8973_v48  ;;  %v9022_v28 = vcombine.low %v1155_v36, %v1159_v34  ;;  %v9029_v48 = vcombine.high %v1162_v47, %v1166_v9  ;;  %v1211_v36 = vld [vmem:[#allocation4 + $0xb58] sm:$0xff] }
 0x205   :  { %5160 = vmatprep.subr.bf16.mxu1 %v8975_v58  ;;  %v1170_v58 = vld [vmem:[#allocation4 + $0xa10] sm:$0xff]  ;;  %v1215_v34 = vld [vmem:[#allocation4 + $0xb78] sm:$0xff] }
 0x206   :  { %4628 = vmatmul.mubr.bf16.vlgmr.msra.gmra.mrb[32].mxu0 %v10961_v62 }
 0x207   :  { %5080 = vmatmul.mubr.bf16.vlgmr.msra.gmra.mrb[32].mxu1 %v10961_v62  ;;  %4709 = vmatpush1.bf16.msra.mxu0 %v8972_v24  ;;  %v9028_v24 = vcombine.low %v1162_v47, %v1166_v9  ;;  %v1182_v62 = vld [vmem:[#allocation4 + $0xa70] sm:$0xff]  ;;  %v10973_v9 = vld [vmem:[#allocation2 + $0x160] sm:$0xff] }
 0x208   :  { %5161 = vmatpush1.bf16.msra.mxu1 %v8974_v4  ;;  %4710 = vmatprep.subr.bf16.mxu0 %v8981_v53  ;;  %v9030_v4 = vcombine.low %v1163_v40, %v1167_v59  ;;  %v9037_v53 = vcombine.high %v1170_v58, %v1174_v49  ;;  %v1222_v47 = vld [vmem:[#allocation4 + $0xbb0] sm:$0xff]  ;;  %v1219_v40 = vld [vmem:[#allocation4 + $0xb98] sm:$0xff] }
 0x209   :  { %5162 = vmatprep.subr.bf16.mxu1 %v8983_v56  ;;  %4637 = vmatprep.mubr.bf16.mxu0 %v10962_v45  ;;  %v10968_v56 = vld [vmem:[#allocation2 + $0xf8] sm:$0xff] }
 0x20a   :  { %5089 = vmatprep.mubr.bf16.mxu1 %v10962_v45  ;;  %v9047_v45 = vcombine.high %v1179_v12, %v1183_v55  ;;  %v1223_v59 = vld [vmem:[#allocation4 + $0xbb8] sm:$0xff] }
 0x20b   :  { %4711 = vmatpush1.bf16.msra.mxu0 %v8980_v22  ;;  %v9036_v22 = vcombine.low %v1170_v58, %v1174_v49  ;;  %v9087_v58 = vcombine.high %v1219_v40, %v1223_v59  ;;  %v1226_v49 = vld [vmem:[#allocation4 + $0xbd0] sm:$0xff] }
 0x20c   :  { %5163 = vmatpush1.bf16.msra.mxu1 %v8982_v13  ;;  %4712 = vmatprep.subr.bf16.mxu0 %v8989_v21  ;;  %v9038_v13 = vcombine.low %v1171_v52, %v1175_v51  ;;  %v9045_v21 = vcombine.high %v1178_v0, %v1182_v62  ;;  %v1227_v52 = vld [vmem:[#allocation4 + $0xbd8] sm:$0xff] }
 0x20d   :  { %5164 = vmatprep.subr.bf16.mxu1 %v8991_v3  ;;  %v1186_v3 = vld [vmem:[#allocation4 + $0xa90] sm:$0xff]  ;;  %v1231_v51 = vld [vmem:[#allocation4 + $0xbf8] sm:$0xff] }
 0x20e   :  { %4638 = vmatmul.mubr.bf16.gmra.mrb[36].mxu0 %v10963_v42 }
 0x20f   :  { %5090 = vmatmul.mubr.bf16.gmra.mrb[36].mxu1 %v10963_v42  ;;  %4713 = vmatpush1.bf16.msra.mxu0 %v8988_v35  ;;  %v9044_v35 = vcombine.low %v1178_v0, %v1182_v62  ;;  %v1198_v42 = vld [vmem:[#allocation4 + $0xaf0] sm:$0xff] }
 0x210   :  { %5165 = vmatpush1.bf16.msra.mxu1 %v8990_v6  ;;  %4714 = vmatprep.subr.bf16.mxu0 %v8997_v15  ;;  %v9046_v6 = vcombine.low %v1179_v12, %v1183_v55  ;;  %v9053_v15 = vcombine.high %v1186_v3, %v1190_v7  ;;  %v1238_v0 = vld [vmem:[#allocation4 + $0xc30] sm:$0xff]  ;;  %v1235_v12 = vld [vmem:[#allocation4 + $0xc18] sm:$0xff] }
 0x211   :  { %5166 = vmatprep.subr.bf16.mxu1 %v8999_v10  ;;  %4647 = vmatprep.mubr.bf16.mxu0 %v10964_v32  ;;  %v10970_v10 = vld [vmem:[#allocation2 + $0x130] sm:$0xff]  ;;  %v10975_v62 = vld [vmem:[#allocation2 + $0x198] sm:$0xff] }
 0x212   :  { %5099 = vmatprep.mubr.bf16.mxu1 %v10964_v32  ;;  %v9063_v32 = vcombine.high %v1195_v17, %v1199_v41  ;;  %v1239_v55 = vld [vmem:[#allocation4 + $0xc38] sm:$0xff] }
 0x213   :  { %4715 = vmatpush1.bf16.msra.mxu0 %v8996_v23  ;;  %v9052_v23 = vcombine.low %v1186_v3, %v1190_v7  ;;  %v9103_v3 = vcombine.high %v1235_v12, %v1239_v55  ;;  %v1242_v7 = vld [vmem:[#allocation4 + $0xc50] sm:$0xff] }
 0x214   :  { %5167 = vmatpush1.bf16.msra.mxu1 %v8998_v25  ;;  %4716 = vmatprep.subr.bf16.mxu0 %v9005_v5  ;;  %v9054_v25 = vcombine.low %v1187_v11, %v1191_v14  ;;  %v9061_v5 = vcombine.high %v1194_v18, %v1198_v42  ;;  %v1243_v14 = vld [vmem:[#allocation4 + $0xc58] sm:$0xff] }
 0x215   :  { %5168 = vmatprep.subr.bf16.mxu1 %v9007_v1  ;;  %v1202_v1 = vld [vmem:[#allocation4 + $0xb10] sm:$0xff] }
 0x216   :  { %4648 = vmatmul.mubr.bf16.gmra.mrb[40].mxu0 %v10965_v33 }
 0x217   :  { %5100 = vmatmul.mubr.bf16.gmra.mrb[40].mxu1 %v10965_v33  ;;  %4717 = vmatpush1.bf16.msra.mxu0 %v9004_v57  ;;  %v9060_v57 = vcombine.low %v1194_v18, %v1198_v42  ;;  %v1214_v33 = vld [vmem:[#allocation4 + $0xb70] sm:$0xff]  ;;  %v10977_v18 = vld [vmem:[#allocation2 + $0x20] sm:$0xff] }
 0x218   :  { %5169 = vmatpush1.bf16.msra.mxu1 %v9006_v61  ;;  %4718 = vmatprep.subr.bf16.mxu0 %v9013_v31  ;;  %v9062_v61 = vcombine.low %v1195_v17, %v1199_v41  ;;  %v9069_v31 = vcombine.high %v1202_v1, %v1206_v27  ;;  %v1251_v41 = vld [vmem:[#allocation4 + $0xc98] sm:$0xff] }
 0x219   :  { %5170 = vmatprep.subr.bf16.mxu1 %v9015_v26  ;;  %4657 = vmatprep.mubr.bf16.mxu0 %v10966_v54  ;;  %v10972_v26 = vld [vmem:[#allocation2 + $0x168] sm:$0xff] }
 0x21a   :  { %5109 = vmatprep.mubr.bf16.mxu1 %v10966_v54  ;;  %v9079_v54 = vcombine.high %v1211_v36, %v1215_v34 }
 0x21b   :  { %4719 = vmatpush1.bf16.msra.mxu0 %v9012_v37  ;;  %v9068_v37 = vcombine.low %v1202_v1, %v1206_v27  ;;  %v1298_v1 = vlaneseq  ;;  %v1258_v27 = vld [vmem:[#allocation4 + $0xcd0] sm:$0xff] }
 0x21c   :  { %5171 = vmatpush1.bf16.msra.mxu1 %v9014_v19  ;;  %4720 = vmatprep.subr.bf16.mxu0 %v9021_v38  ;;  %v9070_v19 = vcombine.low %v1203_v30, %v1207_v43  ;;  %v9077_v38 = vcombine.high %v1210_v63, %v1214_v33  ;;  %v1259_v43 = vld [vmem:[#allocation4 + $0xcd8] sm:$0xff] }
 0x21d   :  { %5172 = vmatprep.subr.bf16.mxu1 %v9023_v20  ;;  %v1218_v20 = vld [vmem:[#allocation4 + $0xb90] sm:$0xff] }
 0x21e   :  { %4658 = vmatmul.mubr.bf16.gmra.mrb[44].mxu0 %v10967_v50 }
 0x21f   :  { %5110 = vmatmul.mubr.bf16.gmra.mrb[44].mxu1 %v10967_v50  ;;  %4721 = vmatpush1.bf16.msra.mxu0 %v9020_v44  ;;  %v9076_v44 = vcombine.low %v1210_v63, %v1214_v33  ;;  %v1230_v50 = vld [vmem:[#allocation4 + $0xbf0] sm:$0xff]  ;;  %v12047_v63 = vshrl.u32 %v1298_v1, 7 }
 0x220   :  { %5173 = vmatpush1.bf16.msra.mxu1 %v9022_v28  ;;  %4722 = vmatprep.subr.bf16.mxu0 %v9029_v48  ;;  %v9078_v28 = vcombine.low %v1211_v36, %v1215_v34  ;;  %v9085_v48 = vcombine.high %v1218_v20, %v1222_v47  ;;  %v1266_v33 = vld [vmem:[#allocation4 + $0xd10] sm:$0xff] }
 0x221   :  { %5174 = vmatprep.subr.bf16.mxu1 %v9031_v46  ;;  %4667 = vmatprep.mubr.bf16.mxu0 %v10968_v56  ;;  %v10974_v46 = vld [vmem:[#allocation2 + $0x1a0] sm:$0xff]  ;;  %v1270_v36 = vld [vmem:[#allocation4 + $0xd30] sm:$0xff] }
 0x222   :  { %5119 = vmatprep.mubr.bf16.mxu1 %v10968_v56  ;;  %v9095_v56 = vcombine.high %v1227_v52, %v1231_v51 }
 0x223   :  { %4723 = vmatpush1.bf16.msra.mxu0 %v9028_v24  ;;  %v9084_v24 = vcombine.low %v1218_v20, %v1222_v47  ;;  %v9133_v20 = vcombine.high %v1266_v33, %v1270_v36 }
 0x224   :  { %5175 = vmatpush1.bf16.msra.mxu1 %v9030_v4  ;;  %4724 = vmatprep.subr.bf16.mxu0 %v9037_v53  ;;  %v9086_v4 = vcombine.low %v1219_v40, %v1223_v59  ;;  %v9093_v53 = vcombine.high %v1226_v49, %v1230_v50  ;;  %v1274_v40 = vld [vmem:[#allocation4 + $0xd50] sm:$0xff] }
 0x225   :  { %5176 = vmatprep.subr.bf16.mxu1 %v9039_v60  ;;  %v1234_v60 = vld [vmem:[#allocation4 + $0xc10] sm:$0xff] }
 0x226   :  { %4668 = vmatmul.mubr.bf16.gmra.mrb[48].mxu0 %v10969_v8  ;;  %v9100_v11 = vcombine.low %v1234_v60, %v1238_v0  ;;  %v1278_v59 = vld [vmem:[#allocation4 + $0xd70] sm:$0xff] }
 0x227   :  { %5120 = vmatmul.mubr.bf16.gmra.mrb[48].mxu1 %v10969_v8  ;;  %4725 = vmatpush1.bf16.msra.mxu0 %v9036_v22  ;;  %v9092_v22 = vcombine.low %v1226_v49, %v1230_v50  ;;  %v1246_v8 = vld [vmem:[#allocation4 + $0xc70] sm:$0xff]  ;;  %v1279_v49 = vld [vmem:[#allocation4 + $0xd78] sm:$0xff]  ;;  %v1312_v50 = vsub.s32 3, %v12047_v63 }
 0x228   :  { %5177 = vmatpush1.bf16.msra.mxu1 %v9038_v13  ;;  %4726 = vmatprep.subr.bf16.mxu0 %v9045_v21  ;;  %v9094_v13 = vcombine.low %v1227_v52, %v1231_v51  ;;  %v9101_v21 = vcombine.high %v1234_v60, %v1238_v0  ;;  %v9108_v17 = vcombine.low %v1242_v7, %v1246_v8  ;;  %v12059_v60 = vld [vmem:[#allocation4 + $0xdb0] sm:$0xff] }
 0x229   :  { %5178 = vmatprep.subr.bf16.mxu1 %v9047_v45  ;;  %4677 = vmatprep.mubr.bf16.mxu0 %v10970_v10  ;;  %v10976_v45 = vld [vmem:[#allocation2 + $0x28] sm:$0xff]  ;;  %v9132_v52 = vcombine.low %v1266_v33, %v1270_v36  ;;  %v9141_v51 = vcombine.high %v1274_v40, %v1278_v59 }
 0x22a   :  { %5129 = vmatprep.mubr.bf16.mxu1 %v10970_v10  ;;  %v1254_v10 = vld [vmem:[#allocation4 + $0xcb0] sm:$0xff]  ;;  %v10983_v33 = vld [vmem:[#allocation2 + $0xc8] sm:$0xff] }
 0x22b   :  { %4727 = vmatpush1.bf16.msra.mxu0 %v9044_v35  ;;  %v1247_v35 = vld [vmem:[#allocation4 + $0xc78] sm:$0xff] }
 0x22c   :  { %5179 = vmatpush1.bf16.msra.mxu1 %v9046_v6  ;;  %4728 = vmatprep.subr.bf16.mxu0 %v9053_v15  ;;  %v9109_v6 = vcombine.high %v1242_v7, %v1246_v8  ;;  %v1250_v15 = vld [vmem:[#allocation4 + $0xc90] sm:$0xff]  ;;  %v9111_v42 = vcombine.high %v1243_v14, %v1247_v35 }
 0x22d   :  { %5180 = vmatprep.subr.bf16.mxu1 %v9055_v16  ;;  %v9102_v16 = vcombine.low %v1235_v12, %v1239_v55  ;;  %v10982_v55 = vld [vmem:[#allocation2 + $0xd0] sm:$0xff] }
 0x22e   :  { %4678 = vmatmul.mubr.bf16.gmra.mrb[52].mxu0 %v10971_v29 }
 0x22f   :  { %5130 = vmatmul.mubr.bf16.gmra.mrb[52].mxu1 %v10971_v29  ;;  %4729 = vmatpush1.bf16.msra.mxu0 %v9052_v23  ;;  %v1255_v23 = vld [vmem:[#allocation4 + $0xcb8] sm:$0xff]  ;;  %v1262_v29 = vld [vmem:[#allocation4 + $0xcf0] sm:$0xff] }
 0x230   :  { %5181 = vmatpush1.bf16.msra.mxu1 %v9054_v25  ;;  %4730 = vmatprep.subr.bf16.mxu0 %v9061_v5  ;;  %v10978_v25 = vld [vmem:[#allocation2 + $0x60] sm:$0xff]  ;;  %v9117_v5 = vcombine.high %v1250_v15, %v1254_v10  ;;  %v9119_v30 = vcombine.high %v1251_v41, %v1255_v23 }
 0x231   :  { %5182 = vmatprep.subr.bf16.mxu1 %v9063_v32  ;;  %4687 = vmatprep.mubr.bf16.mxu0 %v10972_v26  ;;  %v9110_v32 = vcombine.low %v1243_v14, %v1247_v35 }
 0x232   :  { %5139 = vmatprep.mubr.bf16.mxu1 %v10972_v26  ;;  %v9118_v26 = vcombine.low %v1251_v41, %v1255_v23  ;;  %v1291_v41 = vld [vmem:[#allocation4 + $0xdd8] sm:$0xff] }
 0x233   :  { %4731 = vmatpush1.bf16.msra.mxu0 %v9060_v57  ;;  %v1263_v57 = vld [vmem:[#allocation4 + $0xcf8] sm:$0xff] }
 0x234   :  { %5183 = vmatpush1.bf16.msra.mxu1 %v9062_v61  ;;  %4732 = vmatprep.subr.bf16.mxu0 %v9069_v31  ;;  %v9116_v61 = vcombine.low %v1250_v15, %v1254_v10  ;;  %v9125_v31 = vcombine.high %v1258_v27, %v1262_v29  ;;  %v9127_v34 = vcombine.high %v1259_v43, %v1263_v57  ;;  %v1294_v15 = vld [vmem:[#allocation4 + $0xdf0] sm:$0xff]  ;;  %v1295_v23 = vld [vmem:[#allocation4 + $0xdf8] sm:$0xff] }
 0x235   :  { %5184 = vmatprep.subr.bf16.mxu1 %v9071_v39  ;;  %v10979_v39 = vld [vmem:[#allocation2 + $0x58] sm:$0xff]  ;;  %v9126_v47 = vcombine.low %v1259_v43, %v1263_v57  ;;  %v9159_v36 = vcombine.high %v1291_v41, %v1295_v23 }
 0x236   :  { %4688 = vmatmul.mubr.bf16.gmra.mrb[56].mxu0 %v10973_v9 }
 0x237   :  { %5140 = vmatmul.mubr.bf16.gmra.mrb[56].mxu1 %v10973_v9  ;;  %4733 = vmatpush1.bf16.msra.mxu0 %v9068_v37  ;;  %v10980_v37 = vld [vmem:[#allocation2 + $0x98] sm:$0xff]  ;;  %v1300_v9 = vsub.s32 0, %v12047_v63 }
 0x238   :  { %5185 = vmatpush1.bf16.msra.mxu1 %v9070_v19  ;;  %4734 = vmatprep.subr.bf16.mxu0 %v9077_v38  ;;  %v1267_v19 = vld [vmem:[#allocation4 + $0xd18] sm:$0xff] }
 0x239   :  { %5186 = vmatprep.subr.bf16.mxu1 %v9079_v54  ;;  %4697 = vmatprep.mubr.bf16.mxu0 %v10974_v46  ;;  %v1271_v38 = vld [vmem:[#allocation4 + $0xd38] sm:$0xff]  ;;  %v9124_v54 = vcombine.low %v1258_v27, %v1262_v29 }
 0x23a   :  { %5149 = vmatprep.mubr.bf16.mxu1 %v10974_v46  ;;  %v1304_v46 = vsub.s32 1, %v12047_v63 }
 0x23b   :  { %4735 = vmatpush1.bf16.msra.mxu0 %v9076_v44  ;;  %v9135_v44 = vcombine.high %v1267_v19, %v1271_v38 }
 0x23c   :  { %5187 = vmatpush1.bf16.msra.mxu1 %v9078_v28  ;;  %4736 = vmatprep.subr.bf16.mxu0 %v9085_v48  ;;  %v1296_v28 = vld [vmem:[#allocation6] sm:$0xff]  ;;  %v1308_v48 = vsub.s32 2, %v12047_v63 }
 0x23d   :  { %5188 = vmatprep.subr.bf16.mxu1 %v9087_v58  ;;  %v1275_v58 = vld [vmem:[#allocation4 + $0xd58] sm:$0xff]  ;;  %v12067_v12 = vrot.slane %v1296_v28, %v1304_v46 }
 0x23e   :  { %4698 = vmatmul.mubr.bf16.gmra.mrb[60].mxu0 %v10975_v62  ;;  %v9143_v0 = vcombine.high %v1275_v58, %v1279_v49  ;;  %v9142_v8 = vcombine.low %v1275_v58, %v1279_v49  ;;  %v9158_v49 = vcombine.low %v1291_v41, %v1295_v23  ;;  %v10986_v23 = vld [vmem:[#allocation2 + $0x140] sm:$0xff] }
 0x23f   :  { %5150 = vmatmul.mubr.bf16.gmra.mrb[60].mxu1 %v10975_v62  ;;  %4737 = vmatpush1.bf16.msra.mxu0 %v9084_v24  ;;  %v9134_v24 = vcombine.low %v1267_v19, %v1271_v38  ;;  %v12063_v62 = vrot.slane %v1296_v28, %v1308_v48 }
 0x240   :  { %5189 = vmatpush1.bf16.msra.mxu1 %v9086_v4  ;;  %4738 = vmatprep.subr.bf16.mxu0 %v9093_v53  ;;  %v10981_v4 = vld [vmem:[#allocation2 + $0x90] sm:$0xff]  ;;  %v12055_v53 = vrot.slane %v1296_v28, %v1300_v9 }
 0x241   :  { %5190 = vmatprep.subr.bf16.mxu1 %v9095_v56  ;;  %4740 = vmatprep.mubr.bf16.mxu0 %v10976_v45  ;;  %v12057_v56 = vld [vmem:[#allocation4 + $0xd90] sm:$0xff] }
 0x242   :  { %5192 = vmatprep.mubr.bf16.mxu1 %v10976_v45  ;;  %v9140_v45 = vcombine.low %v1274_v40, %v1278_v59  ;;  %v9149_v7 = vcombine.high %v12057_v56, %v12059_v60  ;;  %v9148_v27 = vcombine.low %v12057_v56, %v12059_v60  ;;  %v10526_v60 = vld [vmem:[#allocation8 + $0xc] ss:$16 sps:$4 sm:$0xff]  }
 0x243   :  { %4739 = vmatpush1.bf16.msra.mxu0 %v9092_v22  ;;  %v1283_v22 = vld [vmem:[#allocation4 + $0xd98] sm:$0xff] }
 0x244   :  { %5191 = vmatpush1.bf16.msra.mxu1 %v9094_v13  ;;  %4821 = vmatprep.subr.bf16.mxu0 %v9101_v21  ;;  %v1287_v13 = vld [vmem:[#allocation4 + $0xdb8] sm:$0xff]  ;;  %v12071_v21 = vrot.slane %v1296_v28, %v1312_v50 }
 0x245   :  { %5273 = vmatprep.subr.bf16.mxu1 %v9103_v3  ;;  %v9151_v10 = vcombine.high %v1283_v22, %v1287_v13  ;;  %v9150_v29 = vcombine.low %v1283_v22, %v1287_v13 }
 0x246   :  { %4741 = vmatmul.mubr.bf16.vlgmr.msra.gmra.mrb[32].mxu0 %v10977_v18 }
 0x247   :  { %5193 = vmatmul.mubr.bf16.vlgmr.msra.gmra.mrb[32].mxu1 %v10977_v18  ;;  %4822 = vmatpush1.bf16.msra.mxu0 %v9100_v11 }
 0x248   :  { %4750 = vmatprep.mubr.bf16.mxu0 %v10978_v25  ;;  %5202 = vmatprep.mubr.bf16.mxu1 %v10978_v25 }
 0x249   :  { %4823 = vmatprep.subr.bf16.mxu0 %v9109_v6  ;;  %5274 = vmatpush1.bf16.msra.mxu1 %v9102_v16  ;;  %v12076_v6 = vld [vmem:[#allocation4 + $0xdd0] sm:$0xff] }
 0x24a   :  { %5275 = vmatprep.subr.bf16.mxu1 %v9111_v42  ;;  %v9156_v59 = vcombine.low %v12076_v6, %v1294_v15 }
 0x24b   :  { %4824 = vmatpush1.bf16.msra.mxu0 %v9108_v17 }
 0x24c   :  { %4825 = vmatprep.subr.bf16.mxu0 %v9117_v5 }
 0x24d   :  { %5276 = vmatpush1.bf16.msra.mxu1 %v9110_v32 }
 0x24e   :  { %4751 = vmatmul.mubr.bf16.gmra.mrb[36].mxu0 %v10979_v39  ;;  %5277 = vmatprep.subr.bf16.mxu1 %v9119_v30 }
 0x24f   :  { %5203 = vmatmul.mubr.bf16.gmra.mrb[36].mxu1 %v10979_v39  ;;  %4760 = vmatprep.mubr.bf16.mxu0 %v10980_v37 }
 0x250   :  { %5212 = vmatprep.mubr.bf16.mxu1 %v10980_v37  ;;  %4826 = vmatpush1.bf16.msra.mxu0 %v9116_v61  ;;  %v9157_v61 = vcombine.high %v12076_v6, %v1294_v15 }
 0x251   :  { %4827 = vmatprep.subr.bf16.mxu0 %v9125_v31  ;;  %5278 = vmatpush1.bf16.msra.mxu1 %v9118_v26 }
 0x252   :  { %5279 = vmatprep.subr.bf16.mxu1 %v9127_v34 }
 0x254   :  { %4828 = vmatpush1.bf16.msra.mxu0 %v9124_v54  ;;  %v10984_v54 = vld [vmem:[#allocation2 + $0x108] sm:$0xff] }
 0x255   :  { %4829 = vmatprep.subr.bf16.mxu0 %v9133_v20  ;;  %5280 = vmatpush1.bf16.msra.mxu1 %v9126_v47 }
 0x256   :  { %4761 = vmatmul.mubr.bf16.gmra.mrb[40].mxu0 %v10981_v4  ;;  %5281 = vmatprep.subr.bf16.mxu1 %v9135_v44 }
 0x257   :  { %5213 = vmatmul.mubr.bf16.gmra.mrb[40].mxu1 %v10981_v4  ;;  %4770 = vmatprep.mubr.bf16.mxu0 %v10982_v55 }
 0x258   :  { %5222 = vmatprep.mubr.bf16.mxu1 %v10982_v55  ;;  %4830 = vmatpush1.bf16.msra.mxu0 %v9132_v52  ;;  %v10523_v52 = vld [vmem:[#allocation8 + $0x4] ss:$16 sps:$4 sm:$0xff]  }
 0x259   :  { %v3951_v3 = vpop.f32.mrb[0].mxu0  ;;  %4831 = vmatprep.subr.bf16.mxu0 %v9141_v51  ;;  %5282 = vmatpush1.bf16.msra.mxu1 %v9134_v24 }
 0x25a   :  { %v9579_v11 = vadd.f32 %v3951_v3, %v12055_v53  ;;  %v4403_v14 = vpop.f32.mrb[0].mxu1  ;;  %v3953_v35 = vpop.f32.mrb[1].mxu0  ;;  %5283 = vmatprep.subr.bf16.mxu1 %v9143_v0 }
 0x25b   :  { %v9611_v16 = vadd.f32 %v4403_v14, %v12063_v62  ;;  %v9580_v18 = vadd.f32 %v3953_v35, %v12067_v12  ;;  %v4405_v42 = vpop.f32.mrb[1].mxu1  ;;  %v3955_v17 = vpop.f32.mrb[2].mxu0 }
 0x25c   :  { %v9612_v25 = vadd.f32 %v4405_v42, %v12071_v21  ;;  %v9581_v5 = vadd.f32 %v3955_v17, %v12055_v53  ;;  %v4407_v32 = vpop.f32.mrb[2].mxu1  ;;  %v3957_v1 = vpop.f32.mrb[3].mxu0  ;;  %4832 = vmatpush1.bf16.msra.mxu0 %v9140_v45  ;;  %v5386_v31 = vmax.f32 %v9579_v11, 0.0 }
 0x25d   :  { %v9613_v30 = vadd.f32 %v4407_v32, %v12063_v62  ;;  %v9582_v43 = vadd.f32 %v3957_v1, %v12067_v12  ;;  %v4409_v57 = vpop.f32.mrb[3].mxu1  ;;  %4833 = vmatprep.subr.bf16.mxu0 %v9149_v7  ;;  %5284 = vmatpush1.bf16.msra.mxu1 %v9142_v8  ;;  %v5388_v34 = vmax.f32 %v9611_v16, 0.0  ;;  %v5387_v37 = vmax.f32 %v9580_v18, 0.0  ;;  %v10985_v16 = vld [vmem:[#allocation2 + $0x100] sm:$0xff] }
 0x25e   :  { %v5394_v26 = vmax.f32 %v9581_v5, 0.0  ;;  %v9614_v39 = vadd.f32 %v4409_v57, %v12071_v21  ;;  %4771 = vmatmul.mubr.bf16.gmra.mrb[44].mxu0 %v10983_v33  ;;  %5285 = vmatprep.subr.bf16.mxu1 %v9151_v10  ;;  %v5389_v20 = vmax.f32 %v9612_v25, 0.0 }
 0x25f   :  { %v5396_v19 = vmax.f32 %v9613_v30, 0.0  ;;  %v5395_v38 = vmax.f32 %v9582_v43, 0.0  ;;  %5223 = vmatmul.mubr.bf16.gmra.mrb[44].mxu1 %v10983_v33  ;;  %4780 = vmatprep.mubr.bf16.mxu0 %v10984_v54 }
 0x260   :  { %v12088_v47 = vpack.c.bf16 %v5394_v26, %v5386_v31  ;;  %v5397_v40 = vmax.f32 %v9614_v39, 0.0  ;;  %5232 = vmatprep.mubr.bf16.mxu1 %v10984_v54  ;;  %4834 = vmatpush1.bf16.msra.mxu0 %v9148_v27 }
 0x261   :  { %v12091_v44 = vpack.c.bf16 %v5396_v19, %v5388_v34  ;;  %v12093_v28 = vpack.c.bf16 %v5395_v38, %v5387_v37  ;;  %v3961_v58 = vpop.f32.mrb[4].mxu0  ;;  %4835 = vmatprep.subr.bf16.mxu0 %v9157_v61  ;;  %5286 = vmatpush1.bf16.msra.mxu1 %v9150_v29 }
 0x262   :  { %v12095_v51 = vpack.c.bf16 %v5397_v40, %v5389_v20  ;;  %v9583_v24 = vadd.f32 %v3961_v58, %v12055_v53  ;;  %v4413_v4 = vpop.f32.mrb[4].mxu1  ;;  %v3963_v56 = vpop.f32.mrb[5].mxu0  ;;  %5287 = vmatprep.subr.bf16.mxu1 %v9159_v36 }
 0x263   :  { %v9615_v0 = vadd.f32 %v4413_v4, %v12063_v62  ;;  %v9584_v55 = vadd.f32 %v3963_v56, %v12067_v12  ;;  %v4415_v22 = vpop.f32.mrb[5].mxu1  ;;  %v3965_v13 = vpop.f32.mrb[6].mxu0 }
 0x264   :  { %v9616_v45 = vadd.f32 %v4415_v22, %v12071_v21  ;;  %v9585_v3 = vadd.f32 %v3965_v13, %v12055_v53  ;;  %v4417_v7 = vpop.f32.mrb[6].mxu1  ;;  %v3967_v8 = vpop.f32.mrb[7].mxu0  ;;  %4836 = vmatpush1.bf16.msra.mxu0 %v9156_v59  ;;  %v5402_v6 = vmax.f32 %v9583_v24, 0.0 }
 0x265   :  { %v9617_v11 = vadd.f32 %v4417_v7, %v12063_v62  ;;  %v9586_v14 = vadd.f32 %v3967_v8, %v12067_v12  ;;  %v4419_v35 = vpop.f32.mrb[7].mxu1  ;;  %5288 = vmatpush1.bf16.msra.mxu1 %v9158_v49  ;;  %7136 = vmatprep.subr.bf16.mxu0 %v10523_v52  ;;  %v5404_v18 = vmax.f32 %v9615_v0, 0.0  ;;  %v5403_v42 = vmax.f32 %v9584_v55, 0.0  ;;  %v10987_v49 = vld [vmem:[#allocation2 + $0x138] sm:$0xff] }
 0x266   :  { %v5410_v15 = vmax.f32 %v9585_v3, 0.0  ;;  %v9618_v10 = vadd.f32 %v4419_v35, %v12071_v21  ;;  %4781 = vmatmul.mubr.bf16.gmra.mrb[48].mxu0 %v10985_v16  ;;  %7588 = vmatprep.subr.bf16.mxu1 %v10526_v60  ;;  %v5405_v25 = vmax.f32 %v9616_v45, 0.0  ;;  %v10988_v60 = vld [vmem:[#allocation2 + $0x178] sm:$0xff] }
 0x267   :  { %v5412_v17 = vmax.f32 %v9617_v11, 0.0  ;;  %v5411_v41 = vmax.f32 %v9586_v14, 0.0  ;;  %5233 = vmatmul.mubr.bf16.gmra.mrb[48].mxu1 %v10985_v16  ;;  %4790 = vmatprep.mubr.bf16.mxu0 %v10986_v23 }
 0x268   :  { %v12105_v5 = vpack.c.bf16 %v5410_v15, %v5402_v6  ;;  %v5413_v32 = vmax.f32 %v9618_v10, 0.0  ;;  %5242 = vmatprep.mubr.bf16.mxu1 %v10986_v23 }
 0x269   :  { %v12107_v1 = vpack.c.bf16 %v5412_v17, %v5404_v18  ;;  %v12109_v27 = vpack.c.bf16 %v5411_v41, %v5403_v42  ;;  %v3971_v29 = vpop.f32.mrb[8].mxu0 }
 0x26a   :  { %v12111_v30 = vpack.c.bf16 %v5413_v32, %v5405_v25  ;;  %v9587_v43 = vadd.f32 %v3971_v29, %v12055_v53  ;;  %v4423_v57 = vpop.f32.mrb[8].mxu1  ;;  %v3973_v61 = vpop.f32.mrb[9].mxu0 }
 0x26b   :  { %v9619_v31 = vadd.f32 %v4423_v57, %v12063_v62  ;;  %v9588_v26 = vadd.f32 %v3973_v61, %v12067_v12  ;;  %v4425_v39 = vpop.f32.mrb[9].mxu1  ;;  %v3975_v33 = vpop.f32.mrb[10].mxu0  ;;  %v10989_v57 = vld [vmem:[#allocation2 + $0x170] sm:$0xff] }
 0x26c   :  { %v9620_v36 = vadd.f32 %v4425_v39, %v12071_v21  ;;  %v9589_v34 = vadd.f32 %v3975_v33, %v12055_v53  ;;  %v4427_v37 = vpop.f32.mrb[10].mxu1  ;;  %v3977_v19 = vpop.f32.mrb[11].mxu0  ;;  %v5418_v40 = vmax.f32 %v9587_v43, 0.0  ;;  %v10990_v33 = vld [vmem:[#allocation2 + $0x1b0] sm:$0xff] }
 0x26d   :  { %v9621_v38 = vadd.f32 %v4427_v37, %v12063_v62  ;;  %v9590_v54 = vadd.f32 %v3977_v19, %v12067_v12  ;;  %v4429_v20 = vpop.f32.mrb[11].mxu1  ;;  %v5420_v52 = vmax.f32 %v9619_v31, 0.0  ;;  %v5419_v24 = vmax.f32 %v9588_v26, 0.0 }
 0x26e   :  { %v5426_v59 = vmax.f32 %v9589_v34, 0.0  ;;  %v9622_v58 = vadd.f32 %v4429_v20, %v12071_v21  ;;  %4791 = vmatmul.mubr.bf16.gmra.mrb[52].mxu0 %v10987_v49  ;;  %v5421_v0 = vmax.f32 %v9620_v36, 0.0 }
 0x26f   :  { %v5428_v4 = vmax.f32 %v9621_v38, 0.0  ;;  %v5427_v56 = vmax.f32 %v9590_v54, 0.0  ;;  %5243 = vmatmul.mubr.bf16.gmra.mrb[52].mxu1 %v10987_v49  ;;  %4800 = vmatprep.mubr.bf16.mxu0 %v10988_v60 }
 0x270   :  { %v12121_v55 = vpack.c.bf16 %v5426_v59, %v5418_v40  ;;  %v5429_v22 = vmax.f32 %v9622_v58, 0.0  ;;  %5252 = vmatprep.mubr.bf16.mxu1 %v10988_v60 }
 0x271   :  { %v12123_v13 = vpack.c.bf16 %v5428_v4, %v5420_v52  ;;  %v12125_v45 = vpack.c.bf16 %v5427_v56, %v5419_v24  ;;  %v3981_v3 = vpop.f32.mrb[12].mxu0 }
 0x272   :  { %v12127_v7 = vpack.c.bf16 %v5429_v22, %v5421_v0  ;;  %v9591_v8 = vadd.f32 %v3981_v3, %v12055_v53  ;;  %v4433_v11 = vpop.f32.mrb[12].mxu1  ;;  %v3983_v14 = vpop.f32.mrb[13].mxu0 }
 0x273   :  { %v9623_v35 = vadd.f32 %v4433_v11, %v12063_v62  ;;  %v9592_v6 = vadd.f32 %v3983_v14, %v12067_v12  ;;  %v4435_v15 = vpop.f32.mrb[13].mxu1  ;;  %v3985_v10 = vpop.f32.mrb[14].mxu0 }
 0x274   :  { %v9624_v16 = vadd.f32 %v4435_v15, %v12071_v21  ;;  %v9593_v18 = vadd.f32 %v3985_v10, %v12055_v53  ;;  %v4437_v42 = vpop.f32.mrb[14].mxu1  ;;  %v3987_v17 = vpop.f32.mrb[15].mxu0  ;;  %v5434_v32 = vmax.f32 %v9591_v8, 0.0  ;;  %v10991_v15 = vld [vmem:[#allocation2 + $0x1a8] sm:$0xff] }
 0x275   :  { %v9625_v41 = vadd.f32 %v4437_v42, %v12063_v62  ;;  %v9594_v23 = vadd.f32 %v3987_v17, %v12067_v12  ;;  %v4439_v25 = vpop.f32.mrb[15].mxu1  ;;  %v5436_v61 = vmax.f32 %v9623_v35, 0.0  ;;  %v5435_v31 = vmax.f32 %v9592_v6, 0.0 }
 0x276   :  { %v5442_v29 = vmax.f32 %v9593_v18, 0.0  ;;  %v9626_v43 = vadd.f32 %v4439_v25, %v12071_v21  ;;  %4801 = vmatmul.mubr.bf16.gmra.mrb[56].mxu0 %v10989_v57  ;;  %v5437_v36 = vmax.f32 %v9624_v16, 0.0 }
 0x277   :  { %v5444_v26 = vmax.f32 %v9625_v41, 0.0  ;;  %v5443_v39 = vmax.f32 %v9594_v23, 0.0  ;;  %5253 = vmatmul.mubr.bf16.gmra.mrb[56].mxu1 %v10989_v57  ;;  %4810 = vmatprep.mubr.bf16.mxu0 %v10990_v33 }
 0x278   :  { %v12137_v34 = vpack.c.bf16 %v5442_v29, %v5434_v32  ;;  %v5445_v37 = vmax.f32 %v9626_v43, 0.0  ;;  %5262 = vmatprep.mubr.bf16.mxu1 %v10990_v33 }
 0x279   :  { %v12139_v19 = vpack.c.bf16 %v5444_v26, %v5436_v61  ;;  %v12141_v38 = vpack.c.bf16 %v5443_v39, %v5435_v31  ;;  %v3991_v54 = vpop.f32.mrb[16].mxu0 }
 0x27a   :  { %v12143_v20 = vpack.c.bf16 %v5445_v37, %v5437_v36  ;;  %v9595_v40 = vadd.f32 %v3991_v54, %v12055_v53  ;;  %v4443_v59 = vpop.f32.mrb[16].mxu1  ;;  %v3993_v58 = vpop.f32.mrb[17].mxu0  ;;  %v10521_v37 = vld [vmem:[#allocation8] ss:$16 sps:$4 sm:$0xff]  }
 0x27b   :  { %v9627_v49 = vadd.f32 %v4443_v59, %v12063_v62  ;;  %v9596_v52 = vadd.f32 %v3993_v58, %v12067_v12  ;;  %v4445_v24 = vpop.f32.mrb[17].mxu1  ;;  %v3995_v4 = vpop.f32.mrb[18].mxu0 }
 0x27c   :  { %v9628_v56 = vadd.f32 %v4445_v24, %v12071_v21  ;;  %v9597_v60 = vadd.f32 %v3995_v4, %v12055_v53  ;;  %v4447_v0 = vpop.f32.mrb[18].mxu1  ;;  %v3997_v22 = vpop.f32.mrb[19].mxu0  ;;  %v5450_v14 = vmax.f32 %v9595_v40, 0.0 }
 0x27d   :  { %v9629_v3 = vadd.f32 %v4447_v0, %v12063_v62  ;;  %v9598_v8 = vadd.f32 %v3997_v22, %v12067_v12  ;;  %v4449_v11 = vpop.f32.mrb[19].mxu1  ;;  %v5452_v10 = vmax.f32 %v9627_v49, 0.0  ;;  %v5451_v16 = vmax.f32 %v9596_v52, 0.0  ;;  %v10524_v49 = vld [vmem:[#allocation8 + $0x8] ss:$16 sps:$4 sm:$0xff]  }
 0x27e   :  { %v5458_v35 = vmax.f32 %v9597_v60, 0.0  ;;  %v9630_v6 = vadd.f32 %v4449_v11, %v12071_v21  ;;  %4811 = vmatmul.mubr.bf16.gmra.mrb[60].mxu0 %v10991_v15  ;;  %v5453_v17 = vmax.f32 %v9628_v56, 0.0  ;;  %v10529_v52 = vld [vmem:[#allocation8 + $0x24] ss:$16 sps:$4 sm:$0xff]   ;;  %v10532_v60 = vld [vmem:[#allocation8 + $0x2c] ss:$16 sps:$4 sm:$0xff]  }
 0x27f   :  { %v5460_v18 = vmax.f32 %v9629_v3, 0.0  ;;  %v5459_v42 = vmax.f32 %v9598_v8, 0.0  ;;  %5263 = vmatmul.mubr.bf16.gmra.mrb[60].mxu1 %v10991_v15  ;;  %4853 = vmatprep.mubr.bf16.mxu0 %v11176_v2  ;;  %v10992_v8 = vld [vmem:[#allocation2 + $0x30] sm:$0xff]  ;;  %v10527_v15 = vld [vmem:[#allocation8 + $0x20] ss:$16 sps:$4 sm:$0xff]  }
 0x280   :  { %v12154_v41 = vpack.c.bf16 %v5458_v35, %v5450_v14  ;;  %v5461_v23 = vmax.f32 %v9630_v6, 0.0  ;;  %5305 = vmatprep.mubr.bf16.mxu1 %v11176_v2 }
 0x281   :  { %v12157_v25 = vpack.c.bf16 %v5460_v18, %v5452_v10  ;;  %v12159_v32 = vpack.c.bf16 %v5459_v42, %v5451_v16  ;;  %v4001_v29 = vpop.f32.mrb[20].mxu0  ;;  %v10530_v42 = vld [vmem:[#allocation8 + $0x28] ss:$16 sps:$4 sm:$0xff]  }
 0x282   :  { %v12161_v43 = vpack.c.bf16 %v5461_v23, %v5453_v17  ;;  %v9599_v57 = vadd.f32 %v4001_v29, %v12055_v53  ;;  %v4453_v61 = vpop.f32.mrb[20].mxu1  ;;  %v4003_v31 = vpop.f32.mrb[21].mxu0  ;;  %v10535_v17 = vld [vmem:[#allocation8 + $0x44] ss:$16 sps:$4 sm:$0xff]  }
 0x283   :  { %v9631_v26 = vadd.f32 %v4453_v61, %v12063_v62  ;;  %v9600_v39 = vadd.f32 %v4003_v31, %v12067_v12  ;;  %v4455_v33 = vpop.f32.mrb[21].mxu1  ;;  %v4005_v36 = vpop.f32.mrb[22].mxu0  ;;  %v10538_v61 = vld [vmem:[#allocation8 + $0x4c] ss:$16 sps:$4 sm:$0xff]  }
 0x284   :  { %v9632_v54 = vadd.f32 %v4455_v33, %v12071_v21  ;;  %v9601_v40 = vadd.f32 %v4005_v36, %v12055_v53  ;;  %v4457_v59 = vpop.f32.mrb[22].mxu1  ;;  %v4007_v58 = vpop.f32.mrb[23].mxu0  ;;  %v5466_v0 = vmax.f32 %v9599_v57, 0.0 }
 0x285   :  { %v9633_v24 = vadd.f32 %v4457_v59, %v12063_v62  ;;  %v9602_v4 = vadd.f32 %v4007_v58, %v12067_v12  ;;  %v4459_v56 = vpop.f32.mrb[23].mxu1  ;;  %v5468_v11 = vmax.f32 %v9631_v26, 0.0  ;;  %v5467_v14 = vmax.f32 %v9600_v39, 0.0  ;;  %v10533_v59 = vld [vmem:[#allocation8 + $0x40] ss:$16 sps:$4 sm:$0xff]  }
 0x286   :  { %v5474_v22 = vmax.f32 %v9601_v40, 0.0  ;;  %v9634_v3 = vadd.f32 %v4459_v56, %v12071_v21  ;;  %4854 = vmatmul.mubr.bf16.vlgmr.msra.gmra.mrb[32].mxu0 %v10992_v8  ;;  %v5469_v10 = vmax.f32 %v9632_v54, 0.0  ;;  %v10541_v56 = vld [vmem:[#allocation8 + $0x64] ss:$16 sps:$4 sm:$0xff]  }
 0x287   :  { %v5476_v35 = vmax.f32 %v9633_v24, 0.0  ;;  %v5475_v6 = vmax.f32 %v9602_v4, 0.0  ;;  %5306 = vmatmul.mubr.bf16.vlgmr.msra.gmra.mrb[32].mxu1 %v10992_v8  ;;  %7137 = vmatpush1.bf16.msra.mxu0 %v10521_v37  ;;  %v10536_v4 = vld [vmem:[#allocation8 + $0x48] ss:$16 sps:$4 sm:$0xff]  }
 0x288   :  { %v12171_v16 = vpack.c.bf16 %v5474_v22, %v5466_v0  ;;  %v5477_v18 = vmax.f32 %v9634_v3, 0.0  ;;  %7589 = vmatpush1.bf16.msra.mxu1 %v10524_v49  ;;  %7138 = vmatprep.subr.bf16.mxu0 %v10529_v52  ;;  %v10544_v3 = vld [vmem:[#allocation8 + $0x6c] ss:$16 sps:$4 sm:$0xff]  }
 0x289   :  { %v12173_v23 = vpack.c.bf16 %v5476_v35, %v5468_v11  ;;  %v12175_v29 = vpack.c.bf16 %v5475_v6, %v5467_v14  ;;  %v4011_v57 = vpop.f32.mrb[24].mxu0  ;;  %7590 = vmatprep.subr.bf16.mxu1 %v10532_v60  ;;  %4863 = vmatprep.mubr.bf16.mxu0 %v11176_v2  ;;  %v10993_v35 = vld [vmem:[#allocation2 + $0x68] sm:$0xff] }
 0x28a   :  { %v12178_v31 = vpack.c.bf16 %v5477_v18, %v5469_v10  ;;  %v9603_v26 = vadd.f32 %v4011_v57, %v12055_v53  ;;  %v4463_v39 = vpop.f32.mrb[24].mxu1  ;;  %v4013_v33 = vpop.f32.mrb[25].mxu0  ;;  %5315 = vmatprep.mubr.bf16.mxu1 %v11176_v2 }
 0x28b   :  { %v9635_v36 = vadd.f32 %v4463_v39, %v12063_v62  ;;  %v9604_v37 = vadd.f32 %v4013_v33, %v12067_v12  ;;  %v4465_v54 = vpop.f32.mrb[25].mxu1  ;;  %v4015_v40 = vpop.f32.mrb[26].mxu0  ;;  %7139 = vmatpush1.bf16.msra.mxu0 %v10527_v15 }
 0x28c   :  { %v9636_v58 = vadd.f32 %v4465_v54, %v12071_v21  ;;  %v9605_v49 = vadd.f32 %v4015_v40, %v12055_v53  ;;  %v4467_v52 = vpop.f32.mrb[26].mxu1  ;;  %7591 = vmatpush1.bf16.msra.mxu1 %v10530_v42  ;;  %v4017_v24 = vpop.f32.mrb[27].mxu0  ;;  %7140 = vmatprep.subr.bf16.mxu0 %v10535_v17  ;;  %v5482_v8 = vmax.f32 %v9603_v26, 0.0  ;;  %v10539_v42 = vld [vmem:[#allocation8 + $0x60] ss:$16 sps:$4 sm:$0xff]  }
 0x28d   :  { %v9637_v60 = vadd.f32 %v4467_v52, %v12063_v62  ;;  %v9606_v0 = vadd.f32 %v4017_v24, %v12067_v12  ;;  %v4469_v22 = vpop.f32.mrb[27].mxu1  ;;  %7592 = vmatprep.subr.bf16.mxu1 %v10538_v61  ;;  %v5484_v6 = vmax.f32 %v9635_v36, 0.0  ;;  %v5483_v15 = vmax.f32 %v9604_v37, 0.0  ;;  %v10542_v61 = vld [vmem:[#allocation8 + $0x68] ss:$16 sps:$4 sm:$0xff]  }
 0x28e   :  { %v5490_v11 = vmax.f32 %v9605_v49, 0.0  ;;  %v9638_v14 = vadd.f32 %v4469_v22, %v12071_v21  ;;  %4864 = vmatmul.mubr.bf16.gmra.mrb[36].mxu0 %v10993_v35  ;;  %v5485_v17 = vmax.f32 %v9636_v58, 0.0  ;;  %v10547_v26 = vld [vmem:[#allocation8 + $0x84] ss:$16 sps:$4 sm:$0xff]   ;;  %v10550_v36 = vld [vmem:[#allocation8 + $0x8c] ss:$16 sps:$4 sm:$0xff]  }
 0x28f   :  { %v5492_v10 = vmax.f32 %v9637_v60, 0.0  ;;  %v5491_v18 = vmax.f32 %v9606_v0, 0.0  ;;  %5316 = vmatmul.mubr.bf16.gmra.mrb[36].mxu1 %v10993_v35  ;;  %7141 = vmatpush1.bf16.msra.mxu0 %v10533_v59  ;;  %v10545_v60 = vld [vmem:[#allocation8 + $0x80] ss:$16 sps:$4 sm:$0xff]  }
 0x290   :  { %v12189_v57 = vpack.c.bf16 %v5490_v11, %v5482_v8  ;;  %v5493_v39 = vmax.f32 %v9638_v14, 0.0  ;;  %7593 = vmatpush1.bf16.msra.mxu1 %v10536_v4  ;;  %7142 = vmatprep.subr.bf16.mxu0 %v10541_v56  ;;  %v10548_v11 = vld [vmem:[#allocation8 + $0x88] ss:$16 sps:$4 sm:$0xff]   ;;  %v10553_v14 = vld [vmem:[#allocation8 + $0xa4] ss:$16 sps:$4 sm:$0xff]  }
 0x291   :  { %v12191_v33 = vpack.c.bf16 %v5492_v10, %v5484_v6  ;;  %v12193_v54 = vpack.c.bf16 %v5491_v18, %v5483_v15  ;;  %v4021_v40 = vpop.f32.mrb[28].mxu0  ;;  %7594 = vmatprep.subr.bf16.mxu1 %v10544_v3  ;;  %4873 = vmatprep.mubr.bf16.mxu0 %v11176_v2  ;;  %v10556_v10 = vld [vmem:[#allocation8 + $0xac] ss:$16 sps:$4 sm:$0xff]  }
 0x292   :  { %v12196_v37 = vpack.c.bf16 %v5493_v39, %v5485_v17  ;;  %v9607_v59 = vadd.f32 %v4021_v40, %v12055_v53  ;;  %v4473_v58 = vpop.f32.mrb[28].mxu1  ;;  %v4023_v49 = vpop.f32.mrb[29].mxu0  ;;  %5325 = vmatprep.mubr.bf16.mxu1 %v11176_v2  ;;  %v10994_v39 = vld [vmem:[#allocation2 + $0xa0] sm:$0xff] }
 0x293   :  { %v9639_v52 = vadd.f32 %v4473_v58, %v12063_v62  ;;  %v9608_v24 = vadd.f32 %v4023_v49, %v12067_v12  ;;  %v4475_v4 = vpop.f32.mrb[29].mxu1  ;;  %v4025_v56 = vpop.f32.mrb[30].mxu0  ;;  %7143 = vmatpush1.bf16.msra.mxu0 %v10539_v42 }
 0x294   :  { %v9640_v0 = vadd.f32 %v4475_v4, %v12071_v21  ;;  %v9609_v22 = vadd.f32 %v4025_v56, %v12055_v53  ;;  %v4477_v3 = vpop.f32.mrb[30].mxu1  ;;  %7595 = vmatpush1.bf16.msra.mxu1 %v10542_v61  ;;  %v4027_v8 = vpop.f32.mrb[31].mxu0  ;;  %7144 = vmatprep.subr.bf16.mxu0 %v10547_v26  ;;  %v5498_v18 = vmax.f32 %v9607_v59, 0.0  ;;  %v10551_v26 = vld [vmem:[#allocation8 + $0xa0] ss:$16 sps:$4 sm:$0xff]  }
 0x295   :  { %v9641_v35 = vadd.f32 %v4477_v3, %v12063_v62  ;;  %v9610_v6 = vadd.f32 %v4027_v8, %v12067_v12  ;;  %v4479_v15 = vpop.f32.mrb[31].mxu1  ;;  %7596 = vmatprep.subr.bf16.mxu1 %v10550_v36  ;;  %v5500_v53 = vmax.f32 %v9639_v52, 0.0  ;;  %v5499_v40 = vmax.f32 %v9608_v24, 0.0  ;;  %v10554_v36 = vld [vmem:[#allocation8 + $0xa8] ss:$16 sps:$4 sm:$0xff]   ;;  %v10995_v3 = vld [vmem:[#allocation2 + $0xd8] sm:$0xff] }
 0x296   :  { %v5506_v42 = vmax.f32 %v9609_v22, 0.0  ;;  %v9642_v17 = vadd.f32 %v4479_v15, %v12071_v21  ;;  %4874 = vmatmul.mubr.bf16.gmra.mrb[40].mxu0 %v10994_v39  ;;  %v5501_v49 = vmax.f32 %v9640_v0, 0.0  ;;  %v10559_v59 = vld [vmem:[#allocation8 + $0xc4] ss:$16 sps:$4 sm:$0xff]   ;;  %v10562_v52 = vld [vmem:[#allocation8 + $0xcc] ss:$16 sps:$4 sm:$0xff]  }
 0x297   :  { %v5508_v61 = vmax.f32 %v9641_v35, 0.0  ;;  %v5507_v58 = vmax.f32 %v9610_v6, 0.0  ;;  %5326 = vmatmul.mubr.bf16.gmra.mrb[40].mxu1 %v10994_v39  ;;  %7145 = vmatpush1.bf16.msra.mxu0 %v10545_v60  ;;  %v10557_v56 = vld [vmem:[#allocation8 + $0xc0] ss:$16 sps:$4 sm:$0xff]   ;;  %v10560_v60 = vld [vmem:[#allocation8 + $0xc8] ss:$16 sps:$4 sm:$0xff]  }
 0x298   :  { %v12207_v62 = vpack.c.bf16 %v5506_v42, %v5498_v18  ;;  %v5509_v12 = vmax.f32 %v9642_v17, 0.0  ;;  %7597 = vmatpush1.bf16.msra.mxu1 %v10548_v11  ;;  %7146 = vmatprep.subr.bf16.mxu0 %v10553_v14  ;;  %v10565_v0 = vld [vmem:[#allocation8 + $0xe4] ss:$16 sps:$4 sm:$0xff]   ;;  %v10568_v22 = vld [vmem:[#allocation8 + $0xec] ss:$16 sps:$4 sm:$0xff]  }
 0x299   :  { %v12209_v4 = vpack.c.bf16 %v5508_v61, %v5500_v53  ;;  %v12211_v21 = vpack.c.bf16 %v5507_v58, %v5499_v40  ;;  %7598 = vmatprep.subr.bf16.mxu1 %v10556_v10  ;;  %4883 = vmatprep.mubr.bf16.mxu0 %v11176_v2  ;;  %v10563_v8 = vld [vmem:[#allocation8 + $0xe0] ss:$16 sps:$4 sm:$0xff]   ;;  %v10566_v11 = vld [vmem:[#allocation8 + $0xe8] ss:$16 sps:$4 sm:$0xff]   ;;  %v10571_v14 = vld [vmem:[#allocation8 + $0x104] ss:$16 sps:$4 sm:$0xff]  }
 0x29a   :  { %v12214_v24 = vpack.c.bf16 %v5509_v12, %v5501_v49  ;;  %5335 = vmatprep.mubr.bf16.mxu1 %v11176_v2  ;;  %v10574_v35 = vld [vmem:[#allocation8 + $0x10c] ss:$16 sps:$4 sm:$0xff]   ;;  %v10569_v6 = vld [vmem:[#allocation8 + $0x100] ss:$16 sps:$4 sm:$0xff]   ;;  %v10572_v15 = vld [vmem:[#allocation8 + $0x108] ss:$16 sps:$4 sm:$0xff]  }
 0x29b   :  { %7147 = vmatpush1.bf16.msra.mxu0 %v10551_v26  ;;  %v10577_v10 = vld [vmem:[#allocation8 + $0x124] ss:$16 sps:$4 sm:$0xff]   ;;  %v10580_v18 = vld [vmem:[#allocation8 + $0x12c] ss:$16 sps:$4 sm:$0xff]   ;;  %v10575_v17 = vld [vmem:[#allocation8 + $0x120] ss:$16 sps:$4 sm:$0xff]  }
 0x29c   :  { %7599 = vmatpush1.bf16.msra.mxu1 %v10554_v36  ;;  %7148 = vmatprep.subr.bf16.mxu0 %v10559_v59  ;;  %v10996_v42 = vld [vmem:[#allocation2 + $0x110] sm:$0xff]  ;;  %v10581_v61 = vld [vmem:[#allocation8 + $0x140] ss:$16 sps:$4 sm:$0xff]  }
 0x29d   :  { %7600 = vmatprep.subr.bf16.mxu1 %v10562_v52  ;;  %v10578_v39 = vld [vmem:[#allocation8 + $0x128] ss:$16 sps:$4 sm:$0xff]   ;;  %v10583_v53 = vld [vmem:[#allocation8 + $0x144] ss:$16 sps:$4 sm:$0xff]   ;;  %v10586_v40 = vld [vmem:[#allocation8 + $0x14c] ss:$16 sps:$4 sm:$0xff]  }
 0x29e   :  { %4884 = vmatmul.mubr.bf16.gmra.mrb[44].mxu0 %v10995_v3  ;;  %v10584_v58 = vld [vmem:[#allocation8 + $0x148] ss:$16 sps:$4 sm:$0xff]   ;;  %v10589_v26 = vld [vmem:[#allocation8 + $0x164] ss:$16 sps:$4 sm:$0xff]   ;;  %v10592_v49 = vld [vmem:[#allocation8 + $0x16c] ss:$16 sps:$4 sm:$0xff]  }
 0x29f   :  { %5336 = vmatmul.mubr.bf16.gmra.mrb[44].mxu1 %v10995_v3  ;;  %7149 = vmatpush1.bf16.msra.mxu0 %v10557_v56  ;;  %v10997_v12 = vld [vmem:[#allocation2 + $0x148] sm:$0xff]  ;;  %v10590_v59 = vld [vmem:[#allocation8 + $0x168] ss:$16 sps:$4 sm:$0xff]  }
 0x2a0   :  { %7601 = vmatpush1.bf16.msra.mxu1 %v10560_v60  ;;  %7150 = vmatprep.subr.bf16.mxu0 %v10565_v0  ;;  %v10587_v36 = vld [vmem:[#allocation8 + $0x160] ss:$16 sps:$4 sm:$0xff]   ;;  %v10595_v52 = vld [vmem:[#allocation8 + $0x184] ss:$16 sps:$4 sm:$0xff]   ;;  %v10598_v56 = vld [vmem:[#allocation8 + $0x18c] ss:$16 sps:$4 sm:$0xff]  }
 0x2a1   :  { %7602 = vmatprep.subr.bf16.mxu1 %v10568_v22  ;;  %4893 = vmatprep.mubr.bf16.mxu0 %v11176_v2  ;;  %v10593_v60 = vld [vmem:[#allocation8 + $0x180] ss:$16 sps:$4 sm:$0xff]   ;;  %v10596_v0 = vld [vmem:[#allocation8 + $0x188] ss:$16 sps:$4 sm:$0xff]   ;;  %v10601_v22 = vld [vmem:[#allocation8 + $0x1a4] ss:$16 sps:$4 sm:$0xff]  }
 0x2a2   :  { %5345 = vmatprep.mubr.bf16.mxu1 %v11176_v2  ;;  %v10604_v3 = vld [vmem:[#allocation8 + $0x1ac] ss:$16 sps:$4 sm:$0xff]  }
 0x2a3   :  { %7151 = vmatpush1.bf16.msra.mxu0 %v10563_v8  ;;  %v10998_v8 = vld [vmem:[#allocation2 + $0x180] sm:$0xff] }
 0x2a4   :  { %7603 = vmatpush1.bf16.msra.mxu1 %v10566_v11  ;;  %7152 = vmatprep.subr.bf16.mxu0 %v10571_v14  ;;  %v10599_v11 = vld [vmem:[#allocation8 + $0x1a0] ss:$16 sps:$4 sm:$0xff]   ;;  %v10602_v14 = vld [vmem:[#allocation8 + $0x1a8] ss:$16 sps:$4 sm:$0xff]  }
 0x2a5   :  { %7604 = vmatprep.subr.bf16.mxu1 %v10574_v35  ;;  %v10607_v35 = vld [vmem:[#allocation8 + $0x1c4] ss:$16 sps:$4 sm:$0xff]  }
 0x2a6   :  { %4894 = vmatmul.mubr.bf16.gmra.mrb[48].mxu0 %v10996_v42 }
 0x2a7   :  { %5346 = vmatmul.mubr.bf16.gmra.mrb[48].mxu1 %v10996_v42  ;;  %7153 = vmatpush1.bf16.msra.mxu0 %v10569_v6  ;;  %v10610_v6 = vld [vmem:[#allocation8 + $0x1cc] ss:$16 sps:$4 sm:$0xff]  }
 0x2a8   :  { %7605 = vmatpush1.bf16.msra.mxu1 %v10572_v15  ;;  %7154 = vmatprep.subr.bf16.mxu0 %v10577_v10  ;;  %v10605_v15 = vld [vmem:[#allocation8 + $0x1c0] ss:$16 sps:$4 sm:$0xff]   ;;  %v10608_v10 = vld [vmem:[#allocation8 + $0x1c8] ss:$16 sps:$4 sm:$0xff]  }
 0x2a9   :  { %7606 = vmatprep.subr.bf16.mxu1 %v10580_v18  ;;  %4903 = vmatprep.mubr.bf16.mxu0 %v11176_v2  ;;  %v10613_v18 = vld [vmem:[#allocation8 + $0x1e4] ss:$16 sps:$4 sm:$0xff]  }
 0x2aa   :  { %5355 = vmatprep.mubr.bf16.mxu1 %v11176_v2  ;;  %v10999_v42 = vld [vmem:[#allocation2 + $0x1b8] sm:$0xff] }
 0x2ab   :  { %7155 = vmatpush1.bf16.msra.mxu0 %v10575_v17  ;;  %v10616_v17 = vld [vmem:[#allocation8 + $0x1ec] ss:$16 sps:$4 sm:$0xff]  }
 0x2ac   :  { %7607 = vmatpush1.bf16.msra.mxu1 %v10578_v39  ;;  %7156 = vmatprep.subr.bf16.mxu0 %v10583_v53  ;;  %v10611_v39 = vld [vmem:[#allocation8 + $0x1e0] ss:$16 sps:$4 sm:$0xff]   ;;  %v10614_v53 = vld [vmem:[#allocation8 + $0x1e8] ss:$16 sps:$4 sm:$0xff]  }
 0x2ad   :  { %7608 = vmatprep.subr.bf16.mxu1 %v10586_v40  ;;  %v10619_v40 = vld [vmem:[#allocation8 + $0x204] ss:$16 sps:$4 sm:$0xff]  }
 0x2ae   :  { %4904 = vmatmul.mubr.bf16.gmra.mrb[52].mxu0 %v10997_v12 }
 0x2af   :  { %5356 = vmatmul.mubr.bf16.gmra.mrb[52].mxu1 %v10997_v12  ;;  %7157 = vmatpush1.bf16.msra.mxu0 %v10581_v61  ;;  %v10617_v61 = vld [vmem:[#allocation8 + $0x200] ss:$16 sps:$4 sm:$0xff]   ;;  %v10626_v12 = vld [vmem:[#allocation8 + $0x228] ss:$16 sps:$4 sm:$0xff]  }
 0x2b0   :  { %7609 = vmatpush1.bf16.msra.mxu1 %v10584_v58  ;;  %7158 = vmatprep.subr.bf16.mxu0 %v10589_v26  ;;  %v10620_v58 = vld [vmem:[#allocation8 + $0x208] ss:$16 sps:$4 sm:$0xff]   ;;  %v10625_v26 = vld [vmem:[#allocation8 + $0x224] ss:$16 sps:$4 sm:$0xff]  }
 0x2b1   :  { %7610 = vmatprep.subr.bf16.mxu1 %v10592_v49  ;;  %4913 = vmatprep.mubr.bf16.mxu0 %v11176_v2  ;;  %v10628_v49 = vld [vmem:[#allocation8 + $0x22c] ss:$16 sps:$4 sm:$0xff]  }
 0x2b2   :  { %5365 = vmatprep.mubr.bf16.mxu1 %v11176_v2 }
 0x2b3   :  { %7159 = vmatpush1.bf16.msra.mxu0 %v10587_v36  ;;  %v10631_v36 = vld [vmem:[#allocation8 + $0x244] ss:$16 sps:$4 sm:$0xff]  }
 0x2b4   :  { %7611 = vmatpush1.bf16.msra.mxu1 %v10590_v59  ;;  %7160 = vmatprep.subr.bf16.mxu0 %v10595_v52  ;;  %v10634_v59 = vld [vmem:[#allocation8 + $0x24c] ss:$16 sps:$4 sm:$0xff]   ;;  %v10629_v52 = vld [vmem:[#allocation8 + $0x240] ss:$16 sps:$4 sm:$0xff]  }
 0x2b5   :  { %7612 = vmatprep.subr.bf16.mxu1 %v10598_v56  ;;  %v10632_v56 = vld [vmem:[#allocation8 + $0x248] ss:$16 sps:$4 sm:$0xff]  }
 0x2b6   :  { %4914 = vmatmul.mubr.bf16.gmra.mrb[56].mxu0 %v10998_v8 }
 0x2b7   :  { %5366 = vmatmul.mubr.bf16.gmra.mrb[56].mxu1 %v10998_v8  ;;  %7161 = vmatpush1.bf16.msra.mxu0 %v10593_v60  ;;  %v10637_v60 = vld [vmem:[#allocation8 + $0x264] ss:$16 sps:$4 sm:$0xff]   ;;  %v10641_v8 = vld [vmem:[#allocation8 + $0x280] ss:$16 sps:$4 sm:$0xff]  }
 0x2b8   :  { %7613 = vmatpush1.bf16.msra.mxu1 %v10596_v0  ;;  %7162 = vmatprep.subr.bf16.mxu0 %v10601_v22  ;;  %v10638_v0 = vld [vmem:[#allocation8 + $0x268] ss:$16 sps:$4 sm:$0xff]   ;;  %v10643_v22 = vld [vmem:[#allocation8 + $0x284] ss:$16 sps:$4 sm:$0xff]  }
 0x2b9   :  { %7614 = vmatprep.subr.bf16.mxu1 %v10604_v3  ;;  %4923 = vmatprep.mubr.bf16.mxu0 %v11176_v2  ;;  %v10646_v3 = vld [vmem:[#allocation8 + $0x28c] ss:$16 sps:$4 sm:$0xff]  }
 0x2ba   :  { %5375 = vmatprep.mubr.bf16.mxu1 %v11176_v2  ;;  %v10622_v2 = vld [vmem:[#allocation8 + $0x20c] ss:$16 sps:$4 sm:$0xff]  }
 0x2bb   :  { %7163 = vmatpush1.bf16.msra.mxu0 %v10599_v11  ;;  %v10644_v11 = vld [vmem:[#allocation8 + $0x288] ss:$16 sps:$4 sm:$0xff]  }
 0x2bc   :  { %7615 = vmatpush1.bf16.msra.mxu1 %v10602_v14  ;;  %7164 = vmatprep.subr.bf16.mxu0 %v10607_v35  ;;  %v10649_v14 = vld [vmem:[#allocation8 + $0x2a4] ss:$16 sps:$4 sm:$0xff]   ;;  %v10650_v35 = vld [vmem:[#allocation8 + $0x2a8] ss:$16 sps:$4 sm:$0xff]  }
 0x2bd   :  { %7616 = vmatprep.subr.bf16.mxu1 %v10610_v6  ;;  %v10655_v6 = vld [vmem:[#allocation8 + $0x2c4] ss:$16 sps:$4 sm:$0xff]  }
 0x2be   :  { %4924 = vmatmul.mubr.bf16.gmra.mrb[60].mxu0 %v10999_v42 }
 0x2bf   :  { %5376 = vmatmul.mubr.bf16.gmra.mrb[60].mxu1 %v10999_v42  ;;  %7165 = vmatpush1.bf16.msra.mxu0 %v10605_v15  ;;  %v10658_v15 = vld [vmem:[#allocation8 + $0x2cc] ss:$16 sps:$4 sm:$0xff]   ;;  %v10661_v42 = vld [vmem:[#allocation8 + $0x2e4] ss:$16 sps:$4 sm:$0xff]  }
 0x2c0   :  { %7168 = vmatprep.mubr.bf16.mxu0 %v12093_v28  ;;  %7617 = vmatpush1.bf16.msra.mxu1 %v10608_v10  ;;  %v10653_v10 = vld [vmem:[#allocation8 + $0x2c0] ss:$16 sps:$4 sm:$0xff]  }
 0x2c1   :  { %7620 = vmatprep.mubr.bf16.mxu1 %v12093_v28  ;;  %7166 = vmatprep.subr.bf16.mxu0 %v10613_v18  ;;  %v10623_v28 = vld [vmem:[#allocation8 + $0x220] ss:$16 sps:$4 sm:$0xff]   ;;  %v10656_v18 = vld [vmem:[#allocation8 + $0x2c8] ss:$16 sps:$4 sm:$0xff]  }
 0x2c2   :  { %7618 = vmatprep.subr.bf16.mxu1 %v10616_v17  ;;  %v10662_v17 = vld [vmem:[#allocation8 + $0x2e8] ss:$16 sps:$4 sm:$0xff]  }
 0x2c3   :  { %7167 = vmatpush1.bf16.msra.mxu0 %v10611_v39  ;;  %v10667_v39 = vld [vmem:[#allocation8 + $0x304] ss:$16 sps:$4 sm:$0xff]  }
 0x2c4   :  { %7619 = vmatpush1.bf16.msra.mxu1 %v10614_v53  ;;  %7249 = vmatprep.subr.bf16.mxu0 %v10619_v40  ;;  %v10670_v53 = vld [vmem:[#allocation8 + $0x30c] ss:$16 sps:$4 sm:$0xff]   ;;  %v10665_v40 = vld [vmem:[#allocation8 + $0x300] ss:$16 sps:$4 sm:$0xff]  }
 0x2c5   :  { %7701 = vmatprep.subr.bf16.mxu1 %v10622_v2  ;;  %v10668_v2 = vld [vmem:[#allocation8 + $0x308] ss:$16 sps:$4 sm:$0xff]  }
 0x2c6   :  { %7169 = vmatmul.mubr.bf16.vlgmr.msra.gmra.mrb[64].mxu0 %v12088_v47 }
 0x2c7   :  { %7621 = vmatmul.mubr.bf16.vlgmr.msra.gmra.mrb[64].mxu1 %v12088_v47  ;;  %7178 = vmatprep.mubr.bf16.mxu0 %v12109_v27  ;;  %v10640_v47 = vld [vmem:[#allocation8 + $0x26c] ss:$16 sps:$4 sm:$0xff]  }
 0x2c8   :  { %7250 = vmatpush1.bf16.msra.mxu0 %v10617_v61  ;;  %7630 = vmatprep.mubr.bf16.mxu1 %v12109_v27  ;;  %v10635_v27 = vld [vmem:[#allocation8 + $0x260] ss:$16 sps:$4 sm:$0xff]   ;;  %v10673_v61 = vld [vmem:[#allocation8 + $0x324] ss:$16 sps:$4 sm:$0xff]  }
 0x2c9   :  { %7702 = vmatpush1.bf16.msra.mxu1 %v10620_v58  ;;  %7251 = vmatprep.subr.bf16.mxu0 %v10625_v26  ;;  %v10674_v58 = vld [vmem:[#allocation8 + $0x328] ss:$16 sps:$4 sm:$0xff]   ;;  %v10679_v26 = vld [vmem:[#allocation8 + $0x344] ss:$16 sps:$4 sm:$0xff]  }
 0x2ca   :  { %7703 = vmatprep.subr.bf16.mxu1 %v10628_v49  ;;  %v10682_v49 = vld [vmem:[#allocation8 + $0x34c] ss:$16 sps:$4 sm:$0xff]  }
 0x2cc   :  { %7252 = vmatpush1.bf16.msra.mxu0 %v10623_v28  ;;  %v10677_v28 = vld [vmem:[#allocation8 + $0x340] ss:$16 sps:$4 sm:$0xff]  }
 0x2cd   :  { %7704 = vmatpush1.bf16.msra.mxu1 %v10626_v12  ;;  %7253 = vmatprep.subr.bf16.mxu0 %v10631_v36  ;;  %v10680_v12 = vld [vmem:[#allocation8 + $0x348] ss:$16 sps:$4 sm:$0xff]   ;;  %v10685_v36 = vld [vmem:[#allocation8 + $0x364] ss:$16 sps:$4 sm:$0xff]  }
 0x2ce   :  { %7179 = vmatmul.mubr.bf16.gmra.mrb[68].mxu0 %v12105_v5  ;;  %7705 = vmatprep.subr.bf16.mxu1 %v10634_v59  ;;  %v10686_v59 = vld [vmem:[#allocation8 + $0x368] ss:$16 sps:$4 sm:$0xff]  }
 0x2cf   :  { %7631 = vmatmul.mubr.bf16.gmra.mrb[68].mxu1 %v12105_v5  ;;  %7188 = vmatprep.mubr.bf16.mxu0 %v12125_v45  ;;  %v10652_v5 = vld [vmem:[#allocation8 + $0x2ac] ss:$16 sps:$4 sm:$0xff]  }
 0x2d0   :  { %7254 = vmatpush1.bf16.msra.mxu0 %v10629_v52  ;;  %7640 = vmatprep.mubr.bf16.mxu1 %v12125_v45  ;;  %v10647_v45 = vld [vmem:[#allocation8 + $0x2a0] ss:$16 sps:$4 sm:$0xff]   ;;  %v10691_v52 = vld [vmem:[#allocation8 + $0x384] ss:$16 sps:$4 sm:$0xff]  }
 0x2d1   :  { %7706 = vmatpush1.bf16.msra.mxu1 %v10632_v56  ;;  %7255 = vmatprep.subr.bf16.mxu0 %v10637_v60  ;;  %v10694_v56 = vld [vmem:[#allocation8 + $0x38c] ss:$16 sps:$4 sm:$0xff]   ;;  %v10689_v60 = vld [vmem:[#allocation8 + $0x380] ss:$16 sps:$4 sm:$0xff]  }
 0x2d2   :  { %7707 = vmatprep.subr.bf16.mxu1 %v10640_v47  ;;  %v10692_v47 = vld [vmem:[#allocation8 + $0x388] ss:$16 sps:$4 sm:$0xff]  }
 0x2d4   :  { %7256 = vmatpush1.bf16.msra.mxu0 %v10635_v27  ;;  %v10697_v27 = vld [vmem:[#allocation8 + $0x3a4] ss:$16 sps:$4 sm:$0xff]  }
 0x2d5   :  { %7708 = vmatpush1.bf16.msra.mxu1 %v10638_v0  ;;  %7257 = vmatprep.subr.bf16.mxu0 %v10643_v22  ;;  %v10698_v0 = vld [vmem:[#allocation8 + $0x3a8] ss:$16 sps:$4 sm:$0xff]   ;;  %v10703_v22 = vld [vmem:[#allocation8 + $0x3c4] ss:$16 sps:$4 sm:$0xff]  }
 0x2d6   :  { %7189 = vmatmul.mubr.bf16.gmra.mrb[72].mxu0 %v12121_v55  ;;  %7709 = vmatprep.subr.bf16.mxu1 %v10646_v3  ;;  %v10706_v3 = vld [vmem:[#allocation8 + $0x3cc] ss:$16 sps:$4 sm:$0xff]  }
 0x2d7   :  { %7641 = vmatmul.mubr.bf16.gmra.mrb[72].mxu1 %v12121_v55  ;;  %7198 = vmatprep.mubr.bf16.mxu0 %v12141_v38  ;;  %v10664_v55 = vld [vmem:[#allocation8 + $0x2ec] ss:$16 sps:$4 sm:$0xff]  }
 0x2d8   :  { %7258 = vmatpush1.bf16.msra.mxu0 %v10641_v8  ;;  %7650 = vmatprep.mubr.bf16.mxu1 %v12141_v38  ;;  %v10659_v38 = vld [vmem:[#allocation8 + $0x2e0] ss:$16 sps:$4 sm:$0xff]  }
 0x2d9   :  { %7710 = vmatpush1.bf16.msra.mxu1 %v10644_v11  ;;  %7259 = vmatprep.subr.bf16.mxu0 %v10649_v14  ;;  %v10701_v8 = vld [vmem:[#allocation8 + $0x3c0] ss:$16 sps:$4 sm:$0xff]   ;;  %v10704_v11 = vld [vmem:[#allocation8 + $0x3c8] ss:$16 sps:$4 sm:$0xff]   ;;  %v10709_v14 = vld [vmem:[#allocation8 + $0x3e4] ss:$16 sps:$4 sm:$0xff]  }
 0x2da   :  { %7711 = vmatprep.subr.bf16.mxu1 %v10652_v5  ;;  %v10710_v5 = vld [vmem:[#allocation8 + $0x3e8] ss:$16 sps:$4 sm:$0xff]  }
 0x2dc   :  { %7260 = vmatpush1.bf16.msra.mxu0 %v10647_v45  ;;  %v10715_v45 = vld [vmem:[#allocation8 + $0x404] ss:$16 sps:$4 sm:$0xff]  }
 0x2dd   :  { %7712 = vmatpush1.bf16.msra.mxu1 %v10650_v35  ;;  %7261 = vmatprep.subr.bf16.mxu0 %v10655_v6  ;;  %v10718_v35 = vld [vmem:[#allocation8 + $0x40c] ss:$16 sps:$4 sm:$0xff]   ;;  %v10713_v6 = vld [vmem:[#allocation8 + $0x400] ss:$16 sps:$4 sm:$0xff]  }
 0x2de   :  { %7199 = vmatmul.mubr.bf16.gmra.mrb[76].mxu0 %v12137_v34  ;;  %7713 = vmatprep.subr.bf16.mxu1 %v10658_v15  ;;  %v10716_v15 = vld [vmem:[#allocation8 + $0x408] ss:$16 sps:$4 sm:$0xff]  }
 0x2df   :  { %7651 = vmatmul.mubr.bf16.gmra.mrb[76].mxu1 %v12137_v34  ;;  %7208 = vmatprep.mubr.bf16.mxu0 %v12159_v32  ;;  %v10676_v34 = vld [vmem:[#allocation8 + $0x32c] ss:$16 sps:$4 sm:$0xff]  }
 0x2e0   :  { %7262 = vmatpush1.bf16.msra.mxu0 %v10653_v10  ;;  %7660 = vmatprep.mubr.bf16.mxu1 %v12159_v32  ;;  %v10671_v32 = vld [vmem:[#allocation8 + $0x320] ss:$16 sps:$4 sm:$0xff]   ;;  %v10721_v10 = vld [vmem:[#allocation8 + $0x424] ss:$16 sps:$4 sm:$0xff]  }
 0x2e1   :  { %7714 = vmatpush1.bf16.msra.mxu1 %v10656_v18  ;;  %7263 = vmatprep.subr.bf16.mxu0 %v10661_v42  ;;  %v10722_v18 = vld [vmem:[#allocation8 + $0x428] ss:$16 sps:$4 sm:$0xff]   ;;  %v10727_v42 = vld [vmem:[#allocation8 + $0x444] ss:$16 sps:$4 sm:$0xff]  }
 0x2e2   :  { %7715 = vmatprep.subr.bf16.mxu1 %v10664_v55  ;;  %v10730_v55 = vld [vmem:[#allocation8 + $0x44c] ss:$16 sps:$4 sm:$0xff]  }
 0x2e4   :  { %7264 = vmatpush1.bf16.msra.mxu0 %v10659_v38  ;;  %v10725_v38 = vld [vmem:[#allocation8 + $0x440] ss:$16 sps:$4 sm:$0xff]  }
 0x2e5   :  { %7716 = vmatpush1.bf16.msra.mxu1 %v10662_v17  ;;  %7265 = vmatprep.subr.bf16.mxu0 %v10667_v39  ;;  %v10728_v17 = vld [vmem:[#allocation8 + $0x448] ss:$16 sps:$4 sm:$0xff]   ;;  %v10733_v39 = vld [vmem:[#allocation8 + $0x464] ss:$16 sps:$4 sm:$0xff]  }
 0x2e6   :  { %7209 = vmatmul.mubr.bf16.gmra.mrb[80].mxu0 %v12154_v41  ;;  %7717 = vmatprep.subr.bf16.mxu1 %v10670_v53  ;;  %v10734_v53 = vld [vmem:[#allocation8 + $0x468] ss:$16 sps:$4 sm:$0xff]  }
 0x2e7   :  { %7661 = vmatmul.mubr.bf16.gmra.mrb[80].mxu1 %v12154_v41  ;;  %7218 = vmatprep.mubr.bf16.mxu0 %v12175_v29  ;;  %v10688_v41 = vld [vmem:[#allocation8 + $0x36c] ss:$16 sps:$4 sm:$0xff]  }
 0x2e8   :  { %7266 = vmatpush1.bf16.msra.mxu0 %v10665_v40  ;;  %7670 = vmatprep.mubr.bf16.mxu1 %v12175_v29  ;;  %v10683_v29 = vld [vmem:[#allocation8 + $0x360] ss:$16 sps:$4 sm:$0xff]   ;;  %v10739_v40 = vld [vmem:[#allocation8 + $0x484] ss:$16 sps:$4 sm:$0xff]  }
 0x2e9   :  { %7718 = vmatpush1.bf16.msra.mxu1 %v10668_v2  ;;  %7267 = vmatprep.subr.bf16.mxu0 %v10673_v61  ;;  %v10742_v2 = vld [vmem:[#allocation8 + $0x48c] ss:$16 sps:$4 sm:$0xff]   ;;  %v10737_v61 = vld [vmem:[#allocation8 + $0x480] ss:$16 sps:$4 sm:$0xff]  }
 0x2ea   :  { %7719 = vmatprep.subr.bf16.mxu1 %v10676_v34  ;;  %v10740_v34 = vld [vmem:[#allocation8 + $0x488] ss:$16 sps:$4 sm:$0xff]  }
 0x2ec   :  { %7268 = vmatpush1.bf16.msra.mxu0 %v10671_v32  ;;  %v10745_v32 = vld [vmem:[#allocation8 + $0x4a4] ss:$16 sps:$4 sm:$0xff]  }
 0x2ed   :  { %7720 = vmatpush1.bf16.msra.mxu1 %v10674_v58  ;;  %7269 = vmatprep.subr.bf16.mxu0 %v10679_v26  ;;  %v10746_v58 = vld [vmem:[#allocation8 + $0x4a8] ss:$16 sps:$4 sm:$0xff]   ;;  %v10751_v26 = vld [vmem:[#allocation8 + $0x4c4] ss:$16 sps:$4 sm:$0xff]  }
 0x2ee   :  { %7219 = vmatmul.mubr.bf16.gmra.mrb[84].mxu0 %v12171_v16  ;;  %7721 = vmatprep.subr.bf16.mxu1 %v10682_v49  ;;  %v10754_v49 = vld [vmem:[#allocation8 + $0x4cc] ss:$16 sps:$4 sm:$0xff]  }
 0x2ef   :  { %7671 = vmatmul.mubr.bf16.gmra.mrb[84].mxu1 %v12171_v16  ;;  %7228 = vmatprep.mubr.bf16.mxu0 %v12193_v54  ;;  %v10700_v16 = vld [vmem:[#allocation8 + $0x3ac] ss:$16 sps:$4 sm:$0xff]  }
 0x2f0   :  { %7270 = vmatpush1.bf16.msra.mxu0 %v10677_v28  ;;  %7680 = vmatprep.mubr.bf16.mxu1 %v12193_v54  ;;  %v10695_v54 = vld [vmem:[#allocation8 + $0x3a0] ss:$16 sps:$4 sm:$0xff]  }
 0x2f1   :  { %7722 = vmatpush1.bf16.msra.mxu1 %v10680_v12  ;;  %7271 = vmatprep.subr.bf16.mxu0 %v10685_v36  ;;  %v10749_v28 = vld [vmem:[#allocation8 + $0x4c0] ss:$16 sps:$4 sm:$0xff]   ;;  %v10752_v12 = vld [vmem:[#allocation8 + $0x4c8] ss:$16 sps:$4 sm:$0xff]   ;;  %v10757_v36 = vld [vmem:[#allocation8 + $0x4e4] ss:$16 sps:$4 sm:$0xff]  }
 0x2f2   :  { %7723 = vmatprep.subr.bf16.mxu1 %v10688_v41  ;;  %v10758_v41 = vld [vmem:[#allocation8 + $0x4e8] ss:$16 sps:$4 sm:$0xff]  }
 0x2f4   :  { %7272 = vmatpush1.bf16.msra.mxu0 %v10683_v29  ;;  %v10763_v29 = vld [vmem:[#allocation8 + $0x504] ss:$16 sps:$4 sm:$0xff]  }
 0x2f5   :  { %7724 = vmatpush1.bf16.msra.mxu1 %v10686_v59  ;;  %7273 = vmatprep.subr.bf16.mxu0 %v10691_v52  ;;  %v10766_v59 = vld [vmem:[#allocation8 + $0x50c] ss:$16 sps:$4 sm:$0xff]   ;;  %v10761_v52 = vld [vmem:[#allocation8 + $0x500] ss:$16 sps:$4 sm:$0xff]  }
 0x2f6   :  { %7229 = vmatmul.mubr.bf16.gmra.mrb[88].mxu0 %v12189_v57  ;;  %7725 = vmatprep.subr.bf16.mxu1 %v10694_v56  ;;  %v10764_v56 = vld [vmem:[#allocation8 + $0x508] ss:$16 sps:$4 sm:$0xff]  }
 0x2f7   :  { %7681 = vmatmul.mubr.bf16.gmra.mrb[88].mxu1 %v12189_v57  ;;  %7238 = vmatprep.mubr.bf16.mxu0 %v12211_v21  ;;  %v10712_v57 = vld [vmem:[#allocation8 + $0x3ec] ss:$16 sps:$4 sm:$0xff]  }
 0x2f8   :  { %7274 = vmatpush1.bf16.msra.mxu0 %v10689_v60  ;;  %7690 = vmatprep.mubr.bf16.mxu1 %v12211_v21  ;;  %v10707_v21 = vld [vmem:[#allocation8 + $0x3e0] ss:$16 sps:$4 sm:$0xff]   ;;  %v10769_v60 = vld [vmem:[#allocation8 + $0x524] ss:$16 sps:$4 sm:$0xff]  }
 0x2f9   :  { %7726 = vmatpush1.bf16.msra.mxu1 %v10692_v47  ;;  %7275 = vmatprep.subr.bf16.mxu0 %v10697_v27  ;;  %v10770_v47 = vld [vmem:[#allocation8 + $0x528] ss:$16 sps:$4 sm:$0xff]   ;;  %v10775_v27 = vld [vmem:[#allocation8 + $0x544] ss:$16 sps:$4 sm:$0xff]  }
 0x2fa   :  { %7727 = vmatprep.subr.bf16.mxu1 %v10700_v16  ;;  %v10778_v16 = vld [vmem:[#allocation8 + $0x54c] ss:$16 sps:$4 sm:$0xff]  }
 0x2fc   :  { %7276 = vmatpush1.bf16.msra.mxu0 %v10695_v54  ;;  %v10773_v54 = vld [vmem:[#allocation8 + $0x540] ss:$16 sps:$4 sm:$0xff]  }
 0x2fd   :  { %7728 = vmatpush1.bf16.msra.mxu1 %v10698_v0  ;;  %7277 = vmatprep.subr.bf16.mxu0 %v10703_v22  ;;  %v10776_v0 = vld [vmem:[#allocation8 + $0x548] ss:$16 sps:$4 sm:$0xff]   ;;  %v10781_v22 = vld [vmem:[#allocation8 + $0x564] ss:$16 sps:$4 sm:$0xff]  }
 0x2fe   :  { %7239 = vmatmul.mubr.bf16.gmra.mrb[92].mxu0 %v12207_v62  ;;  %7729 = vmatprep.subr.bf16.mxu1 %v10706_v3  ;;  %v10782_v3 = vld [vmem:[#allocation8 + $0x568] ss:$16 sps:$4 sm:$0xff]  }
 0x2ff   :  { %7691 = vmatmul.mubr.bf16.gmra.mrb[92].mxu1 %v12207_v62  ;;  %7281 = vmatprep.mubr.bf16.mxu0 %v12095_v51  ;;  %v10724_v62 = vld [vmem:[#allocation8 + $0x42c] ss:$16 sps:$4 sm:$0xff]  }
 0x300   :  { %7278 = vmatpush1.bf16.msra.mxu0 %v10701_v8  ;;  %7733 = vmatprep.mubr.bf16.mxu1 %v12095_v51  ;;  %v10719_v51 = vld [vmem:[#allocation8 + $0x420] ss:$16 sps:$4 sm:$0xff]   ;;  %v10787_v8 = vld [vmem:[#allocation8 + $0x584] ss:$16 sps:$4 sm:$0xff]  }
 0x301   :  { %7730 = vmatpush1.bf16.msra.mxu1 %v10704_v11  ;;  %7279 = vmatprep.subr.bf16.mxu0 %v10709_v14  ;;  %v10790_v11 = vld [vmem:[#allocation8 + $0x58c] ss:$16 sps:$4 sm:$0xff]   ;;  %v10785_v14 = vld [vmem:[#allocation8 + $0x580] ss:$16 sps:$4 sm:$0xff]  }
 0x302   :  { %7731 = vmatprep.subr.bf16.mxu1 %v10712_v57  ;;  %v10788_v57 = vld [vmem:[#allocation8 + $0x588] ss:$16 sps:$4 sm:$0xff]  }
 0x304   :  { %7280 = vmatpush1.bf16.msra.mxu0 %v10707_v21  ;;  %v10793_v21 = vld [vmem:[#allocation8 + $0x5a4] ss:$16 sps:$4 sm:$0xff]  }
 0x305   :  { %7732 = vmatpush1.bf16.msra.mxu1 %v10710_v5  ;;  %7362 = vmatprep.subr.bf16.mxu0 %v10715_v45  ;;  %v10794_v5 = vld [vmem:[#allocation8 + $0x5a8] ss:$16 sps:$4 sm:$0xff]   ;;  %v10799_v45 = vld [vmem:[#allocation8 + $0x5c4] ss:$16 sps:$4 sm:$0xff]  }
 0x306   :  { %7814 = vmatprep.subr.bf16.mxu1 %v10718_v35  ;;  %v10802_v35 = vld [vmem:[#allocation8 + $0x5cc] ss:$16 sps:$4 sm:$0xff]  }
 0x307   :  { %7282 = vmatmul.mubr.bf16.vlgmr.msra.gmra.mrb[64].mxu0 %v12091_v44 }
 0x308   :  { %7734 = vmatmul.mubr.bf16.vlgmr.msra.gmra.mrb[64].mxu1 %v12091_v44  ;;  %7291 = vmatprep.mubr.bf16.mxu0 %v12111_v30  ;;  %v10736_v44 = vld [vmem:[#allocation8 + $0x46c] ss:$16 sps:$4 sm:$0xff]  }
 0x309   :  { %7743 = vmatprep.mubr.bf16.mxu1 %v12111_v30  ;;  %7363 = vmatpush1.bf16.msra.mxu0 %v10713_v6  ;;  %v10731_v30 = vld [vmem:[#allocation8 + $0x460] ss:$16 sps:$4 sm:$0xff]  }
 0x30a   :  { %7815 = vmatpush1.bf16.msra.mxu1 %v10716_v15  ;;  %7364 = vmatprep.subr.bf16.mxu0 %v10721_v10  ;;  %v10797_v6 = vld [vmem:[#allocation8 + $0x5c0] ss:$16 sps:$4 sm:$0xff]   ;;  %v10800_v15 = vld [vmem:[#allocation8 + $0x5c8] ss:$16 sps:$4 sm:$0xff]   ;;  %v10805_v10 = vld [vmem:[#allocation8 + $0x5e4] ss:$16 sps:$4 sm:$0xff]  }
 0x30b   :  { %7816 = vmatprep.subr.bf16.mxu1 %v10724_v62  ;;  %v10806_v62 = vld [vmem:[#allocation8 + $0x5e8] ss:$16 sps:$4 sm:$0xff]  }
 0x30d   :  { %7365 = vmatpush1.bf16.msra.mxu0 %v10719_v51  ;;  %v10811_v51 = vld [vmem:[#allocation8 + $0x604] ss:$16 sps:$4 sm:$0xff]  }
 0x30e   :  { %7817 = vmatpush1.bf16.msra.mxu1 %v10722_v18  ;;  %7366 = vmatprep.subr.bf16.mxu0 %v10727_v42  ;;  %v10814_v18 = vld [vmem:[#allocation8 + $0x60c] ss:$16 sps:$4 sm:$0xff]   ;;  %v1316_v42 = vsub.s32 4, %v12047_v63 }
 0x30f   :  { %7292 = vmatmul.mubr.bf16.gmra.mrb[68].mxu0 %v12107_v1  ;;  %7818 = vmatprep.subr.bf16.mxu1 %v10730_v55  ;;  %v1324_v55 = vsub.s32 6, %v12047_v63 }
 0x310   :  { %7744 = vmatmul.mubr.bf16.gmra.mrb[68].mxu1 %v12107_v1  ;;  %7301 = vmatprep.mubr.bf16.mxu0 %v12127_v7  ;;  %v10748_v1 = vld [vmem:[#allocation8 + $0x4ac] ss:$16 sps:$4 sm:$0xff]  }
 0x311   :  { %7753 = vmatprep.mubr.bf16.mxu1 %v12127_v7  ;;  %7367 = vmatpush1.bf16.msra.mxu0 %v10725_v38  ;;  %v10743_v7 = vld [vmem:[#allocation8 + $0x4a0] ss:$16 sps:$4 sm:$0xff]   ;;  %v1320_v38 = vsub.s32 5, %v12047_v63 }
 0x312   :  { %7819 = vmatpush1.bf16.msra.mxu1 %v10728_v17  ;;  %7368 = vmatprep.subr.bf16.mxu0 %v10733_v39  ;;  %v11000_v17 = vld [vmem:[#allocation6] sm:$0xff] }
 0x313   :  { %7820 = vmatprep.subr.bf16.mxu1 %v10736_v44  ;;  %v12293_v39 = vrot.slane %v11000_v17, %v1316_v42  ;;  %v12295_v44 = vrot.slane %v11000_v17, %v1324_v55 }
 0x315   :  { %7369 = vmatpush1.bf16.msra.mxu0 %v10731_v30  ;;  %v12297_v30 = vrot.slane %v11000_v17, %v1320_v38  ;;  %v10823_v38 = vld [vmem:[#allocation8 + $0x644] ss:$16 sps:$4 sm:$0xff]  }
 0x316   :  { %7821 = vmatpush1.bf16.msra.mxu1 %v10734_v53  ;;  %7370 = vmatprep.subr.bf16.mxu0 %v10739_v40 }
 0x317   :  { %7302 = vmatmul.mubr.bf16.gmra.mrb[72].mxu0 %v12123_v13  ;;  %7822 = vmatprep.subr.bf16.mxu1 %v10742_v2 }
 0x318   :  { %7754 = vmatmul.mubr.bf16.gmra.mrb[72].mxu1 %v12123_v13  ;;  %7311 = vmatprep.mubr.bf16.mxu0 %v12143_v20  ;;  %v10760_v13 = vld [vmem:[#allocation8 + $0x4ec] ss:$16 sps:$4 sm:$0xff]  }
 0x319   :  { %7763 = vmatprep.mubr.bf16.mxu1 %v12143_v20  ;;  %7371 = vmatpush1.bf16.msra.mxu0 %v10737_v61  ;;  %v10755_v20 = vld [vmem:[#allocation8 + $0x4e0] ss:$16 sps:$4 sm:$0xff]  }
 0x31a   :  { %7823 = vmatpush1.bf16.msra.mxu1 %v10740_v34  ;;  %7372 = vmatprep.subr.bf16.mxu0 %v10745_v32 }
 0x31b   :  { %7824 = vmatprep.subr.bf16.mxu1 %v10748_v1 }
 0x31d   :  { %7373 = vmatpush1.bf16.msra.mxu0 %v10743_v7 }
 0x31e   :  { %7825 = vmatpush1.bf16.msra.mxu1 %v10746_v58  ;;  %7374 = vmatprep.subr.bf16.mxu0 %v10751_v26 }
 0x31f   :  { %7312 = vmatmul.mubr.bf16.gmra.mrb[76].mxu0 %v12139_v19  ;;  %7826 = vmatprep.subr.bf16.mxu1 %v10754_v49 }
 0x320   :  { %7764 = vmatmul.mubr.bf16.gmra.mrb[76].mxu1 %v12139_v19  ;;  %7321 = vmatprep.mubr.bf16.mxu0 %v12161_v43  ;;  %v10772_v19 = vld [vmem:[#allocation8 + $0x52c] ss:$16 sps:$4 sm:$0xff]  }
 0x321   :  { %7773 = vmatprep.mubr.bf16.mxu1 %v12161_v43  ;;  %7375 = vmatpush1.bf16.msra.mxu0 %v10749_v28  ;;  %v10767_v43 = vld [vmem:[#allocation8 + $0x520] ss:$16 sps:$4 sm:$0xff]  }
 0x322   :  { %7827 = vmatpush1.bf16.msra.mxu1 %v10752_v12  ;;  %7376 = vmatprep.subr.bf16.mxu0 %v10757_v36 }
 0x323   :  { %7828 = vmatprep.subr.bf16.mxu1 %v10760_v13 }
 0x325   :  { %7377 = vmatpush1.bf16.msra.mxu0 %v10755_v20 }
 0x326   :  { %7829 = vmatpush1.bf16.msra.mxu1 %v10758_v41  ;;  %7378 = vmatprep.subr.bf16.mxu0 %v10763_v29 }
 0x327   :  { %7322 = vmatmul.mubr.bf16.gmra.mrb[80].mxu0 %v12157_v25  ;;  %7830 = vmatprep.subr.bf16.mxu1 %v10766_v59 }
 0x328   :  { %7774 = vmatmul.mubr.bf16.gmra.mrb[80].mxu1 %v12157_v25  ;;  %7331 = vmatprep.mubr.bf16.mxu0 %v12178_v31  ;;  %v10784_v25 = vld [vmem:[#allocation8 + $0x56c] ss:$16 sps:$4 sm:$0xff]  }
 0x329   :  { %7783 = vmatprep.mubr.bf16.mxu1 %v12178_v31  ;;  %7379 = vmatpush1.bf16.msra.mxu0 %v10761_v52  ;;  %v10779_v31 = vld [vmem:[#allocation8 + $0x560] ss:$16 sps:$4 sm:$0xff]  }
 0x32a   :  { %7831 = vmatpush1.bf16.msra.mxu1 %v10764_v56  ;;  %7380 = vmatprep.subr.bf16.mxu0 %v10769_v60 }
 0x32b   :  { %7832 = vmatprep.subr.bf16.mxu1 %v10772_v19 }
 0x32d   :  { %7381 = vmatpush1.bf16.msra.mxu0 %v10767_v43 }
 0x32e   :  { %7833 = vmatpush1.bf16.msra.mxu1 %v10770_v47  ;;  %7382 = vmatprep.subr.bf16.mxu0 %v10775_v27 }
 0x32f   :  { %7332 = vmatmul.mubr.bf16.gmra.mrb[84].mxu0 %v12173_v23  ;;  %7834 = vmatprep.subr.bf16.mxu1 %v10778_v16 }
 0x330   :  { %7784 = vmatmul.mubr.bf16.gmra.mrb[84].mxu1 %v12173_v23  ;;  %7341 = vmatprep.mubr.bf16.mxu0 %v12196_v37  ;;  %v10796_v23 = vld [vmem:[#allocation8 + $0x5ac] ss:$16 sps:$4 sm:$0xff]  }
 0x331   :  { %7793 = vmatprep.mubr.bf16.mxu1 %v12196_v37  ;;  %7383 = vmatpush1.bf16.msra.mxu0 %v10773_v54  ;;  %v10791_v37 = vld [vmem:[#allocation8 + $0x5a0] ss:$16 sps:$4 sm:$0xff]  }
 0x332   :  { %7835 = vmatpush1.bf16.msra.mxu1 %v10776_v0  ;;  %7384 = vmatprep.subr.bf16.mxu0 %v10781_v22  ;;  %v10809_v22 = vld [vmem:[#allocation8 + $0x600] ss:$16 sps:$4 sm:$0xff]  }
 0x333   :  { %7836 = vmatprep.subr.bf16.mxu1 %v10784_v25  ;;  %v10812_v25 = vld [vmem:[#allocation8 + $0x608] ss:$16 sps:$4 sm:$0xff]  }
 0x335   :  { %7385 = vmatpush1.bf16.msra.mxu0 %v10779_v31 }
 0x336   :  { %7837 = vmatpush1.bf16.msra.mxu1 %v10782_v3  ;;  %7386 = vmatprep.subr.bf16.mxu0 %v10787_v8 }
 0x337   :  { %7342 = vmatmul.mubr.bf16.gmra.mrb[88].mxu0 %v12191_v33  ;;  %7838 = vmatprep.subr.bf16.mxu1 %v10790_v11 }
 0x338   :  { %7794 = vmatmul.mubr.bf16.gmra.mrb[88].mxu1 %v12191_v33  ;;  %7351 = vmatprep.mubr.bf16.mxu0 %v12214_v24  ;;  %v10808_v33 = vld [vmem:[#allocation8 + $0x5ec] ss:$16 sps:$4 sm:$0xff]  }
 0x339   :  { %7803 = vmatprep.mubr.bf16.mxu1 %v12214_v24  ;;  %7387 = vmatpush1.bf16.msra.mxu0 %v10785_v14  ;;  %v10803_v24 = vld [vmem:[#allocation8 + $0x5e0] ss:$16 sps:$4 sm:$0xff]   ;;  %v10817_v14 = vld [vmem:[#allocation8 + $0x624] ss:$16 sps:$4 sm:$0xff]  }
 0x33a   :  { %7839 = vmatpush1.bf16.msra.mxu1 %v10788_v57  ;;  %7388 = vmatprep.subr.bf16.mxu0 %v10793_v21  ;;  %v10820_v57 = vld [vmem:[#allocation8 + $0x62c] ss:$16 sps:$4 sm:$0xff]  }
 0x33b   :  { %7840 = vmatprep.subr.bf16.mxu1 %v10796_v23 }
 0x33d   :  { %7389 = vmatpush1.bf16.msra.mxu0 %v10791_v37 }
 0x33e   :  { %7841 = vmatpush1.bf16.msra.mxu1 %v10794_v5  ;;  %7390 = vmatprep.subr.bf16.mxu0 %v10799_v45 }
 0x33f   :  { %7352 = vmatmul.mubr.bf16.gmra.mrb[92].mxu0 %v12209_v4  ;;  %7842 = vmatprep.subr.bf16.mxu1 %v10802_v35 }
 0x340   :  { %7804 = vmatmul.mubr.bf16.gmra.mrb[92].mxu1 %v12209_v4  ;;  %v1328_v4 = vsub.s32 7, %v12047_v63 }
 0x341   :  { %7391 = vmatpush1.bf16.msra.mxu0 %v10797_v6 }
 0x342   :  { %7843 = vmatpush1.bf16.msra.mxu1 %v10800_v15  ;;  %7392 = vmatprep.subr.bf16.mxu0 %v10805_v10  ;;  %v12299_v53 = vrot.slane %v11000_v17, %v1328_v4  ;;  %v10826_v4 = vld [vmem:[#allocation8 + $0x64c] ss:$16 sps:$4 sm:$0xff]  }
 0x343   :  { %7844 = vmatprep.subr.bf16.mxu1 %v10808_v33 }
 0x345   :  { %7393 = vmatpush1.bf16.msra.mxu0 %v10803_v24 }
 0x346   :  { %7845 = vmatpush1.bf16.msra.mxu1 %v10806_v62  ;;  %7475 = vmatprep.subr.bf16.mxu0 %v10811_v51  ;;  %v10815_v62 = vld [vmem:[#allocation8 + $0x620] ss:$16 sps:$4 sm:$0xff]   ;;  %v10818_v51 = vld [vmem:[#allocation8 + $0x628] ss:$16 sps:$4 sm:$0xff]  }
 0x347   :  { %7927 = vmatprep.subr.bf16.mxu1 %v10814_v18 }
 0x359   :  { %v4855_v40 = vpop.f32.mrb[32].mxu0 }
 0x35a   :  { %v9643_v2 = vadd.f32 %v4855_v40, %v12293_v39  ;;  %v5307_v61 = vpop.f32.mrb[32].mxu1  ;;  %v4857_v34 = vpop.f32.mrb[33].mxu0 }
 0x35b   :  { %v9675_v32 = vadd.f32 %v5307_v61, %v12295_v44  ;;  %v9644_v1 = vadd.f32 %v4857_v34, %v12297_v30  ;;  %v5309_v7 = vpop.f32.mrb[33].mxu1  ;;  %v4859_v58 = vpop.f32.mrb[34].mxu0 }
 0x35c   :  { %v9676_v26 = vadd.f32 %v5309_v7, %v12299_v53  ;;  %v9645_v49 = vadd.f32 %v4859_v58, %v12293_v39  ;;  %v5311_v28 = vpop.f32.mrb[34].mxu1  ;;  %v4861_v12 = vpop.f32.mrb[35].mxu0  ;;  %v5390_v41 = vmax.f32 %v9643_v2, 0.0 }
 0x35d   :  { %v9677_v36 = vadd.f32 %v5311_v28, %v12295_v44  ;;  %v9646_v13 = vadd.f32 %v4861_v12, %v12297_v30  ;;  %v5313_v20 = vpop.f32.mrb[35].mxu1  ;;  %v5392_v52 = vmax.f32 %v9675_v32, 0.0  ;;  %v5391_v56 = vmax.f32 %v9644_v1, 0.0  ;;  %v10824_v28 = vld [vmem:[#allocation8 + $0x648] ss:$16 sps:$4 sm:$0xff]  }
 0x35e   :  { %v5398_v29 = vmax.f32 %v9645_v49, 0.0  ;;  %v9678_v59 = vadd.f32 %v5313_v20, %v12299_v53  ;;  %v5393_v43 = vmax.f32 %v9676_v26, 0.0  ;;  %v10821_v49 = vld [vmem:[#allocation8 + $0x640] ss:$16 sps:$4 sm:$0xff]  }
 0x35f   :  { %v5400_v60 = vmax.f32 %v9677_v36, 0.0  ;;  %v5399_v19 = vmax.f32 %v9646_v13, 0.0 }
 0x360   :  { %v5518_v47 = vpack.c.bf16 %v5398_v29, %v5390_v41  ;;  %v5401_v27 = vmax.f32 %v9678_v59, 0.0  ;;  %v10829_v41 = vld [vmem:[#allocation8 + $0x664] ss:$16 sps:$4 sm:$0xff]   ;;  %v10832_v29 = vld [vmem:[#allocation8 + $0x66c] ss:$16 sps:$4 sm:$0xff]  }
 0x361   :  { %v12309_v16 = vpack.c.bf16 %v5400_v60, %v5392_v52  ;;  %v5519_v54 = vpack.c.bf16 %v5399_v19, %v5391_v56  ;;  %v4865_v0 = vpop.f32.mrb[36].mxu0 }
 0x362   :  { %v12311_v31 = vpack.c.bf16 %v5401_v27, %v5393_v43  ;;  %v9647_v3 = vadd.f32 %v4865_v0, %v12293_v39  ;;  %v5317_v8 = vpop.f32.mrb[36].mxu1  ;;  %v4867_v11 = vpop.f32.mrb[37].mxu0 }
 0x363   :  { %v9679_v21 = vadd.f32 %v5317_v8, %v12295_v44  ;;  %v9648_v23 = vadd.f32 %v4867_v11, %v12297_v30  ;;  %v5319_v37 = vpop.f32.mrb[37].mxu1  ;;  %v4869_v5 = vpop.f32.mrb[38].mxu0  ;;  %7394 = vmatprep.mubr.bf16.mxu0 %v5519_v54  ;;  %7846 = vmatprep.mubr.bf16.mxu1 %v5519_v54 }
 0x364   :  { %v9680_v45 = vadd.f32 %v5319_v37, %v12299_v53  ;;  %v9649_v35 = vadd.f32 %v4869_v5, %v12293_v39  ;;  %v5321_v6 = vpop.f32.mrb[38].mxu1  ;;  %v4871_v15 = vpop.f32.mrb[39].mxu0  ;;  %7395 = vmatmul.mubr.bf16.vlgmr.msra.gmra.mrb[64].mxu0 %v5518_v47  ;;  %7847 = vmatmul.mubr.bf16.vlgmr.msra.gmra.mrb[64].mxu1 %v5518_v47  ;;  %v5406_v18 = vmax.f32 %v9647_v3, 0.0  ;;  %v10830_v3 = vld [vmem:[#allocation8 + $0x668] ss:$16 sps:$4 sm:$0xff]  }
 0x365   :  { %v9681_v10 = vadd.f32 %v5321_v6, %v12295_v44  ;;  %v9650_v33 = vadd.f32 %v4871_v15, %v12297_v30  ;;  %v5323_v24 = vpop.f32.mrb[39].mxu1  ;;  %7476 = vmatpush1.bf16.msra.mxu0 %v10809_v22  ;;  %7928 = vmatpush1.bf16.msra.mxu1 %v10812_v25  ;;  %v5408_v17 = vmax.f32 %v9679_v21, 0.0  ;;  %v5407_v40 = vmax.f32 %v9648_v23, 0.0  ;;  %v10827_v25 = vld [vmem:[#allocation8 + $0x660] ss:$16 sps:$4 sm:$0xff]  }
 0x366   :  { %v5414_v42 = vmax.f32 %v9649_v35, 0.0  ;;  %v9682_v55 = vadd.f32 %v5323_v24, %v12299_v53  ;;  %7477 = vmatprep.subr.bf16.mxu0 %v10817_v14  ;;  %7929 = vmatprep.subr.bf16.mxu1 %v10820_v57  ;;  %v5409_v34 = vmax.f32 %v9680_v45, 0.0  ;;  %v10835_v57 = vld [vmem:[#allocation8 + $0x684] ss:$16 sps:$4 sm:$0xff]   ;;  %v10838_v21 = vld [vmem:[#allocation8 + $0x68c] ss:$16 sps:$4 sm:$0xff]  }
 0x367   :  { %v5416_v2 = vmax.f32 %v9681_v10, 0.0  ;;  %v5415_v61 = vmax.f32 %v9650_v33, 0.0 }
 0x368   :  { %v5526_v32 = vpack.c.bf16 %v5414_v42, %v5406_v18  ;;  %v5417_v1 = vmax.f32 %v9682_v55, 0.0 }
 0x369   :  { %v12321_v7 = vpack.c.bf16 %v5416_v2, %v5408_v17  ;;  %v5527_v58 = vpack.c.bf16 %v5415_v61, %v5407_v40  ;;  %v4875_v26 = vpop.f32.mrb[40].mxu0  ;;  %7478 = vmatpush1.bf16.msra.mxu0 %v10815_v62  ;;  %7930 = vmatpush1.bf16.msra.mxu1 %v10818_v51  ;;  %v10833_v62 = vld [vmem:[#allocation8 + $0x680] ss:$16 sps:$4 sm:$0xff]   ;;  %v10836_v51 = vld [vmem:[#allocation8 + $0x688] ss:$16 sps:$4 sm:$0xff]  }
 0x36a   :  { %v12323_v12 = vpack.c.bf16 %v5417_v1, %v5409_v34  ;;  %v9651_v36 = vadd.f32 %v4875_v26, %v12293_v39  ;;  %v5327_v13 = vpop.f32.mrb[40].mxu1  ;;  %v4877_v20 = vpop.f32.mrb[41].mxu0  ;;  %7479 = vmatprep.subr.bf16.mxu0 %v10823_v38  ;;  %7931 = vmatprep.subr.bf16.mxu1 %v10826_v4  ;;  %v10841_v4 = vld [vmem:[#allocation8 + $0x6a4] ss:$16 sps:$4 sm:$0xff]   ;;  %v10844_v17 = vld [vmem:[#allocation8 + $0x6ac] ss:$16 sps:$4 sm:$0xff]  }
 0x36b   :  { %v9683_v59 = vadd.f32 %v5327_v13, %v12295_v44  ;;  %v9652_v52 = vadd.f32 %v4877_v20, %v12297_v30  ;;  %v5329_v56 = vpop.f32.mrb[41].mxu1  ;;  %v4879_v60 = vpop.f32.mrb[42].mxu0  ;;  %7404 = vmatprep.mubr.bf16.mxu0 %v5527_v58  ;;  %7856 = vmatprep.mubr.bf16.mxu1 %v5527_v58  ;;  %v10839_v13 = vld [vmem:[#allocation8 + $0x6a0] ss:$16 sps:$4 sm:$0xff]   ;;  %v10842_v20 = vld [vmem:[#allocation8 + $0x6a8] ss:$16 sps:$4 sm:$0xff]  }
 0x36c   :  { %v9684_v19 = vadd.f32 %v5329_v56, %v12299_v53  ;;  %v9653_v43 = vadd.f32 %v4879_v60, %v12293_v39  ;;  %v5331_v47 = vpop.f32.mrb[42].mxu1  ;;  %v4881_v27 = vpop.f32.mrb[43].mxu0  ;;  %7405 = vmatmul.mubr.bf16.gmra.mrb[68].mxu0 %v5526_v32  ;;  %7857 = vmatmul.mubr.bf16.gmra.mrb[68].mxu1 %v5526_v32  ;;  %v5422_v8 = vmax.f32 %v9651_v36, 0.0  ;;  %v10850_v56 = vld [vmem:[#allocation8 + $0x6cc] ss:$16 sps:$4 sm:$0xff]  }
 0x36d   :  { %v9685_v54 = vadd.f32 %v5331_v47, %v12295_v44  ;;  %v9654_v0 = vadd.f32 %v4881_v27, %v12297_v30  ;;  %v5333_v22 = vpop.f32.mrb[43].mxu1  ;;  %7480 = vmatpush1.bf16.msra.mxu0 %v10821_v49  ;;  %7932 = vmatpush1.bf16.msra.mxu1 %v10824_v28  ;;  %v5424_v23 = vmax.f32 %v9683_v59, 0.0  ;;  %v5423_v37 = vmax.f32 %v9652_v52, 0.0  ;;  %v10847_v52 = vld [vmem:[#allocation8 + $0x6c4] ss:$16 sps:$4 sm:$0xff]  }
 0x36e   :  { %v5430_v11 = vmax.f32 %v9653_v43, 0.0  ;;  %v9686_v14 = vadd.f32 %v5333_v22, %v12299_v53  ;;  %7481 = vmatprep.subr.bf16.mxu0 %v10829_v41  ;;  %7933 = vmatprep.subr.bf16.mxu1 %v10832_v29  ;;  %v5425_v35 = vmax.f32 %v9684_v19, 0.0 }
 0x36f   :  { %v5432_v5 = vmax.f32 %v9685_v54, 0.0  ;;  %v5431_v45 = vmax.f32 %v9654_v0, 0.0 }
 0x370   :  { %v5534_v6 = vpack.c.bf16 %v5430_v11, %v5422_v8  ;;  %v5433_v15 = vmax.f32 %v9686_v14, 0.0  ;;  %v10845_v8 = vld [vmem:[#allocation8 + $0x6c0] ss:$16 sps:$4 sm:$0xff]   ;;  %v10848_v11 = vld [vmem:[#allocation8 + $0x6c8] ss:$16 sps:$4 sm:$0xff]  }
 0x371   :  { %v12333_v10 = vpack.c.bf16 %v5432_v5, %v5424_v23  ;;  %v5535_v33 = vpack.c.bf16 %v5431_v45, %v5423_v37  ;;  %v4885_v24 = vpop.f32.mrb[44].mxu0  ;;  %7482 = vmatpush1.bf16.msra.mxu0 %v10827_v25  ;;  %7934 = vmatpush1.bf16.msra.mxu1 %v10830_v3  ;;  %v10853_v37 = vld [vmem:[#allocation8 + $0x6e4] ss:$16 sps:$4 sm:$0xff]   ;;  %v10856_v5 = vld [vmem:[#allocation8 + $0x6ec] ss:$16 sps:$4 sm:$0xff]  }
 0x372   :  { %v12335_v18 = vpack.c.bf16 %v5433_v15, %v5425_v35  ;;  %v9655_v42 = vadd.f32 %v4885_v24, %v12293_v39  ;;  %v5337_v55 = vpop.f32.mrb[44].mxu1  ;;  %v4887_v38 = vpop.f32.mrb[45].mxu0  ;;  %7483 = vmatprep.subr.bf16.mxu0 %v10835_v57  ;;  %7935 = vmatprep.subr.bf16.mxu1 %v10838_v21 }
 0x373   :  { %v9687_v40 = vadd.f32 %v5337_v55, %v12295_v44  ;;  %v9656_v2 = vadd.f32 %v4887_v38, %v12297_v30  ;;  %v5339_v61 = vpop.f32.mrb[45].mxu1  ;;  %v4889_v34 = vpop.f32.mrb[46].mxu0  ;;  %7414 = vmatprep.mubr.bf16.mxu0 %v5535_v33  ;;  %7866 = vmatprep.mubr.bf16.mxu1 %v5535_v33 }
 0x374   :  { %v9688_v32 = vadd.f32 %v5339_v61, %v12299_v53  ;;  %v9657_v1 = vadd.f32 %v4889_v34, %v12293_v39  ;;  %v5341_v58 = vpop.f32.mrb[46].mxu1  ;;  %v4891_v26 = vpop.f32.mrb[47].mxu0  ;;  %7415 = vmatmul.mubr.bf16.gmra.mrb[72].mxu0 %v5534_v6  ;;  %7867 = vmatmul.mubr.bf16.gmra.mrb[72].mxu1 %v5534_v6  ;;  %v5438_v41 = vmax.f32 %v9655_v42, 0.0  ;;  %v10859_v34 = vld [vmem:[#allocation8 + $0x704] ss:$16 sps:$4 sm:$0xff]  }
 0x375   :  { %v9689_v49 = vadd.f32 %v5341_v58, %v12295_v44  ;;  %v9658_v28 = vadd.f32 %v4891_v26, %v12297_v30  ;;  %v5343_v36 = vpop.f32.mrb[47].mxu1  ;;  %7484 = vmatpush1.bf16.msra.mxu0 %v10833_v62  ;;  %7936 = vmatpush1.bf16.msra.mxu1 %v10836_v51  ;;  %v5440_v60 = vmax.f32 %v9687_v40, 0.0  ;;  %v5439_v19 = vmax.f32 %v9656_v2, 0.0 }
 0x376   :  { %v5446_v29 = vmax.f32 %v9657_v1, 0.0  ;;  %v9690_v59 = vadd.f32 %v5343_v36, %v12299_v53  ;;  %7485 = vmatprep.subr.bf16.mxu0 %v10841_v4  ;;  %7937 = vmatprep.subr.bf16.mxu1 %v10844_v17  ;;  %v5441_v27 = vmax.f32 %v9688_v32, 0.0  ;;  %v10851_v4 = vld [vmem:[#allocation8 + $0x6e0] ss:$16 sps:$4 sm:$0xff]   ;;  %v10854_v17 = vld [vmem:[#allocation8 + $0x6e8] ss:$16 sps:$4 sm:$0xff]  }
 0x377   :  { %v5448_v43 = vmax.f32 %v9689_v49, 0.0  ;;  %v5447_v47 = vmax.f32 %v9658_v28, 0.0  ;;  %v10862_v32 = vld [vmem:[#allocation8 + $0x70c] ss:$16 sps:$4 sm:$0xff]  }
 0x378   :  { %v5542_v54 = vpack.c.bf16 %v5446_v29, %v5438_v41  ;;  %v5449_v0 = vmax.f32 %v9690_v59, 0.0  ;;  %v10857_v59 = vld [vmem:[#allocation8 + $0x700] ss:$16 sps:$4 sm:$0xff]  }
 0x379   :  { %v12345_v22 = vpack.c.bf16 %v5448_v43, %v5440_v60  ;;  %v5543_v25 = vpack.c.bf16 %v5447_v47, %v5439_v19  ;;  %v4895_v3 = vpop.f32.mrb[48].mxu0  ;;  %7486 = vmatpush1.bf16.msra.mxu0 %v10839_v13  ;;  %7938 = vmatpush1.bf16.msra.mxu1 %v10842_v20  ;;  %v10865_v47 = vld [vmem:[#allocation8 + $0x724] ss:$16 sps:$4 sm:$0xff]  }
 0x37a   :  { %v12347_v14 = vpack.c.bf16 %v5449_v0, %v5441_v27  ;;  %v9659_v57 = vadd.f32 %v4895_v3, %v12293_v39  ;;  %v5347_v21 = vpop.f32.mrb[48].mxu1  ;;  %v4897_v23 = vpop.f32.mrb[49].mxu0  ;;  %7487 = vmatprep.subr.bf16.mxu0 %v10847_v52  ;;  %7939 = vmatprep.subr.bf16.mxu1 %v10850_v56  ;;  %v10860_v52 = vld [vmem:[#allocation8 + $0x708] ss:$16 sps:$4 sm:$0xff]   ;;  %v10868_v27 = vld [vmem:[#allocation8 + $0x72c] ss:$16 sps:$4 sm:$0xff]  }
 0x37b   :  { %v9691_v45 = vadd.f32 %v5347_v21, %v12295_v44  ;;  %v9660_v35 = vadd.f32 %v4897_v23, %v12297_v30  ;;  %v5349_v6 = vpop.f32.mrb[49].mxu1  ;;  %v4899_v15 = vpop.f32.mrb[50].mxu0  ;;  %7424 = vmatprep.mubr.bf16.mxu0 %v5543_v25  ;;  %7876 = vmatprep.mubr.bf16.mxu1 %v5543_v25 }
 0x37c   :  { %v9692_v33 = vadd.f32 %v5349_v6, %v12299_v53  ;;  %v9661_v24 = vadd.f32 %v4899_v15, %v12293_v39  ;;  %v5351_v62 = vpop.f32.mrb[50].mxu1  ;;  %v4901_v51 = vpop.f32.mrb[51].mxu0  ;;  %7425 = vmatmul.mubr.bf16.gmra.mrb[76].mxu0 %v5542_v54  ;;  %7877 = vmatmul.mubr.bf16.gmra.mrb[76].mxu1 %v5542_v54  ;;  %v5454_v40 = vmax.f32 %v9659_v57, 0.0 }
 0x37d   :  { %v9693_v42 = vadd.f32 %v5351_v62, %v12295_v44  ;;  %v9662_v55 = vadd.f32 %v4901_v51, %v12297_v30  ;;  %v5353_v38 = vpop.f32.mrb[51].mxu1  ;;  %7488 = vmatpush1.bf16.msra.mxu0 %v10845_v8  ;;  %7940 = vmatpush1.bf16.msra.mxu1 %v10848_v11  ;;  %v5456_v1 = vmax.f32 %v9691_v45, 0.0  ;;  %v5455_v58 = vmax.f32 %v9660_v35, 0.0  ;;  %v10863_v45 = vld [vmem:[#allocation8 + $0x720] ss:$16 sps:$4 sm:$0xff]  }
 0x37e   :  { %v5462_v2 = vmax.f32 %v9661_v24, 0.0  ;;  %v9694_v61 = vadd.f32 %v5353_v38, %v12299_v53  ;;  %7489 = vmatprep.subr.bf16.mxu0 %v10853_v37  ;;  %7941 = vmatprep.subr.bf16.mxu1 %v10856_v5  ;;  %v5457_v28 = vmax.f32 %v9692_v33, 0.0  ;;  %v10866_v35 = vld [vmem:[#allocation8 + $0x728] ss:$16 sps:$4 sm:$0xff]   ;;  %v10871_v24 = vld [vmem:[#allocation8 + $0x744] ss:$16 sps:$4 sm:$0xff]  }
 0x37f   :  { %v5464_v26 = vmax.f32 %v9693_v42, 0.0  ;;  %v5463_v49 = vmax.f32 %v9662_v55, 0.0  ;;  %v10874_v62 = vld [vmem:[#allocation8 + $0x74c] ss:$16 sps:$4 sm:$0xff]  }
 0x380   :  { %v5550_v36 = vpack.c.bf16 %v5462_v2, %v5454_v40  ;;  %v5465_v13 = vmax.f32 %v9694_v61, 0.0 }
 0x381   :  { %v12357_v20 = vpack.c.bf16 %v5464_v26, %v5456_v1  ;;  %v5551_v41 = vpack.c.bf16 %v5463_v49, %v5455_v58  ;;  %v4905_v29 = vpop.f32.mrb[52].mxu0  ;;  %7490 = vmatpush1.bf16.msra.mxu0 %v10851_v4  ;;  %7942 = vmatpush1.bf16.msra.mxu1 %v10854_v17  ;;  %v10872_v1 = vld [vmem:[#allocation8 + $0x748] ss:$16 sps:$4 sm:$0xff]  }
 0x382   :  { %v12359_v56 = vpack.c.bf16 %v5465_v13, %v5457_v28  ;;  %v9663_v60 = vadd.f32 %v4905_v29, %v12293_v39  ;;  %v5357_v19 = vpop.f32.mrb[52].mxu1  ;;  %v4907_v43 = vpop.f32.mrb[53].mxu0  ;;  %7491 = vmatprep.subr.bf16.mxu0 %v10859_v34  ;;  %7943 = vmatprep.subr.bf16.mxu1 %v10862_v32  ;;  %v10869_v32 = vld [vmem:[#allocation8 + $0x740] ss:$16 sps:$4 sm:$0xff]   ;;  %v10880_v13 = vld [vmem:[#allocation8 + $0x76c] ss:$16 sps:$4 sm:$0xff]  }
 0x383   :  { %v9695_v54 = vadd.f32 %v5357_v19, %v12295_v44  ;;  %v9664_v0 = vadd.f32 %v4907_v43, %v12297_v30  ;;  %v5359_v25 = vpop.f32.mrb[53].mxu1  ;;  %v4909_v3 = vpop.f32.mrb[54].mxu0  ;;  %7434 = vmatprep.mubr.bf16.mxu0 %v5551_v41  ;;  %7886 = vmatprep.mubr.bf16.mxu1 %v5551_v41 }
 0x384   :  { %v9696_v8 = vadd.f32 %v5359_v25, %v12299_v53  ;;  %v9665_v11 = vadd.f32 %v4909_v3, %v12293_v39  ;;  %v5361_v57 = vpop.f32.mrb[54].mxu1  ;;  %v4911_v21 = vpop.f32.mrb[55].mxu0  ;;  %7435 = vmatmul.mubr.bf16.gmra.mrb[80].mxu0 %v5550_v36  ;;  %7887 = vmatmul.mubr.bf16.gmra.mrb[80].mxu1 %v5550_v36  ;;  %v5470_v6 = vmax.f32 %v9663_v60, 0.0  ;;  %v10877_v36 = vld [vmem:[#allocation8 + $0x764] ss:$16 sps:$4 sm:$0xff]  }
 0x385   :  { %v9697_v23 = vadd.f32 %v5361_v57, %v12295_v44  ;;  %v9666_v37 = vadd.f32 %v4911_v21, %v12297_v30  ;;  %v5363_v5 = vpop.f32.mrb[55].mxu1  ;;  %7492 = vmatpush1.bf16.msra.mxu0 %v10857_v59  ;;  %7944 = vmatpush1.bf16.msra.mxu1 %v10860_v52  ;;  %v5472_v51 = vmax.f32 %v9695_v54, 0.0  ;;  %v5471_v42 = vmax.f32 %v9664_v0, 0.0  ;;  %v10875_v25 = vld [vmem:[#allocation8 + $0x760] ss:$16 sps:$4 sm:$0xff]  }
 0x386   :  { %v5478_v15 = vmax.f32 %v9665_v11, 0.0  ;;  %v9698_v33 = vadd.f32 %v5363_v5, %v12299_v53  ;;  %7493 = vmatprep.subr.bf16.mxu0 %v10865_v47  ;;  %7945 = vmatprep.subr.bf16.mxu1 %v10868_v27  ;;  %v5473_v4 = vmax.f32 %v9696_v8, 0.0  ;;  %v10878_v3 = vld [vmem:[#allocation8 + $0x768] ss:$16 sps:$4 sm:$0xff]   ;;  %v10883_v21 = vld [vmem:[#allocation8 + $0x784] ss:$16 sps:$4 sm:$0xff]  }
 0x387   :  { %v5480_v55 = vmax.f32 %v9697_v23, 0.0  ;;  %v5479_v38 = vmax.f32 %v9666_v37, 0.0  ;;  %v10886_v23 = vld [vmem:[#allocation8 + $0x78c] ss:$16 sps:$4 sm:$0xff]  }
 0x388   :  { %v5558_v17 = vpack.c.bf16 %v5478_v15, %v5470_v6  ;;  %v5481_v40 = vmax.f32 %v9698_v33, 0.0 }
 0x389   :  { %v12369_v2 = vpack.c.bf16 %v5480_v55, %v5472_v51  ;;  %v5559_v61 = vpack.c.bf16 %v5479_v38, %v5471_v42  ;;  %v4915_v34 = vpop.f32.mrb[56].mxu0  ;;  %7494 = vmatpush1.bf16.msra.mxu0 %v10863_v45  ;;  %7946 = vmatpush1.bf16.msra.mxu1 %v10866_v35  ;;  %v10881_v42 = vld [vmem:[#allocation8 + $0x780] ss:$16 sps:$4 sm:$0xff]   ;;  %v10884_v55 = vld [vmem:[#allocation8 + $0x788] ss:$16 sps:$4 sm:$0xff]  }
 0x38a   :  { %v12371_v58 = vpack.c.bf16 %v5481_v40, %v5473_v4  ;;  %v9667_v26 = vadd.f32 %v4915_v34, %v12293_v39  ;;  %v5367_v49 = vpop.f32.mrb[56].mxu1  ;;  %v4917_v28 = vpop.f32.mrb[57].mxu0  ;;  %7495 = vmatprep.subr.bf16.mxu0 %v10871_v24  ;;  %7947 = vmatprep.subr.bf16.mxu1 %v10874_v62  ;;  %v10892_v34 = vld [vmem:[#allocation8 + $0x7ac] ss:$16 sps:$4 sm:$0xff]  }
 0x38b   :  { %v9699_v41 = vadd.f32 %v5367_v49, %v12295_v44  ;;  %v9668_v29 = vadd.f32 %v4917_v28, %v12297_v30  ;;  %v5369_v59 = vpop.f32.mrb[57].mxu1  ;;  %v4919_v52 = vpop.f32.mrb[58].mxu0  ;;  %7444 = vmatprep.mubr.bf16.mxu0 %v5559_v61  ;;  %7896 = vmatprep.mubr.bf16.mxu1 %v5559_v61  ;;  %v10889_v61 = vld [vmem:[#allocation8 + $0x7a4] ss:$16 sps:$4 sm:$0xff]  }
 0x38c   :  { %v9700_v60 = vadd.f32 %v5369_v59, %v12299_v53  ;;  %v9669_v19 = vadd.f32 %v4919_v52, %v12293_v39  ;;  %v5371_v43 = vpop.f32.mrb[58].mxu1  ;;  %v4921_v47 = vpop.f32.mrb[59].mxu0  ;;  %7445 = vmatmul.mubr.bf16.gmra.mrb[84].mxu0 %v5558_v17  ;;  %7897 = vmatmul.mubr.bf16.gmra.mrb[84].mxu1 %v5558_v17  ;;  %v5486_v8 = vmax.f32 %v9667_v26, 0.0 }
 0x38d   :  { %v9701_v27 = vadd.f32 %v5371_v43, %v12295_v44  ;;  %v9670_v54 = vadd.f32 %v4921_v47, %v12297_v30  ;;  %v5373_v0 = vpop.f32.mrb[59].mxu1  ;;  %7496 = vmatpush1.bf16.msra.mxu0 %v10869_v32  ;;  %7948 = vmatpush1.bf16.msra.mxu1 %v10872_v1  ;;  %v5488_v37 = vmax.f32 %v9699_v41, 0.0  ;;  %v5487_v5 = vmax.f32 %v9668_v29, 0.0 }
 0x38e   :  { %v5494_v11 = vmax.f32 %v9669_v19, 0.0  ;;  %v9702_v57 = vadd.f32 %v5373_v0, %v12299_v53  ;;  %7497 = vmatprep.subr.bf16.mxu0 %v10877_v36  ;;  %7949 = vmatprep.subr.bf16.mxu1 %v10880_v13  ;;  %v5489_v6 = vmax.f32 %v9700_v60, 0.0  ;;  %v10887_v60 = vld [vmem:[#allocation8 + $0x7a0] ss:$16 sps:$4 sm:$0xff]   ;;  %v10890_v19 = vld [vmem:[#allocation8 + $0x7a8] ss:$16 sps:$4 sm:$0xff]  }
 0x38f   :  { %v5496_v45 = vmax.f32 %v9701_v27, 0.0  ;;  %v5495_v35 = vmax.f32 %v9670_v54, 0.0  ;;  %v10898_v54 = vld [vmem:[#allocation8 + $0x7cc] ss:$16 sps:$4 sm:$0xff]  }
 0x390   :  { %v5566_v15 = vpack.c.bf16 %v5494_v11, %v5486_v8  ;;  %v5497_v33 = vmax.f32 %v9702_v57, 0.0 }
 0x391   :  { %v12381_v24 = vpack.c.bf16 %v5496_v45, %v5488_v37  ;;  %v5567_v62 = vpack.c.bf16 %v5495_v35, %v5487_v5  ;;  %v4925_v51 = vpop.f32.mrb[60].mxu0  ;;  %7498 = vmatpush1.bf16.msra.mxu0 %v10875_v25  ;;  %7950 = vmatpush1.bf16.msra.mxu1 %v10878_v3  ;;  %v10901_v5 = vld [vmem:[#allocation8 + $0x7e4] ss:$16 sps:$4 sm:$0xff]   ;;  %v10904_v45 = vld [vmem:[#allocation8 + $0x7ec] ss:$16 sps:$4 sm:$0xff]  }
 0x392   :  { %v12383_v38 = vpack.c.bf16 %v5497_v33, %v5489_v6  ;;  %v9671_v4 = vadd.f32 %v4925_v51, %v12293_v39  ;;  %v5377_v17 = vpop.f32.mrb[60].mxu1  ;;  %v4927_v40 = vpop.f32.mrb[61].mxu0  ;;  %7499 = vmatprep.subr.bf16.mxu0 %v10883_v21  ;;  %7951 = vmatprep.subr.bf16.mxu1 %v10886_v23  ;;  %v10893_v23 = vld [vmem:[#allocation8 + $0x7c0] ss:$16 sps:$4 sm:$0xff]   ;;  %v10902_v6 = vld [vmem:[#allocation8 + $0x7e8] ss:$16 sps:$4 sm:$0xff]  }
 0x393   :  { %v9703_v32 = vadd.f32 %v5377_v17, %v12295_v44  ;;  %v9672_v1 = vadd.f32 %v4927_v40, %v12297_v30  ;;  %v5379_v26 = vpop.f32.mrb[61].mxu1  ;;  %v4929_v49 = vpop.f32.mrb[62].mxu0  ;;  %7454 = vmatprep.mubr.bf16.mxu0 %v5567_v62  ;;  %7906 = vmatprep.mubr.bf16.mxu1 %v5567_v62  ;;  %v10899_v35 = vld [vmem:[#allocation8 + $0x7e0] ss:$16 sps:$4 sm:$0xff]   ;;  %v10907_v33 = vld [vmem:[#allocation11 + $0xc0] sm:$0xff]   ;;  %v10913_v17 = vld [vmem:[#allocation11 + $0x50] sm:$0xff]  }
 0x394   :  { %v9704_v28 = vadd.f32 %v5379_v26, %v12299_v53  ;;  %v9673_v36 = vadd.f32 %v4929_v49, %v12293_v39  ;;  %v5381_v13 = vpop.f32.mrb[62].mxu1  ;;  %v4931_v41 = vpop.f32.mrb[63].mxu0  ;;  %7455 = vmatmul.mubr.bf16.gmra.mrb[88].mxu0 %v5566_v15  ;;  %7907 = vmatmul.mubr.bf16.gmra.mrb[88].mxu1 %v5566_v15  ;;  %v5502_v43 = vmax.f32 %v9671_v4, 0.0  ;;  %v10895_v39 = vld [vmem:[#allocation8 + $0x7c4] ss:$16 sps:$4 sm:$0xff]   ;;  %v10912_v4 = vld [vmem:[#allocation11 + $0x88] sm:$0xff]  }
 0x395   :  { %v9705_v29 = vadd.f32 %v5381_v13, %v12295_v44  ;;  %v9674_v59 = vadd.f32 %v4931_v41, %v12297_v30  ;;  %v5383_v52 = vpop.f32.mrb[63].mxu1  ;;  %7500 = vmatpush1.bf16.msra.mxu0 %v10881_v42  ;;  %7952 = vmatpush1.bf16.msra.mxu1 %v10884_v55  ;;  %v5504_v0 = vmax.f32 %v9703_v32, 0.0  ;;  %v5503_v25 = vmax.f32 %v9672_v1, 0.0  ;;  %v10905_v15 = vld [vmem:[#allocation11 + $0x40] sm:$0xff]   ;;  %v10909_v42 = vld [vmem:[#allocation11 + $0x48] sm:$0xff]   ;;  %v10915_v40 = vld [vmem:[#allocation11 + $0xd0] sm:$0xff]  }
 0x396   :  { %v5510_v47 = vmax.f32 %v9673_v36, 0.0  ;;  %v9706_v27 = vadd.f32 %v5383_v52, %v12299_v53  ;;  %7501 = vmatprep.subr.bf16.mxu0 %v10889_v61  ;;  %7953 = vmatprep.subr.bf16.mxu1 %v10892_v34  ;;  %v5505_v44 = vmax.f32 %v9704_v28, 0.0  ;;  %v10896_v53 = vld [vmem:[#allocation8 + $0x7c8] ss:$16 sps:$4 sm:$0xff]   ;;  %v10911_v55 = vld [vmem:[#allocation11 + $0xc8] sm:$0xff]   ;;  %v10917_v32 = vld [vmem:[#allocation11 + $0x58] sm:$0xff]  }
 0x397   :  { %v5512_v3 = vmax.f32 %v9705_v29, 0.0  ;;  %v5511_v8 = vmax.f32 %v9674_v59, 0.0  ;;  %v10906_v62 = vld [vmem:[#allocation11] sm:$0xff]   ;;  %v10914_v61 = vld [vmem:[#allocation11 + $0x10] sm:$0xff]   ;;  %v10920_v1 = vld [vmem:[#allocation11 + $0x98] sm:$0xff]  }
 0x398   :  { %v5574_v11 = vpack.c.bf16 %v5510_v47, %v5502_v43  ;;  %v5513_v30 = vmax.f32 %v9706_v27, 0.0  ;;  %v10908_v51 = vld [vmem:[#allocation11 + $0x80] sm:$0xff]   ;;  %v10916_v34 = vld [vmem:[#allocation11 + $0x90] sm:$0xff]   ;;  %v10925_v13 = vld [vmem:[#allocation11 + $0x68] sm:$0xff]  }
 0x399   :  { %v12393_v57 = vpack.c.bf16 %v5512_v3, %v5504_v0  ;;  %v5575_v21 = vpack.c.bf16 %v5511_v8, %v5503_v25  ;;  %7502 = vmatpush1.bf16.msra.mxu0 %v10887_v60  ;;  %7954 = vmatpush1.bf16.msra.mxu1 %v10890_v19  ;;  %v10921_v26 = vld [vmem:[#allocation11 + $0x60] sm:$0xff]   ;;  %v10928_v41 = vld [vmem:[#allocation11 + $0xa8] sm:$0xff]   ;;  %v10929_v29 = vld [vmem:[#allocation11 + $0x70] sm:$0xff]  }
 0x39a   :  { %v12395_v37 = vpack.c.bf16 %v5513_v30, %v5505_v44  ;;  %7503 = vmatprep.subr.bf16.mxu0 %v10895_v39  ;;  %7955 = vmatprep.subr.bf16.mxu1 %v10898_v54  ;;  %v10923_v49 = vld [vmem:[#allocation11 + $0xe0] sm:$0xff]   ;;  %v10931_v59 = vld [vmem:[#allocation11 + $0xf0] sm:$0xff]  }
 0x39b   :  { %7464 = vmatprep.mubr.bf16.mxu0 %v5575_v21  ;;  %7916 = vmatprep.mubr.bf16.mxu1 %v5575_v21  ;;  %v10922_v28 = vld [vmem:[#allocation11 + $0x20] sm:$0xff]   ;;  %v10930_v52 = vld [vmem:[#allocation11 + $0x30] sm:$0xff]  }
 0x39c   :  { %7465 = vmatmul.mubr.bf16.gmra.mrb[92].mxu0 %v5574_v11  ;;  %7917 = vmatmul.mubr.bf16.gmra.mrb[92].mxu1 %v5574_v11  ;;  %v10924_v36 = vld [vmem:[#allocation11 + $0xa0] sm:$0xff]   ;;  %v10932_v60 = vld [vmem:[#allocation11 + $0xb0] sm:$0xff]  }
 0x39d   :  { %7504 = vmatpush1.bf16.msra.mxu0 %v10893_v23  ;;  %7507 = vmatprep.mubr.bf16.mxu0 %v12311_v31 }
 0x39e   :  { %7956 = vmatpush1.bf16.msra.mxu1 %v10896_v53  ;;  %7959 = vmatprep.mubr.bf16.mxu1 %v12311_v31  ;;  %v10910_v31 = vld [vmem:[#allocation11 + $0x8] sm:$0xff]  }
 0x39f   :  { %7505 = vmatprep.subr.bf16.mxu0 %v10901_v5  ;;  %7957 = vmatprep.subr.bf16.mxu1 %v10904_v45 }
 0x3a1   :  { %7506 = vmatpush1.bf16.msra.mxu0 %v10899_v35 }
 0x3a2   :  { %7958 = vmatpush1.bf16.msra.mxu1 %v10902_v6  ;;  %9451 = vmatprep.subr.bf16.mxu0 %v10905_v15 }
 0x3a3   :  { %9515 = vmatprep.subr.bf16.mxu1 %v10907_v33 }
 0x3a4   :  { %7508 = vmatmul.mubr.bf16.vlgmr.msra.gmra.mrb[64].mxu0 %v12309_v16 }
 0x3a5   :  { %7960 = vmatmul.mubr.bf16.vlgmr.msra.gmra.mrb[64].mxu1 %v12309_v16  ;;  %7517 = vmatprep.mubr.bf16.mxu0 %v12323_v12  ;;  %v10919_v16 = vld [vmem:[#allocation11 + $0xd8] sm:$0xff]  }
 0x3a6   :  { %7969 = vmatprep.mubr.bf16.mxu1 %v12323_v12  ;;  %9452 = vmatpush3.bf16.msra.mxu0 %v10906_v62  ;;  %v10918_v12 = vld [vmem:[#allocation11 + $0x18] sm:$0xff]  }
 0x3a7   :  { %9516 = vmatpush3.bf16.msra.mxu1 %v10908_v51  ;;  %9453 = vmatprep.subr.bf16.mxu0 %v10909_v42 }
 0x3a8   :  { %9517 = vmatprep.subr.bf16.mxu1 %v10911_v55 }
 0x3aa   :  { %9454 = vmatpush3.bf16.msra.mxu0 %v10910_v31 }
 0x3ab   :  { %9518 = vmatpush3.bf16.msra.mxu1 %v10912_v4  ;;  %9455 = vmatprep.subr.bf16.mxu0 %v10913_v17 }
 0x3ac   :  { %7518 = vmatmul.mubr.bf16.gmra.mrb[68].mxu0 %v12321_v7  ;;  %9519 = vmatprep.subr.bf16.mxu1 %v10915_v40 }
 0x3ad   :  { %7970 = vmatmul.mubr.bf16.gmra.mrb[68].mxu1 %v12321_v7  ;;  %7527 = vmatprep.mubr.bf16.mxu0 %v12335_v18  ;;  %v10927_v7 = vld [vmem:[#allocation11 + $0xe8] sm:$0xff]  }
 0x3ae   :  { %7979 = vmatprep.mubr.bf16.mxu1 %v12335_v18  ;;  %9456 = vmatpush3.bf16.msra.mxu0 %v10914_v61  ;;  %v10926_v18 = vld [vmem:[#allocation11 + $0x28] sm:$0xff]  }
 0x3af   :  { %9520 = vmatpush3.bf16.msra.mxu1 %v10916_v34  ;;  %9457 = vmatprep.subr.bf16.mxu0 %v10917_v32 }
 0x3b0   :  { %9521 = vmatprep.subr.bf16.mxu1 %v10919_v16 }
 0x3b2   :  { %9458 = vmatpush3.bf16.msra.mxu0 %v10918_v12 }
 0x3b3   :  { %9522 = vmatpush3.bf16.msra.mxu1 %v10920_v1  ;;  %9459 = vmatprep.subr.bf16.mxu0 %v10921_v26 }
 0x3b4   :  { %7528 = vmatmul.mubr.bf16.gmra.mrb[72].mxu0 %v12333_v10  ;;  %9523 = vmatprep.subr.bf16.mxu1 %v10923_v49 }
 0x3b5   :  { %7980 = vmatmul.mubr.bf16.gmra.mrb[72].mxu1 %v12333_v10  ;;  %7537 = vmatprep.mubr.bf16.mxu0 %v12347_v14  ;;  %v10933_v10 = vld [vmem:[#allocation11 + $0x78] sm:$0xff]  }
 0x3b6   :  { %7989 = vmatprep.mubr.bf16.mxu1 %v12347_v14  ;;  %9460 = vmatpush3.bf16.msra.mxu0 %v10922_v28  ;;  %v10934_v14 = vld [vmem:[#allocation11 + $0x38] sm:$0xff]  }
 0x3b7   :  { %9524 = vmatpush3.bf16.msra.mxu1 %v10924_v36  ;;  %9461 = vmatprep.subr.bf16.mxu0 %v10925_v13 }
 0x3b8   :  { %9525 = vmatprep.subr.bf16.mxu1 %v10927_v7 }
 0x3ba   :  { %9462 = vmatpush3.bf16.msra.mxu0 %v10926_v18 }
 0x3bb   :  { %9526 = vmatpush3.bf16.msra.mxu1 %v10928_v41  ;;  %9463 = vmatprep.subr.bf16.mxu0 %v10929_v29 }
 0x3bc   :  { %7538 = vmatmul.mubr.bf16.gmra.mrb[76].mxu0 %v12345_v22  ;;  %9527 = vmatprep.subr.bf16.mxu1 %v10931_v59 }
 0x3bd   :  { %7990 = vmatmul.mubr.bf16.gmra.mrb[76].mxu1 %v12345_v22  ;;  %7547 = vmatprep.mubr.bf16.mxu0 %v12359_v56  ;;  %v10935_v22 = vld [vmem:[#allocation11 + $0xf8] sm:$0xff]  }
 0x3be   :  { %7999 = vmatprep.mubr.bf16.mxu1 %v12359_v56  ;;  %9464 = vmatpush3.bf16.msra.mxu0 %v10930_v52  ;;  %v5834_v56 = vld [vmem:[#allocation9] sm:$0xf] }
 0x3bf   :  { %9528 = vmatpush3.bf16.msra.mxu1 %v10932_v60  ;;  %9465 = vmatprep.subr.bf16.mxu0 %v10933_v10 }
 0x3c0   :  { %9529 = vmatprep.subr.bf16.mxu1 %v10935_v22 }
 0x3c2   :  { %9466 = vmatpush3.bf16.msra.mxu0 %v10934_v14 }
 0x3c4   :  { %7548 = vmatmul.mubr.bf16.gmra.mrb[80].mxu0 %v12357_v20 }
 0x3c5   :  { %8000 = vmatmul.mubr.bf16.gmra.mrb[80].mxu1 %v12357_v20  ;;  %7557 = vmatprep.mubr.bf16.mxu0 %v12371_v58  ;;  %v10936_v20 = vld [vmem:[#allocation11 + $0xb8] sm:$0xff]  }
 0x3c6   :  { %8009 = vmatprep.mubr.bf16.mxu1 %v12371_v58  ;;  %9530 = vmatpush3.bf16.msra.mxu1 %v10936_v20  ;;  %v12435_v58 = vrot.slane %v5834_v56, %v1308_v48 }
 0x3cc   :  { %7558 = vmatmul.mubr.bf16.gmra.mrb[84].mxu0 %v12369_v2 }
 0x3cd   :  { %8010 = vmatmul.mubr.bf16.gmra.mrb[84].mxu1 %v12369_v2  ;;  %7567 = vmatprep.mubr.bf16.mxu0 %v12383_v38  ;;  %v12431_v2 = vrot.slane %v5834_v56, %v1300_v9 }
 0x3ce   :  { %8019 = vmatprep.mubr.bf16.mxu1 %v12383_v38  ;;  %v12443_v38 = vrot.slane %v5834_v56, %v1312_v50 }
 0x3d4   :  { %7568 = vmatmul.mubr.bf16.gmra.mrb[88].mxu0 %v12381_v24 }
 0x3d5   :  { %8020 = vmatmul.mubr.bf16.gmra.mrb[88].mxu1 %v12381_v24  ;;  %7577 = vmatprep.mubr.bf16.mxu0 %v12395_v37  ;;  %v12439_v24 = vrot.slane %v5834_v56, %v1304_v46 }
 0x3d6   :  { %8029 = vmatprep.mubr.bf16.mxu1 %v12395_v37 }
 0x3dc   :  { %7578 = vmatmul.mubr.bf16.gmra.mrb[92].mxu0 %v12393_v57 }
 0x3dd   :  { %8030 = vmatmul.mubr.bf16.gmra.mrb[92].mxu1 %v12393_v57 }
 0x477   :  { %v7509_v19 = vpop.f32.mrb[64].mxu0 }
 0x478   :  { %v9707_v43 = vadd.f32 %v7509_v19, %v12431_v2  ;;  %v7961_v47 = vpop.f32.mrb[64].mxu1  ;;  %v7511_v27 = vpop.f32.mrb[65].mxu0 }
 0x479   :  { %v9739_v9 = vadd.f32 %v7961_v47, %v12435_v58  ;;  %v9708_v39 = vadd.f32 %v7511_v27, %v12439_v24  ;;  %v7963_v54 = vpop.f32.mrb[65].mxu1  ;;  %v7513_v48 = vpop.f32.mrb[66].mxu0 }
 0x47a   :  { %v9740_v0 = vadd.f32 %v7963_v54, %v12443_v38  ;;  %v9709_v46 = vadd.f32 %v7513_v48, %v12431_v2  ;;  %v7965_v25 = vpop.f32.mrb[66].mxu1  ;;  %v7515_v3 = vpop.f32.mrb[67].mxu0  ;;  %v8040_v44 = vmax.f32 %v9707_v43, 0.0 }
 0x47b   :  { %v9741_v63 = vadd.f32 %v7965_v25, %v12435_v58  ;;  %v9710_v50 = vadd.f32 %v7515_v3, %v12439_v24  ;;  %v7967_v8 = vpop.f32.mrb[67].mxu1  ;;  %v8042_v57 = vmax.f32 %v9739_v9, 0.0  ;;  %v8041_v21 = vmax.f32 %v9708_v39, 0.0 }
 0x47c   :  { %v8044_v11 = vmax.f32 %v9709_v46, 0.0  ;;  %v9742_v30 = vadd.f32 %v7967_v8, %v12443_v38  ;;  %v8043_v53 = vmax.f32 %v9740_v0, 0.0 }
 0x47d   :  { %v8046_v23 = vmax.f32 %v9741_v63, 0.0  ;;  %v8045_v37 = vmax.f32 %v9710_v50, 0.0 }
 0x47e   :  { %v8104_v5 = vpack.c.bf16 %v8044_v11, %v8040_v44  ;;  %v8047_v45 = vmax.f32 %v9742_v30, 0.0 }
 0x47f   :  { %v8106_v35 = vpack.c.bf16 %v8046_v23, %v8042_v57  ;;  %v8105_v6 = vpack.c.bf16 %v8045_v37, %v8041_v21  ;;  %v7519_v15 = vpop.f32.mrb[68].mxu0 }
 0x480   :  { %v8107_v33 = vpack.c.bf16 %v8047_v45, %v8043_v53  ;;  %v9711_v62 = vadd.f32 %v7519_v15, %v12431_v2  ;;  %v7971_v51 = vpop.f32.mrb[68].mxu1  ;;  %v7521_v42 = vpop.f32.mrb[69].mxu0 }
 0x481   :  { %v9743_v55 = vadd.f32 %v7971_v51, %v12435_v58  ;;  %v9712_v31 = vadd.f32 %v7521_v42, %v12439_v24  ;;  %v7973_v4 = vpop.f32.mrb[69].mxu1  ;;  %v7523_v17 = vpop.f32.mrb[70].mxu0  ;;  %8431 = vmatprep.mubr.bf16.mxu0 %v8105_v6 }
 0x482   :  { %v9744_v40 = vadd.f32 %v7973_v4, %v12443_v38  ;;  %v9713_v61 = vadd.f32 %v7523_v17, %v12431_v2  ;;  %v7975_v34 = vpop.f32.mrb[70].mxu1  ;;  %8528 = vmatprep.mubr.bf16.mxu1 %v8107_v33  ;;  %v7525_v32 = vpop.f32.mrb[71].mxu0  ;;  %8432 = vmatmul.mubr.bf16.vlgmr.msra.gmra.mrb[96].mxu0 %v8104_v5  ;;  %v8048_v26 = vmax.f32 %v9711_v62, 0.0 }
 0x483   :  { %v9745_v16 = vadd.f32 %v7975_v34, %v12435_v58  ;;  %v9714_v12 = vadd.f32 %v7525_v32, %v12439_v24  ;;  %v7977_v1 = vpop.f32.mrb[71].mxu1  ;;  %8529 = vmatmul.mubr.bf16.vlgmr.msra.gmra.mrb[96].mxu1 %v8106_v35  ;;  %v8050_v36 = vmax.f32 %v9743_v55, 0.0  ;;  %v8049_v13 = vmax.f32 %v9712_v31, 0.0 }
 0x484   :  { %v8052_v49 = vmax.f32 %v9713_v61, 0.0  ;;  %v9746_v28 = vadd.f32 %v7977_v1, %v12443_v38  ;;  %v8051_v41 = vmax.f32 %v9744_v40, 0.0 }
 0x485   :  { %v8054_v7 = vmax.f32 %v9745_v16, 0.0  ;;  %v8053_v18 = vmax.f32 %v9714_v12, 0.0 }
 0x486   :  { %v8108_v29 = vpack.c.bf16 %v8052_v49, %v8048_v26  ;;  %v8055_v59 = vmax.f32 %v9746_v28, 0.0 }
 0x487   :  { %v8110_v52 = vpack.c.bf16 %v8054_v7, %v8050_v36  ;;  %v8109_v60 = vpack.c.bf16 %v8053_v18, %v8049_v13  ;;  %v7529_v10 = vpop.f32.mrb[72].mxu0 }
 0x488   :  { %v8111_v22 = vpack.c.bf16 %v8055_v59, %v8051_v41  ;;  %v9715_v14 = vadd.f32 %v7529_v10, %v12431_v2  ;;  %v7981_v20 = vpop.f32.mrb[72].mxu1  ;;  %v7531_v56 = vpop.f32.mrb[73].mxu0 }
 0x489   :  { %v9747_v19 = vadd.f32 %v7981_v20, %v12435_v58  ;;  %v9716_v43 = vadd.f32 %v7531_v56, %v12439_v24  ;;  %v7983_v47 = vpop.f32.mrb[73].mxu1  ;;  %v7533_v27 = vpop.f32.mrb[74].mxu0  ;;  %8439 = vmatprep.mubr.bf16.mxu0 %v8109_v60 }
 0x48a   :  { %v9748_v9 = vadd.f32 %v7983_v47, %v12443_v38  ;;  %v9717_v39 = vadd.f32 %v7533_v27, %v12431_v2  ;;  %v7985_v54 = vpop.f32.mrb[74].mxu1  ;;  %8536 = vmatprep.mubr.bf16.mxu1 %v8111_v22  ;;  %v7535_v48 = vpop.f32.mrb[75].mxu0  ;;  %8440 = vmatmul.mubr.bf16.gmra.mrb[100].mxu0 %v8108_v29  ;;  %v8056_v3 = vmax.f32 %v9715_v14, 0.0 }
 0x48b   :  { %v9749_v0 = vadd.f32 %v7985_v54, %v12435_v58  ;;  %v9718_v46 = vadd.f32 %v7535_v48, %v12439_v24  ;;  %v7987_v25 = vpop.f32.mrb[75].mxu1  ;;  %8537 = vmatmul.mubr.bf16.gmra.mrb[100].mxu1 %v8110_v52  ;;  %v8058_v8 = vmax.f32 %v9747_v19, 0.0  ;;  %v8057_v44 = vmax.f32 %v9716_v43, 0.0 }
 0x48c   :  { %v8060_v63 = vmax.f32 %v9717_v39, 0.0  ;;  %v9750_v50 = vadd.f32 %v7987_v25, %v12443_v38  ;;  %v8059_v57 = vmax.f32 %v9748_v9, 0.0 }
 0x48d   :  { %v8062_v11 = vmax.f32 %v9749_v0, 0.0  ;;  %v8061_v30 = vmax.f32 %v9718_v46, 0.0 }
 0x48e   :  { %v8112_v21 = vpack.c.bf16 %v8060_v63, %v8056_v3  ;;  %v8063_v23 = vmax.f32 %v9750_v50, 0.0 }
 0x48f   :  { %v8114_v37 = vpack.c.bf16 %v8062_v11, %v8058_v8  ;;  %v8113_v53 = vpack.c.bf16 %v8061_v30, %v8057_v44  ;;  %v7539_v5 = vpop.f32.mrb[76].mxu0 }
 0x490   :  { %v8115_v45 = vpack.c.bf16 %v8063_v23, %v8059_v57  ;;  %v9719_v35 = vadd.f32 %v7539_v5, %v12431_v2  ;;  %v7991_v6 = vpop.f32.mrb[76].mxu1  ;;  %v7541_v15 = vpop.f32.mrb[77].mxu0 }
 0x491   :  { %v9751_v33 = vadd.f32 %v7991_v6, %v12435_v58  ;;  %v9720_v62 = vadd.f32 %v7541_v15, %v12439_v24  ;;  %v7993_v51 = vpop.f32.mrb[77].mxu1  ;;  %v7543_v42 = vpop.f32.mrb[78].mxu0  ;;  %8447 = vmatprep.mubr.bf16.mxu0 %v8113_v53 }
 0x492   :  { %v9752_v55 = vadd.f32 %v7993_v51, %v12443_v38  ;;  %v9721_v31 = vadd.f32 %v7543_v42, %v12431_v2  ;;  %v7995_v4 = vpop.f32.mrb[78].mxu1  ;;  %8544 = vmatprep.mubr.bf16.mxu1 %v8115_v45  ;;  %v7545_v17 = vpop.f32.mrb[79].mxu0  ;;  %8448 = vmatmul.mubr.bf16.gmra.mrb[104].mxu0 %v8112_v21  ;;  %v8064_v32 = vmax.f32 %v9719_v35, 0.0 }
 0x493   :  { %v9753_v40 = vadd.f32 %v7995_v4, %v12435_v58  ;;  %v9722_v61 = vadd.f32 %v7545_v17, %v12439_v24  ;;  %v7997_v34 = vpop.f32.mrb[79].mxu1  ;;  %8545 = vmatmul.mubr.bf16.gmra.mrb[104].mxu1 %v8114_v37  ;;  %v8066_v1 = vmax.f32 %v9751_v33, 0.0  ;;  %v8065_v26 = vmax.f32 %v9720_v62, 0.0 }
 0x494   :  { %v8068_v16 = vmax.f32 %v9721_v31, 0.0  ;;  %v9754_v12 = vadd.f32 %v7997_v34, %v12443_v38  ;;  %v8067_v36 = vmax.f32 %v9752_v55, 0.0 }
 0x495   :  { %v8070_v49 = vmax.f32 %v9753_v40, 0.0  ;;  %v8069_v28 = vmax.f32 %v9722_v61, 0.0 }
 0x496   :  { %v8116_v13 = vpack.c.bf16 %v8068_v16, %v8064_v32  ;;  %v8071_v7 = vmax.f32 %v9754_v12, 0.0 }
 0x497   :  { %v8118_v18 = vpack.c.bf16 %v8070_v49, %v8066_v1  ;;  %v8117_v41 = vpack.c.bf16 %v8069_v28, %v8065_v26  ;;  %v7549_v29 = vpop.f32.mrb[80].mxu0 }
 0x498   :  { %v8119_v59 = vpack.c.bf16 %v8071_v7, %v8067_v36  ;;  %v9723_v52 = vadd.f32 %v7549_v29, %v12431_v2  ;;  %v8001_v60 = vpop.f32.mrb[80].mxu1  ;;  %v7551_v10 = vpop.f32.mrb[81].mxu0 }
 0x499   :  { %v9755_v22 = vadd.f32 %v8001_v60, %v12435_v58  ;;  %v9724_v14 = vadd.f32 %v7551_v10, %v12439_v24  ;;  %v8003_v20 = vpop.f32.mrb[81].mxu1  ;;  %v7553_v56 = vpop.f32.mrb[82].mxu0  ;;  %8455 = vmatprep.mubr.bf16.mxu0 %v8117_v41 }
 0x49a   :  { %v9756_v19 = vadd.f32 %v8003_v20, %v12443_v38  ;;  %v9725_v43 = vadd.f32 %v7553_v56, %v12431_v2  ;;  %v8005_v47 = vpop.f32.mrb[82].mxu1  ;;  %8552 = vmatprep.mubr.bf16.mxu1 %v8119_v59  ;;  %v7555_v27 = vpop.f32.mrb[83].mxu0  ;;  %8456 = vmatmul.mubr.bf16.gmra.mrb[108].mxu0 %v8116_v13  ;;  %v8072_v48 = vmax.f32 %v9723_v52, 0.0 }
 0x49b   :  { %v9757_v9 = vadd.f32 %v8005_v47, %v12435_v58  ;;  %v9726_v39 = vadd.f32 %v7555_v27, %v12439_v24  ;;  %v8007_v54 = vpop.f32.mrb[83].mxu1  ;;  %8553 = vmatmul.mubr.bf16.gmra.mrb[108].mxu1 %v8118_v18  ;;  %v8074_v25 = vmax.f32 %v9755_v22, 0.0  ;;  %v8073_v3 = vmax.f32 %v9724_v14, 0.0 }
 0x49c   :  { %v8076_v0 = vmax.f32 %v9725_v43, 0.0  ;;  %v9758_v46 = vadd.f32 %v8007_v54, %v12443_v38  ;;  %v8075_v8 = vmax.f32 %v9756_v19, 0.0 }
 0x49d   :  { %v8078_v63 = vmax.f32 %v9757_v9, 0.0  ;;  %v8077_v50 = vmax.f32 %v9726_v39, 0.0 }
 0x49e   :  { %v8120_v44 = vpack.c.bf16 %v8076_v0, %v8072_v48  ;;  %v8079_v11 = vmax.f32 %v9758_v46, 0.0 }
 0x49f   :  { %v8122_v30 = vpack.c.bf16 %v8078_v63, %v8074_v25  ;;  %v8121_v57 = vpack.c.bf16 %v8077_v50, %v8073_v3  ;;  %v7559_v21 = vpop.f32.mrb[84].mxu0 }
 0x4a0   :  { %v8123_v23 = vpack.c.bf16 %v8079_v11, %v8075_v8  ;;  %v9727_v37 = vadd.f32 %v7559_v21, %v12431_v2  ;;  %v8011_v53 = vpop.f32.mrb[84].mxu1  ;;  %v7561_v5 = vpop.f32.mrb[85].mxu0 }
 0x4a1   :  { %v9759_v45 = vadd.f32 %v8011_v53, %v12435_v58  ;;  %v9728_v35 = vadd.f32 %v7561_v5, %v12439_v24  ;;  %v8013_v6 = vpop.f32.mrb[85].mxu1  ;;  %v7563_v15 = vpop.f32.mrb[86].mxu0  ;;  %8463 = vmatprep.mubr.bf16.mxu0 %v8121_v57 }
 0x4a2   :  { %v9760_v33 = vadd.f32 %v8013_v6, %v12443_v38  ;;  %v9729_v62 = vadd.f32 %v7563_v15, %v12431_v2  ;;  %v8015_v51 = vpop.f32.mrb[86].mxu1  ;;  %8560 = vmatprep.mubr.bf16.mxu1 %v8123_v23  ;;  %v7565_v42 = vpop.f32.mrb[87].mxu0  ;;  %8464 = vmatmul.mubr.bf16.gmra.mrb[112].mxu0 %v8120_v44  ;;  %v8080_v17 = vmax.f32 %v9727_v37, 0.0 }
 0x4a3   :  { %v9761_v55 = vadd.f32 %v8015_v51, %v12435_v58  ;;  %v9730_v31 = vadd.f32 %v7565_v42, %v12439_v24  ;;  %v8017_v4 = vpop.f32.mrb[87].mxu1  ;;  %8561 = vmatmul.mubr.bf16.gmra.mrb[112].mxu1 %v8122_v30  ;;  %v8082_v34 = vmax.f32 %v9759_v45, 0.0  ;;  %v8081_v32 = vmax.f32 %v9728_v35, 0.0 }
 0x4a4   :  { %v8084_v40 = vmax.f32 %v9729_v62, 0.0  ;;  %v9762_v61 = vadd.f32 %v8017_v4, %v12443_v38  ;;  %v8083_v1 = vmax.f32 %v9760_v33, 0.0 }
 0x4a5   :  { %v8086_v16 = vmax.f32 %v9761_v55, 0.0  ;;  %v8085_v12 = vmax.f32 %v9730_v31, 0.0 }
 0x4a6   :  { %v8124_v26 = vpack.c.bf16 %v8084_v40, %v8080_v17  ;;  %v8087_v49 = vmax.f32 %v9762_v61, 0.0 }
 0x4a7   :  { %v8126_v28 = vpack.c.bf16 %v8086_v16, %v8082_v34  ;;  %v8125_v36 = vpack.c.bf16 %v8085_v12, %v8081_v32  ;;  %v7569_v13 = vpop.f32.mrb[88].mxu0 }
 0x4a8   :  { %v8127_v7 = vpack.c.bf16 %v8087_v49, %v8083_v1  ;;  %v9731_v18 = vadd.f32 %v7569_v13, %v12431_v2  ;;  %v8021_v41 = vpop.f32.mrb[88].mxu1  ;;  %v7571_v29 = vpop.f32.mrb[89].mxu0 }
 0x4a9   :  { %v9763_v59 = vadd.f32 %v8021_v41, %v12435_v58  ;;  %v9732_v52 = vadd.f32 %v7571_v29, %v12439_v24  ;;  %v8023_v60 = vpop.f32.mrb[89].mxu1  ;;  %v7573_v10 = vpop.f32.mrb[90].mxu0  ;;  %8471 = vmatprep.mubr.bf16.mxu0 %v8125_v36 }
 0x4aa   :  { %v9764_v22 = vadd.f32 %v8023_v60, %v12443_v38  ;;  %v9733_v14 = vadd.f32 %v7573_v10, %v12431_v2  ;;  %v8025_v20 = vpop.f32.mrb[90].mxu1  ;;  %8568 = vmatprep.mubr.bf16.mxu1 %v8127_v7  ;;  %v7575_v56 = vpop.f32.mrb[91].mxu0  ;;  %8472 = vmatmul.mubr.bf16.gmra.mrb[116].mxu0 %v8124_v26  ;;  %v8088_v27 = vmax.f32 %v9731_v18, 0.0  ;;  %v12509_v26 = vld [vmem:[#allocation12] ss:$0 sm:$0xff] }
 0x4ab   :  { %v9765_v19 = vadd.f32 %v8025_v20, %v12435_v58  ;;  %v9734_v43 = vadd.f32 %v7575_v56, %v12439_v24  ;;  %v8027_v47 = vpop.f32.mrb[91].mxu1  ;;  %8569 = vmatmul.mubr.bf16.gmra.mrb[116].mxu1 %v8126_v28  ;;  %v8090_v54 = vmax.f32 %v9763_v59, 0.0  ;;  %v8089_v48 = vmax.f32 %v9732_v52, 0.0 }
 0x4ac   :  { %v8092_v9 = vmax.f32 %v9733_v14, 0.0  ;;  %v9766_v39 = vadd.f32 %v8027_v47, %v12443_v38  ;;  %v8091_v25 = vmax.f32 %v9764_v22, 0.0  ;;  %v12513_v22 = vld [vmem:[#allocation14] ss:$0 sm:$0xff] }
 0x4ad   :  { %v8094_v0 = vmax.f32 %v9765_v19, 0.0  ;;  %v8093_v46 = vmax.f32 %v9734_v43, 0.0 }
 0x4ae   :  { %v8128_v3 = vpack.c.bf16 %v8092_v9, %v8088_v27  ;;  %v8095_v63 = vmax.f32 %v9766_v39, 0.0 }
 0x4af   :  { %v8130_v50 = vpack.c.bf16 %v8094_v0, %v8090_v54  ;;  %v8129_v8 = vpack.c.bf16 %v8093_v46, %v8089_v48  ;;  %v7579_v44 = vpop.f32.mrb[92].mxu0 }
 0x4b0   :  { %v8131_v11 = vpack.c.bf16 %v8095_v63, %v8091_v25  ;;  %v9735_v30 = vadd.f32 %v7579_v44, %v12431_v2  ;;  %v8031_v57 = vpop.f32.mrb[92].mxu1  ;;  %v7581_v21 = vpop.f32.mrb[93].mxu0 }
 0x4b1   :  { %v9767_v23 = vadd.f32 %v8031_v57, %v12435_v58  ;;  %v9736_v37 = vadd.f32 %v7581_v21, %v12439_v24  ;;  %v8033_v53 = vpop.f32.mrb[93].mxu1  ;;  %v7583_v5 = vpop.f32.mrb[94].mxu0  ;;  %8479 = vmatprep.mubr.bf16.mxu0 %v8129_v8 }
 0x4b2   :  { %v9768_v45 = vadd.f32 %v8033_v53, %v12443_v38  ;;  %v9737_v35 = vadd.f32 %v7583_v5, %v12431_v2  ;;  %v8035_v6 = vpop.f32.mrb[94].mxu1  ;;  %8576 = vmatprep.mubr.bf16.mxu1 %v8131_v11  ;;  %v7585_v15 = vpop.f32.mrb[95].mxu0  ;;  %8480 = vmatmul.mubr.bf16.gmra.mrb[120].mxu0 %v8128_v3  ;;  %v8096_v42 = vmax.f32 %v9735_v30, 0.0 }
 0x4b3   :  { %v9769_v33 = vadd.f32 %v8035_v6, %v12435_v58  ;;  %v9738_v62 = vadd.f32 %v7585_v15, %v12439_v24  ;;  %v8037_v51 = vpop.f32.mrb[95].mxu1  ;;  %8577 = vmatmul.mubr.bf16.gmra.mrb[120].mxu1 %v8130_v50  ;;  %v8098_v4 = vmax.f32 %v9767_v23, 0.0  ;;  %v8097_v17 = vmax.f32 %v9736_v37, 0.0 }
 0x4b4   :  { %v8100_v55 = vmax.f32 %v9737_v35, 0.0  ;;  %v9770_v31 = vadd.f32 %v8037_v51, %v12443_v38  ;;  %v8099_v34 = vmax.f32 %v9768_v45, 0.0 }
 0x4b5   :  { %v8102_v40 = vmax.f32 %v9769_v33, 0.0  ;;  %v8101_v61 = vmax.f32 %v9738_v62, 0.0 }
 0x4b6   :  { %v8132_v2 = vpack.c.bf16 %v8100_v55, %v8096_v42  ;;  %v8103_v32 = vmax.f32 %v9770_v31, 0.0 }
 0x4b7   :  { %v8134_v16 = vpack.c.bf16 %v8102_v40, %v8098_v4  ;;  %v8133_v12 = vpack.c.bf16 %v8101_v61, %v8097_v17 }
 0x4b8   :  { %v8135_v1 = vpack.c.bf16 %v8103_v32, %v8099_v34 }
 0x4b9   :  { %8487 = vmatprep.mubr.bf16.mxu0 %v8133_v12 }
 0x4ba   :  { %8584 = vmatprep.mubr.bf16.mxu1 %v8135_v1  ;;  %8488 = vmatmul.mubr.bf16.gmra.mrb[124].mxu0 %v8132_v2 }
 0x4bb   :  { %8585 = vmatmul.mubr.bf16.gmra.mrb[124].mxu1 %v8134_v16 }
 0x555   :  { %v9467_v58 = vpop.f32.mrb[96].mxu0 }
 0x556   :  { %v9531_v24 = vpop.f32.mrb[96].mxu1  ;;  %v9468_v49 = vpop.f32.mrb[97].mxu0 }
 0x557   :  { %v9469_v38 = vadd.f32 %v9468_v49, %v9467_v58  ;;  %v9532_v28 = vpop.f32.mrb[97].mxu1  ;;  %v9470_v36 = vpop.f32.mrb[98].mxu0 }
 0x558   :  { %v9533_v13 = vadd.f32 %v9532_v28, %v9531_v24  ;;  %v9534_v7 = vpop.f32.mrb[98].mxu1  ;;  %v9471_v18 = vpop.f32.mrb[99].mxu0 }
 0x559   :  { %v8434_v41 = vadd.f32 %v9469_v38, %v12509_v26  ;;  %v9472_v29 = vadd.f32 %v9471_v18, %v9470_v36  ;;  %v9535_v59 = vpop.f32.mrb[99].mxu1 }
 0x55a   :  { %v9536_v52 = vadd.f32 %v9535_v59, %v9534_v7 }
 0x55b   :  { %v8531_v60 = vadd.f32 %v9533_v13, %v8434_v41  ;;  %v8437_v10 = vadd.f32 %v9472_v29, %v12509_v26 }
 0x55d   :  { %v8593_v14 = vmax.f32 %v8531_v60, 0.0  ;;  %v8534_v20 = vadd.f32 %v9536_v52, %v8437_v10  ;;  %v9473_v56 = vpop.f32.mrb[100].mxu0 }
 0x55e   :  { %v9537_v19 = vpop.f32.mrb[100].mxu1  ;;  %v9474_v43 = vpop.f32.mrb[101].mxu0 }
 0x55f   :  { %v8594_v47 = vmax.f32 %v8534_v20, 0.0  ;;  %v9475_v27 = vadd.f32 %v9474_v43, %v9473_v56  ;;  %v9538_v9 = vpop.f32.mrb[101].mxu1  ;;  %v9476_v39 = vpop.f32.mrb[102].mxu0  ;;  %v8616_v54 = vmul.f32 %v12513_v22, %v8593_v14 }
 0x560   :  { %v9539_v48 = vadd.f32 %v9538_v9, %v9537_v19  ;;  %v9540_v0 = vpop.f32.mrb[102].mxu1  ;;  %v9477_v46 = vpop.f32.mrb[103].mxu0 }
 0x561   :  { %v8442_v25 = vadd.f32 %v9475_v27, %v12509_v26  ;;  %v9478_v3 = vadd.f32 %v9477_v46, %v9476_v39  ;;  %v9541_v63 = vpop.f32.mrb[103].mxu1  ;;  %8632 = vadd.xlane.f32.xlu0 %v8616_v54  ;;  %v8617_v50 = vmul.f32 %v12513_v22, %v8594_v47 }
 0x562   :  { %v9542_v8 = vadd.f32 %v9541_v63, %v9540_v0 }
 0x563   :  { %v8539_v44 = vadd.f32 %v9539_v48, %v8442_v25  ;;  %v8445_v11 = vadd.f32 %v9478_v3, %v12509_v26  ;;  %8634 = vadd.xlane.f32.xlu1 %v8617_v50 }
 0x565   :  { %v8595_v30 = vmax.f32 %v8539_v44, 0.0  ;;  %v8542_v57 = vadd.f32 %v9542_v8, %v8445_v11  ;;  %v9479_v21 = vpop.f32.mrb[104].mxu0 }
 0x566   :  { %v9543_v23 = vpop.f32.mrb[104].mxu1  ;;  %v9480_v37 = vpop.f32.mrb[105].mxu0 }
 0x567   :  { %v8596_v53 = vmax.f32 %v8542_v57, 0.0  ;;  %v9481_v5 = vadd.f32 %v9480_v37, %v9479_v21  ;;  %v9544_v45 = vpop.f32.mrb[105].mxu1  ;;  %v9482_v35 = vpop.f32.mrb[106].mxu0  ;;  %v8618_v6 = vmul.f32 %v12513_v22, %v8595_v30 }
 0x568   :  { %v9545_v15 = vadd.f32 %v9544_v45, %v9543_v23  ;;  %v9546_v33 = vpop.f32.mrb[106].mxu1  ;;  %v9483_v62 = vpop.f32.mrb[107].mxu0 }
 0x569   :  { %v8450_v51 = vadd.f32 %v9481_v5, %v12509_v26  ;;  %v9484_v42 = vadd.f32 %v9483_v62, %v9482_v35  ;;  %v9547_v55 = vpop.f32.mrb[107].mxu1  ;;  %8636 = vadd.xlane.f32.xlu0 %v8618_v6  ;;  %v8619_v40 = vmul.f32 %v12513_v22, %v8596_v53 }
 0x56a   :  { %v9548_v31 = vadd.f32 %v9547_v55, %v9546_v33 }
 0x56b   :  { %v8547_v4 = vadd.f32 %v9545_v15, %v8450_v51  ;;  %v8453_v17 = vadd.f32 %v9484_v42, %v12509_v26 }
 0x56d   :  { %v8597_v61 = vmax.f32 %v8547_v4, 0.0  ;;  %v8550_v34 = vadd.f32 %v9548_v31, %v8453_v17  ;;  %v9485_v2 = vpop.f32.mrb[108].mxu0  ;;  %8638 = vadd.xlane.f32.xlu0 %v8619_v40 }
 0x56e   :  { %v9549_v32 = vpop.f32.mrb[108].mxu1  ;;  %v9486_v16 = vpop.f32.mrb[109].mxu0 }
 0x56f   :  { %v8598_v12 = vmax.f32 %v8550_v34, 0.0  ;;  %v9487_v1 = vadd.f32 %v9486_v16, %v9485_v2  ;;  %v9550_v58 = vpop.f32.mrb[109].mxu1  ;;  %v9488_v24 = vpop.f32.mrb[110].mxu0  ;;  %v8620_v49 = vmul.f32 %v12513_v22, %v8597_v61 }
 0x570   :  { %v9551_v38 = vadd.f32 %v9550_v58, %v9549_v32  ;;  %v9552_v28 = vpop.f32.mrb[110].mxu1  ;;  %v9489_v36 = vpop.f32.mrb[111].mxu0 }
 0x571   :  { %v8458_v13 = vadd.f32 %v9487_v1, %v12509_v26  ;;  %v9490_v7 = vadd.f32 %v9489_v36, %v9488_v24  ;;  %v9553_v18 = vpop.f32.mrb[111].mxu1  ;;  %8640 = vadd.xlane.f32.xlu1 %v8620_v49  ;;  %v8621_v41 = vmul.f32 %v12513_v22, %v8598_v12 }
 0x572   :  { %v9554_v29 = vadd.f32 %v9553_v18, %v9552_v28 }
 0x573   :  { %v8555_v59 = vadd.f32 %v9551_v38, %v8458_v13  ;;  %v8461_v52 = vadd.f32 %v9490_v7, %v12509_v26  ;;  %8642 = vadd.xlane.f32.xlu0 %v8621_v41 }
 0x575   :  { %v8599_v60 = vmax.f32 %v8555_v59, 0.0  ;;  %v8558_v10 = vadd.f32 %v9554_v29, %v8461_v52  ;;  %v9491_v14 = vpop.f32.mrb[112].mxu0 }
 0x576   :  { %v9555_v20 = vpop.f32.mrb[112].mxu1  ;;  %v9492_v56 = vpop.f32.mrb[113].mxu0 }
 0x577   :  { %v8600_v19 = vmax.f32 %v8558_v10, 0.0  ;;  %v9493_v43 = vadd.f32 %v9492_v56, %v9491_v14  ;;  %v9556_v47 = vpop.f32.mrb[113].mxu1  ;;  %v9494_v27 = vpop.f32.mrb[114].mxu0  ;;  %v8622_v9 = vmul.f32 %v12513_v22, %v8599_v60 }
 0x578   :  { %v9557_v39 = vadd.f32 %v9556_v47, %v9555_v20  ;;  %v9558_v54 = vpop.f32.mrb[114].mxu1  ;;  %v9495_v48 = vpop.f32.mrb[115].mxu0 }
 0x579   :  { %v8466_v0 = vadd.f32 %v9493_v43, %v12509_v26  ;;  %v9496_v46 = vadd.f32 %v9495_v48, %v9494_v27  ;;  %v9559_v25 = vpop.f32.mrb[115].mxu1  ;;  %8644 = vadd.xlane.f32.xlu1 %v8622_v9  ;;  %v8623_v3 = vmul.f32 %v12513_v22, %v8600_v19 }
 0x57a   :  { %v9560_v63 = vadd.f32 %v9559_v25, %v9558_v54 }
 0x57b   :  { %v8563_v50 = vadd.f32 %v9557_v39, %v8466_v0  ;;  %v8469_v8 = vadd.f32 %v9496_v46, %v12509_v26  ;;  %8646 = vadd.xlane.f32.xlu0 %v8623_v3 }
 0x57d   :  { %v8601_v44 = vmax.f32 %v8563_v50, 0.0  ;;  %v8566_v11 = vadd.f32 %v9560_v63, %v8469_v8  ;;  %v9497_v30 = vpop.f32.mrb[116].mxu0 }
 0x57e   :  { %v9561_v57 = vpop.f32.mrb[116].mxu1  ;;  %v9498_v21 = vpop.f32.mrb[117].mxu0 }
 0x57f   :  { %v8602_v23 = vmax.f32 %v8566_v11, 0.0  ;;  %v9499_v37 = vadd.f32 %v9498_v21, %v9497_v30  ;;  %v9562_v53 = vpop.f32.mrb[117].mxu1  ;;  %v9500_v5 = vpop.f32.mrb[118].mxu0  ;;  %v8624_v45 = vmul.f32 %v12513_v22, %v8601_v44 }
 0x580   :  { %v9563_v35 = vadd.f32 %v9562_v53, %v9561_v57  ;;  %v9564_v6 = vpop.f32.mrb[118].mxu1  ;;  %v9501_v15 = vpop.f32.mrb[119].mxu0  ;;  %v9450_v57 = vld [vmem:[#allocation3] ss:$0 sm:$0xff] }
 0x581   :  { %v8474_v33 = vadd.f32 %v9499_v37, %v12509_v26  ;;  %v9502_v62 = vadd.f32 %v9501_v15, %v9500_v5  ;;  %v9565_v51 = vpop.f32.mrb[119].mxu1  ;;  %8648 = vadd.xlane.f32.xlu1 %v8624_v45  ;;  %v8625_v42 = vmul.f32 %v12513_v22, %v8602_v23 }
 0x582   :  { %v9566_v55 = vadd.f32 %v9565_v51, %v9564_v6 }
 0x583   :  { %v8571_v31 = vadd.f32 %v9563_v35, %v8474_v33  ;;  %v8477_v4 = vadd.f32 %v9502_v62, %v12509_v26  ;;  %8650 = vadd.xlane.f32.xlu0 %v8625_v42 }
 0x585   :  { %v8603_v17 = vmax.f32 %v8571_v31, 0.0  ;;  %v8574_v40 = vadd.f32 %v9566_v55, %v8477_v4  ;;  %v9503_v61 = vpop.f32.mrb[120].mxu0 }
 0x586   :  { %v9567_v34 = vpop.f32.mrb[120].mxu1  ;;  %v9504_v2 = vpop.f32.mrb[121].mxu0 }
 0x587   :  { %v8604_v32 = vmax.f32 %v8574_v40, 0.0  ;;  %v9505_v16 = vadd.f32 %v9504_v2, %v9503_v61  ;;  %v9568_v12 = vpop.f32.mrb[121].mxu1  ;;  %v9506_v1 = vpop.f32.mrb[122].mxu0  ;;  %v8626_v58 = vmul.f32 %v12513_v22, %v8603_v17 }
 0x588   :  { %v9569_v24 = vadd.f32 %v9568_v12, %v9567_v34  ;;  %v9570_v49 = vpop.f32.mrb[122].mxu1  ;;  %v9507_v38 = vpop.f32.mrb[123].mxu0 }
 0x589   :  { %v8482_v28 = vadd.f32 %v9505_v16, %v12509_v26  ;;  %v9508_v36 = vadd.f32 %v9507_v38, %v9506_v1  ;;  %v9571_v13 = vpop.f32.mrb[123].mxu1  ;;  %8652 = vadd.xlane.f32.xlu1 %v8626_v58  ;;  %v8627_v7 = vmul.f32 %v12513_v22, %v8604_v32 }
 0x58a   :  { %v9572_v18 = vadd.f32 %v9571_v13, %v9570_v49 }
 0x58b   :  { %v8579_v41 = vadd.f32 %v9569_v24, %v8482_v28  ;;  %v8485_v29 = vadd.f32 %v9508_v36, %v12509_v26  ;;  %8654 = vadd.xlane.f32.xlu0 %v8627_v7 }
 0x58d   :  { %v8605_v59 = vmax.f32 %v8579_v41, 0.0  ;;  %v8582_v52 = vadd.f32 %v9572_v18, %v8485_v29  ;;  %v9509_v60 = vpop.f32.mrb[124].mxu0 }
 0x58e   :  { %v9573_v10 = vpop.f32.mrb[124].mxu1  ;;  %v9510_v14 = vpop.f32.mrb[125].mxu0 }
 0x58f   :  { %v8606_v20 = vmax.f32 %v8582_v52, 0.0  ;;  %v9511_v56 = vadd.f32 %v9510_v14, %v9509_v60  ;;  %v9574_v19 = vpop.f32.mrb[125].mxu1  ;;  %v9512_v43 = vpop.f32.mrb[126].mxu0  ;;  %v8628_v47 = vmul.f32 %v12513_v22, %v8605_v59 }
 0x590   :  { %v9575_v27 = vadd.f32 %v9574_v19, %v9573_v10  ;;  %v9576_v9 = vpop.f32.mrb[126].mxu1  ;;  %v9513_v39 = vpop.f32.mrb[127].mxu0 }
 0x591   :  { %v8490_v54 = vadd.f32 %v9511_v56, %v12509_v26  ;;  %v9514_v48 = vadd.f32 %v9513_v39, %v9512_v43  ;;  %v9577_v0 = vpop.f32.mrb[127].mxu1  ;;  %8656 = vadd.xlane.f32.xlu1 %v8628_v47  ;;  %v8629_v46 = vmul.f32 %v12513_v22, %v8606_v20 }
 0x592   :  { %v9578_v25 = vadd.f32 %v9577_v0, %v9576_v9 }
 0x593   :  { %v8587_v3 = vadd.f32 %v9575_v27, %v8490_v54  ;;  %v8493_v63 = vadd.f32 %v9514_v48, %v12509_v26  ;;  %8658 = vadd.xlane.f32.xlu0 %v8629_v46 }
 0x595   :  { %v8607_v50 = vmax.f32 %v8587_v3, 0.0  ;;  %v8590_v8 = vadd.f32 %v9578_v25, %v8493_v63 }
 0x597   :  { %v8608_v44 = vmax.f32 %v8590_v8, 0.0  ;;  %v8630_v11 = vmul.f32 %v12513_v22, %v8607_v50 }
 0x599   :  { %8660 = vadd.xlane.f32.xlu1 %v8630_v11  ;;  %v8631_v30 = vmul.f32 %v12513_v22, %v8608_v44 }
 0x59b   :  { %8662 = vadd.xlane.f32.xlu0 %v8631_v30 }
 0x5ee   :  { %v8633_v21 = vpop.xlane.xlu0 %8632 }
 0x5ef   :  { %v8671_v23 = vadd.f32 %v9450_v57, %v8633_v21 }
 0x5f0   :  { %v8635_v37 = vpop.xlane.xlu1 %8634 }
 0x5f1   :  { %8688 = vst.msk [vmem:[%s12619_s10] sm:$0xff] %vm8687_vm3, %v8671_v23  ;;  %v8672_v26 = vadd.f32 %v9450_v57, %v8635_v37 }
 0x5f3   :  { %8689 = vst.msk [vmem:[%s12619_s10 + $0x8] sm:$0xff] %vm8687_vm3, %v8672_v26 }
 0x5f6   :  { %v8637_v53 = vpop.xlane.xlu0 %8636 }
 0x5f7   :  { %v8673_v5 = vadd.f32 %v9450_v57, %v8637_v53 }
 0x5f9   :  { %8690 = vst.msk [vmem:[%s12619_s10 + $0x10] sm:$0xff] %vm8687_vm3, %v8673_v5 }
 0x5fa   :  { %v8639_v22 = vpop.xlane.xlu0 %8638 }
 0x5fb   :  { %v8674_v45 = vadd.f32 %v9450_v57, %v8639_v22 }
 0x5fd   :  { %8691 = vst.msk [vmem:[%s12619_s10 + $0x18] sm:$0xff] %vm8687_vm3, %v8674_v45 }
 0x5fe   :  { %v8641_v35 = vpop.xlane.xlu1 %8640 }
 0x5ff   :  { %v8675_v6 = vadd.f32 %v9450_v57, %v8641_v35 }
 0x600   :  { %v8643_v15 = vpop.xlane.xlu0 %8642 }
 0x601   :  { %8692 = vst.msk [vmem:[%s12619_s10 + $0x20] sm:$0xff] %vm8687_vm3, %v8675_v6  ;;  %v8676_v33 = vadd.f32 %v9450_v57, %v8643_v15 }
 0x603   :  { %8693 = vst.msk [vmem:[%s12619_s10 + $0x28] sm:$0xff] %vm8687_vm3, %v8676_v33 }
 0x606   :  { %v8645_v62 = vpop.xlane.xlu1 %8644 }
 0x607   :  { %v8677_v51 = vadd.f32 %v9450_v57, %v8645_v62 }
 0x608   :  { %v8647_v42 = vpop.xlane.xlu0 %8646 }
 0x609   :  { %8694 = vst.msk [vmem:[%s12619_s10 + $0x30] sm:$0xff] %vm8687_vm3, %v8677_v51  ;;  %v8678_v55 = vadd.f32 %v9450_v57, %v8647_v42 }
 0x60b   :  { %8695 = vst.msk [vmem:[%s12619_s10 + $0x38] sm:$0xff] %vm8687_vm3, %v8678_v55 }
 0x60e   :  { %v8649_v31 = vpop.xlane.xlu1 %8648 }
 0x60f   :  { %v8679_v4 = vadd.f32 %v9450_v57, %v8649_v31 }
 0x610   :  { %v8651_v17 = vpop.xlane.xlu0 %8650 }
 0x611   :  { %8696 = vst.msk [vmem:[%s12619_s10 + $0x40] sm:$0xff] %vm8687_vm3, %v8679_v4  ;;  %v8680_v40 = vadd.f32 %v9450_v57, %v8651_v17 }
 0x613   :  { %8697 = vst.msk [vmem:[%s12619_s10 + $0x48] sm:$0xff] %vm8687_vm3, %v8680_v40 }
 0x616   :  { %v8653_v61 = vpop.xlane.xlu1 %8652 }
 0x617   :  { %v8681_v34 = vadd.f32 %v9450_v57, %v8653_v61 }
 0x618   :  { %v8655_v2 = vpop.xlane.xlu0 %8654 }
 0x619   :  { %8698 = vst.msk [vmem:[%s12619_s10 + $0x50] sm:$0xff] %vm8687_vm3, %v8681_v34  ;;  %v8682_v32 = vadd.f32 %v9450_v57, %v8655_v2 }
 0x61b   :  { %8699 = vst.msk [vmem:[%s12619_s10 + $0x58] sm:$0xff] %vm8687_vm3, %v8682_v32 }
 0x61e   :  { %v8657_v16 = vpop.xlane.xlu1 %8656 }
 0x61f   :  { %v8683_v12 = vadd.f32 %v9450_v57, %v8657_v16 }
 0x620   :  { %v8659_v1 = vpop.xlane.xlu0 %8658 }
 0x621   :  { %8700 = vst.msk [vmem:[%s12619_s10 + $0x60] sm:$0xff] %vm8687_vm3, %v8683_v12  ;;  %v8684_v58 = vadd.f32 %v9450_v57, %v8659_v1 }
 0x623   :  { %8701 = vst.msk [vmem:[%s12619_s10 + $0x68] sm:$0xff] %vm8687_vm3, %v8684_v58 }
 0x626   :  { %v8661_v24 = vpop.xlane.xlu1 %8660 }
 0x627   :  { %v8685_v49 = vadd.f32 %v9450_v57, %v8661_v24 }
 0x628   :  { %v8663_v38 = vpop.xlane.xlu0 %8662 }
 0x629   :  { %8702 = vst.msk [vmem:[%s12619_s10 + $0x70] sm:$0xff] %vm8687_vm3, %v8685_v49  ;;  %v8686_v28 = vadd.f32 %v9450_v57, %v8663_v38 }
 0x62b   :  { %8703 = vst.msk [vmem:[%s12619_s10 + $0x78] sm:$0xff] %vm8687_vm3, %v8686_v28 }
 0x62c   :  { %8708 = vsyncpa [#allocation5], 1 }
 0x62d   :  { %8709 = vsyncpa [#allocation7], 1 }
 0x62e   :  { %8710 = vsyncpa [#allocation10], 1 }
 0x62f   :  { %8711 = vsyncpa [#allocation13], 1 }

</bundles_post_ra>
